<compile_context>
chip_gen: v7x
topology: tpu7x:2x2x1
jax: 0.10.0
libtpu: 0.0.40
codegen_flags: <defaults>
</compile_context>

<pallas_src>
import jax
import jax.numpy as jnp
from jax.experimental import pallas as pl
from jax.experimental.pallas import tpu as pltpu

# ---- small synthetic config (stands in for GPT2Config / args / file_loader) --
D_MODEL = 32          # args.d_model == gpt2 n_embd
N_HEAD = 4
HEAD_DIM = D_MODEL // N_HEAD
N_LAYER = 2           # gpt2 n_layer
D_FF = 4 * D_MODEL    # gpt2 inner MLP dim
MAX_POS = 64          # gpt2 n_positions (wpe rows)
SEQ = 8               # Lpad
BATCH = 2
ROAD_CNT = 128        # file_loader.get_road_cnt()
TRAJ_CAT_CNT = 8      # file_loader.get_traj_category_cnt()
D_TIME_FEATURE = 6
LN_EPS = 1e-5
ATTN_SCALE = 1.0 / float(HEAD_DIM) ** 0.5

TASK_HEADS = (('road_clas', ROAD_CNT), ('time_reg', D_TIME_FEATURE),
              ('state_reg', 1), ('tul_clas', TRAJ_CAT_CNT))
N_TASKS = len(TASK_HEADS)
OUT_TOTAL = sum(d for _, d in TASK_HEADS)    # 143
OUT_PAD = 256                                # lane-dense multiple of 128


# ----------------------------- kernel helpers ---------------------------------
def _layernorm(x, g, b):
    mu = jnp.mean(x, axis=-1, keepdims=True)
    var = jnp.mean((x - mu) ** 2, axis=-1, keepdims=True)
    return (x - mu) * jax.lax.rsqrt(var + LN_EPS) * g + b


def _qkt(q, k):
    # q @ k^T via contraction of the last dims (no explicit transpose).
    return jax.lax.dot_general(q, k, (((1,), (1,)), ((), ())),
                               preferred_element_type=jnp.float32)


def _const_spec(shape):
    # full-array block, independent of the grid index
    return pl.BlockSpec(shape, lambda b: (0,) * len(shape))


# ------------------------------- fused kernel ----------------------------------
def backbone_kernel(x_ref, wpe_ref,
                    ln1_g, ln1_b, wq, wk, wv, bq, bk, bv, wo, bo,
                    ln2_g, ln2_b, wfc, bfc, wpr, bpr,
                    lnf_g, lnf_b, w1h, b1h, w2h, b2h,
                    o_ref):
    L = x_ref.shape[1]
    x = x_ref[0] + wpe_ref[...]                          # x + wpe[position_ids]

    # causal mask — built once, reused by both layers
    row = jax.lax.broadcasted_iota(jnp.int32, (L, L), 0)
    col = jax.lax.broadcasted_iota(jnp.int32, (L, L), 1)
    causal = col <= row

    for layer in range(N_LAYER):                         # static unroll
        # --- attention sub-block (pre-LN) ---
        h = _layernorm(x, ln1_g[layer], ln1_b[layer])
        attn = jnp.zeros((L, D_MODEL), jnp.float32)
        for hd in range(N_HEAD):                         # static unroll
            qh = jnp.dot(h, wq[layer, hd],
                         preferred_element_type=jnp.float32) + bq[layer, hd]
            kh = jnp.dot(h, wk[layer, hd],
                         preferred_element_type=jnp.float32) + bk[layer, hd]
            vh = jnp.dot(h, wv[layer, hd],
                         preferred_element_type=jnp.float32) + bv[layer, hd]
            s = _qkt(qh, kh) * ATTN_SCALE
            s = jnp.where(causal, s, -1e30)
            s = s - jnp.max(s, axis=-1, keepdims=True)
            p = jnp.exp(s)
            p = p * pl.reciprocal(jnp.sum(p, axis=-1, keepdims=True), approx=True)
            ctx = jnp.dot(p, vh, preferred_element_type=jnp.float32)
            # per-head output projection slice; summing == full c_proj matmul
            attn = attn + jnp.dot(ctx, wo[layer, hd],
                                  preferred_element_type=jnp.float32)
        x = x + attn + bo[layer]

        # --- MLP sub-block (pre-LN) ---
        h2 = _layernorm(x, ln2_g[layer], ln2_b[layer])
        ff = jnp.dot(h2, wfc[layer], preferred_element_type=jnp.float32) + bfc[layer]
        ff = jax.nn.gelu(ff, approximate=True)           # GPT-2 "gelu_new"
        x = x + jnp.dot(ff, wpr[layer], preferred_element_type=jnp.float32) + bpr[layer]

    # --- final layernorm + fused task heads (lane-dense output slab) ---
    x = _layernorm(x, lnf_g[...], lnf_b[...])
    # TODO(synk): exact BIGCity MLP head definition not shown; assumed Linear->ReLU->Linear.
    hh = jnp.dot(x, w1h[...], preferred_element_type=jnp.float32) + b1h[...]
    hh = jnp.maximum(hh, 0.0)
    o_ref[0] = jnp.dot(hh, w2h[...], preferred_element_type=jnp.float32) + b2h[...]


# ------------------------------- parameters -----------------------------------
def init_params(key):
    def normal(k, shape, scale=0.02):
        return scale * jax.random.normal(k, shape, jnp.float32)

    keys = iter(jax.random.split(key, 64))
    params = {'wpe': normal(next(keys), (MAX_POS, D_MODEL))}

    blocks = []
    for _ in range(N_LAYER):
        blocks.append(dict(
            ln1_g=jnp.ones((1, D_MODEL), jnp.float32),
            ln1_b=jnp.zeros((1, D_MODEL), jnp.float32),
            w_qkv=normal(next(keys), (D_MODEL, 3 * D_MODEL)),
            b_qkv=jnp.zeros((1, 3 * D_MODEL), jnp.float32),
            w_attn_proj=normal(next(keys), (D_MODEL, D_MODEL)),
            b_attn_proj=jnp.zeros((1, D_MODEL), jnp.float32),
            ln2_g=jnp.ones((1, D_MODEL), jnp.float32),
            ln2_b=jnp.zeros((1, D_MODEL), jnp.float32),
            w_fc=normal(next(keys), (D_MODEL, D_FF)),
            b_fc=jnp.zeros((1, D_FF), jnp.float32),
            w_mlp_proj=normal(next(keys), (D_FF, D_MODEL)),
            b_mlp_proj=jnp.zeros((1, D_MODEL), jnp.float32),
        ))
    params['blocks'] = blocks
    params['lnf_g'] = jnp.ones((1, D_MODEL), jnp.float32)
    params['lnf_b'] = jnp.zeros((1, D_MODEL), jnp.float32)

    heads = {}
    for name, out_dim in TASK_HEADS:
        heads[name] = dict(
            w1=normal(next(keys), (D_MODEL, D_MODEL)),
            b1=jnp.zeros((1, D_MODEL), jnp.float32),
            w2=normal(next(keys), (D_MODEL, out_dim)),
            b2=jnp.zeros((1, out_dim), jnp.float32),
        )
    params['heads'] = heads
    return params


def pack_params(params, seq_len):
    """Host-side, one-time repack: per-head weight split + fused head matrices."""
    blocks = params['blocks']

    def stack(name):
        return jnp.stack([blk[name] for blk in blocks], axis=0)

    wq_l, wk_l, wv_l, bq_l, bk_l, bv_l, wo_l = [], [], [], [], [], [], []
    for blk in blocks:
        w_q, w_k, w_v = jnp.split(blk['w_qkv'], 3, axis=1)          # (D, D) each
        b_q, b_k, b_v = jnp.split(blk['b_qkv'][0], 3, axis=0)       # (D,) each
        # GPT-2 column order is head-major: put the head axis leading so the
        # kernel only ever indexes leading axes (no lane slicing).
        wq_l.append(w_q.reshape(D_MODEL, N_HEAD, HEAD_DIM).transpose(1, 0, 2))
        wk_l.append(w_k.reshape(D_MODEL, N_HEAD, HEAD_DIM).transpose(1, 0, 2))
        wv_l.append(w_v.reshape(D_MODEL, N_HEAD, HEAD_DIM).transpose(1, 0, 2))
        bq_l.append(b_q.reshape(N_HEAD, 1, HEAD_DIM))
        bk_l.append(b_k.reshape(N_HEAD, 1, HEAD_DIM))
        bv_l.append(b_v.reshape(N_HEAD, 1, HEAD_DIM))
        wo_l.append(blk['w_attn_proj'].reshape(N_HEAD, HEAD_DIM, D_MODEL))

    # Fused task heads: concat first-layer weights, block-diagonal second layer,
    # padded to a lane-dense 256-wide output slab.
    heads = params['heads']
    w1h = jnp.concatenate([heads[n]['w1'] for n, _ in TASK_HEADS], axis=1)  # (D, 4D)
    b1h = jnp.concatenate([heads[n]['b1'] for n, _ in TASK_HEADS], axis=1)  # (1, 4D)
    w2h = jnp.zeros((N_TASKS * D_MODEL, OUT_PAD), jnp.float32)
    b2h = jnp.zeros((1, OUT_PAD), jnp.float32)
    col = 0
    for i, (n, dim) in enumerate(TASK_HEADS):
        w2h = w2h.at[i * D_MODEL:(i + 1) * D_MODEL, col:col + dim].set(heads[n]['w2'])
        b2h = b2h.at[:, col:col + dim].set(heads[n]['b2'])
        col += dim

    return dict(
        wpe=params['wpe'][:seq_len],
        ln1_g=stack('ln1_g'), ln1_b=stack('ln1_b'),
        wq=jnp.stack(wq_l), wk=jnp.stack(wk_l), wv=jnp.stack(wv_l),
        bq=jnp.stack(bq_l), bk=jnp.stack(bk_l), bv=jnp.stack(bv_l),
        wo=jnp.stack(wo_l), bo=stack('b_attn_proj'),
        ln2_g=stack('ln2_g'), ln2_b=stack('ln2_b'),
        wfc=stack('w_fc'), bfc=stack('b_fc'),
        wpr=stack('w_mlp_proj'), bpr=stack('b_mlp_proj'),
        lnf_g=params['lnf_g'], lnf_b=params['lnf_b'],
        w1h=w1h, b1h=b1h, w2h=w2h, b2h=b2h,
    )


# ------------------------------- forward ---------------------------------------
_WEIGHT_ORDER = ['wpe', 'ln1_g', 'ln1_b', 'wq', 'wk', 'wv', 'bq', 'bk', 'bv',
                 'wo', 'bo', 'ln2_g', 'ln2_b', 'wfc', 'bfc', 'wpr', 'bpr',
                 'lnf_g', 'lnf_b', 'w1h', 'b1h', 'w2h', 'b2h']


def backbone_forward(x, packed, activate_heads):
    B, L, D = x.shape
    weights = [packed[name] for name in _WEIGHT_ORDER]
    fused = pl.pallas_call(
        backbone_kernel,
        out_shape=jax.ShapeDtypeStruct((B, L, OUT_PAD), jnp.float32),
        grid=(B,),
        in_specs=[pl.BlockSpec((1, L, D), lambda b: (b, 0, 0))]
                 + [_const_spec(w.shape) for w in weights],
        out_specs=pl.BlockSpec((1, L, OUT_PAD), lambda b: (b, 0, 0)),
        compiler_params=pltpu.CompilerParams(dimension_semantics=("parallel",)),
    )(x, *weights)

    # slice the lane-dense output slab into the requested per-head outputs
    offsets, col = {}, 0
    for name, dim in TASK_HEADS:
        offsets[name] = (col, dim)
        col += dim
    outputs = {}
    for name in activate_heads:
        start, dim = offsets[name]
        outputs[name] = fused[..., start:start + dim]
    return outputs


if __name__ == "__main__":
    key = jax.random.PRNGKey(0)
    k_param, k_x = jax.random.split(key)
    params = init_params(k_param)
    packed = pack_params(params, SEQ)
    x = jax.random.normal(k_x, (BATCH, SEQ, D_MODEL), jnp.float32)

    activate_heads = ('road_clas', 'time_reg', 'state_reg', 'tul_clas')
    outs = backbone_forward(x, packed, activate_heads)
    jax.block_until_ready(outs)

    assert outs['road_clas'].shape == (BATCH, SEQ, ROAD_CNT)
    assert outs['time_reg'].shape == (BATCH, SEQ, D_TIME_FEATURE)
    assert outs['state_reg'].shape == (BATCH, SEQ, 1)
    assert outs['tul_clas'].shape == (BATCH, SEQ, TRAJ_CAT_CNT)
    print("KERNEL_OK")
</pallas_src>

<mosaic_0001>
module attributes {stable_mosaic.version = 11 : i64} {
  func.func @backbone_kernel(%arg0: i32, %arg1: memref<1x8x32xf32, #tpu.memory_space<vmem>>, %arg2: memref<8x32xf32, #tpu.memory_space<vmem>>, %arg3: memref<2x1x32xf32, #tpu.memory_space<vmem>>, %arg4: memref<2x1x32xf32, #tpu.memory_space<vmem>>, %arg5: memref<2x4x32x8xf32, #tpu.memory_space<vmem>>, %arg6: memref<2x4x32x8xf32, #tpu.memory_space<vmem>>, %arg7: memref<2x4x32x8xf32, #tpu.memory_space<vmem>>, %arg8: memref<2x4x1x8xf32, #tpu.memory_space<vmem>>, %arg9: memref<2x4x1x8xf32, #tpu.memory_space<vmem>>, %arg10: memref<2x4x1x8xf32, #tpu.memory_space<vmem>>, %arg11: memref<2x4x8x32xf32, #tpu.memory_space<vmem>>, %arg12: memref<2x1x32xf32, #tpu.memory_space<vmem>>, %arg13: memref<2x1x32xf32, #tpu.memory_space<vmem>>, %arg14: memref<2x1x32xf32, #tpu.memory_space<vmem>>, %arg15: memref<2x32x128xf32, #tpu.memory_space<vmem>>, %arg16: memref<2x1x128xf32, #tpu.memory_space<vmem>>, %arg17: memref<2x128x32xf32, #tpu.memory_space<vmem>>, %arg18: memref<2x1x32xf32, #tpu.memory_space<vmem>>, %arg19: memref<1x32xf32, #tpu.memory_space<vmem>>, %arg20: memref<1x32xf32, #tpu.memory_space<vmem>>, %arg21: memref<32x128xf32, #tpu.memory_space<vmem>>, %arg22: memref<1x128xf32, #tpu.memory_space<vmem>>, %arg23: memref<128x256xf32, #tpu.memory_space<vmem>>, %arg24: memref<1x256xf32, #tpu.memory_space<vmem>>, %arg25: memref<1x8x256xf32, #tpu.memory_space<vmem>>) attributes {dimension_semantics = [#tpu.dimension_semantics<parallel>], iteration_bounds = array<i64: 2>, scalar_prefetch = 0 : i64, scratch_operands = 0 : i64, tpu.core_type = #tpu.core_type<tc>, window_params = [{transform_indices = @transform_0, window_bounds = array<i64: 1, 8, 32>}, {pipeline_mode = #tpu.pipeline_mode<synchronous>, transform_indices = @transform_1, window_bounds = array<i64: 8, 32>}, {pipeline_mode = #tpu.pipeline_mode<synchronous>, transform_indices = @transform_2, window_bounds = array<i64: 2, 1, 32>}, {pipeline_mode = #tpu.pipeline_mode<synchronous>, transform_indices = @transform_3, window_bounds = array<i64: 2, 1, 32>}, {pipeline_mode = #tpu.pipeline_mode<synchronous>, transform_indices = @transform_4, window_bounds = array<i64: 2, 4, 32, 8>}, {pipeline_mode = #tpu.pipeline_mode<synchronous>, transform_indices = @transform_5, window_bounds = array<i64: 2, 4, 32, 8>}, {pipeline_mode = #tpu.pipeline_mode<synchronous>, transform_indices = @transform_6, window_bounds = array<i64: 2, 4, 32, 8>}, {pipeline_mode = #tpu.pipeline_mode<synchronous>, transform_indices = @transform_7, window_bounds = array<i64: 2, 4, 1, 8>}, {pipeline_mode = #tpu.pipeline_mode<synchronous>, transform_indices = @transform_8, window_bounds = array<i64: 2, 4, 1, 8>}, {pipeline_mode = #tpu.pipeline_mode<synchronous>, transform_indices = @transform_9, window_bounds = array<i64: 2, 4, 1, 8>}, {pipeline_mode = #tpu.pipeline_mode<synchronous>, transform_indices = @transform_10, window_bounds = array<i64: 2, 4, 8, 32>}, {pipeline_mode = #tpu.pipeline_mode<synchronous>, transform_indices = @transform_11, window_bounds = array<i64: 2, 1, 32>}, {pipeline_mode = #tpu.pipeline_mode<synchronous>, transform_indices = @transform_12, window_bounds = array<i64: 2, 1, 32>}, {pipeline_mode = #tpu.pipeline_mode<synchronous>, transform_indices = @transform_13, window_bounds = array<i64: 2, 1, 32>}, {pipeline_mode = #tpu.pipeline_mode<synchronous>, transform_indices = @transform_14, window_bounds = array<i64: 2, 32, 128>}, {pipeline_mode = #tpu.pipeline_mode<synchronous>, transform_indices = @transform_15, window_bounds = array<i64: 2, 1, 128>}, {pipeline_mode = #tpu.pipeline_mode<synchronous>, transform_indices = @transform_16, window_bounds = array<i64: 2, 128, 32>}, {pipeline_mode = #tpu.pipeline_mode<synchronous>, transform_indices = @transform_17, window_bounds = array<i64: 2, 1, 32>}, {pipeline_mode = #tpu.pipeline_mode<synchronous>, transform_indices = @transform_18, window_bounds = array<i64: 1, 32>}, {pipeline_mode = #tpu.pipeline_mode<synchronous>, transform_indices = @transform_19, window_bounds = array<i64: 1, 32>}, {pipeline_mode = #tpu.pipeline_mode<synchronous>, transform_indices = @transform_20, window_bounds = array<i64: 32, 128>}, {pipeline_mode = #tpu.pipeline_mode<synchronous>, transform_indices = @transform_21, window_bounds = array<i64: 1, 128>}, {pipeline_mode = #tpu.pipeline_mode<synchronous>, transform_indices = @transform_22, window_bounds = array<i64: 128, 256>}, {pipeline_mode = #tpu.pipeline_mode<synchronous>, transform_indices = @transform_23, window_bounds = array<i64: 1, 256>}, {transform_indices = @transform_24, window_bounds = array<i64: 1, 8, 256>}]} {
    %c0 = arith.constant 0 : index
    %c0_0 = arith.constant 0 : index
    %c0_1 = arith.constant 0 : index
    %0 = vector.load %arg1[%c0, %c0_0, %c0_1] : memref<1x8x32xf32, #tpu.memory_space<vmem>>, vector<1x8x32xf32>
    %1 = vector.shape_cast %0 : vector<1x8x32xf32> to vector<8x32xf32>
    %c0_2 = arith.constant 0 : index
    %c0_3 = arith.constant 0 : index
    %2 = vector.load %arg2[%c0_2, %c0_3] : memref<8x32xf32, #tpu.memory_space<vmem>>, vector<8x32xf32>
    %3 = arith.addf %1, %2 : vector<8x32xf32>
    %4 = tpu.iota {dimensions = array<i32: 0>} : vector<8x8xi32>
    %5 = tpu.iota {dimensions = array<i32: 1>} : vector<8x8xi32>
    %6 = arith.cmpi sle, %5, %4 : vector<8x8xi32>
    %c0_4 = arith.constant 0 : index
    %c0_5 = arith.constant 0 : index
    %c0_6 = arith.constant 0 : index
    %7 = vector.load %arg3[%c0_4, %c0_5, %c0_6] : memref<2x1x32xf32, #tpu.memory_space<vmem>>, vector<1x1x32xf32>
    %8 = vector.shape_cast %7 : vector<1x1x32xf32> to vector<1x32xf32>
    %c0_7 = arith.constant 0 : index
    %c0_8 = arith.constant 0 : index
    %c0_9 = arith.constant 0 : index
    %9 = vector.load %arg4[%c0_7, %c0_8, %c0_9] : memref<2x1x32xf32, #tpu.memory_space<vmem>>, vector<1x1x32xf32>
    %10 = vector.shape_cast %9 : vector<1x1x32xf32> to vector<1x32xf32>
    %cst = arith.constant dense<0.000000e+00> : vector<8xf32>
    %11 = vector.multi_reduction <add>, %3, %cst [1] : vector<8x32xf32> to vector<8xf32>
    %12 = vector.shape_cast %11 : vector<8xf32> to vector<8x1xf32>
    %cst_10 = arith.constant 3.200000e+01 : f32
    %13 = vector.broadcast %cst_10 : f32 to vector<8x1xf32>
    %14 = arith.divf %12, %13 : vector<8x1xf32>
    %15 = vector.broadcast %14 : vector<8x1xf32> to vector<8x32xf32>
    %16 = arith.subf %3, %15 : vector<8x32xf32>
    %17 = arith.mulf %16, %16 : vector<8x32xf32>
    %cst_11 = arith.constant dense<0.000000e+00> : vector<8xf32>
    %18 = vector.multi_reduction <add>, %17, %cst_11 [1] : vector<8x32xf32> to vector<8xf32>
    %19 = vector.shape_cast %18 : vector<8xf32> to vector<8x1xf32>
    %cst_12 = arith.constant 3.200000e+01 : f32
    %20 = vector.broadcast %cst_12 : f32 to vector<8x1xf32>
    %21 = arith.divf %19, %20 : vector<8x1xf32>
    %22 = vector.broadcast %14 : vector<8x1xf32> to vector<8x32xf32>
    %23 = arith.subf %3, %22 : vector<8x32xf32>
    %cst_13 = arith.constant 9.99999974E-6 : f32
    %24 = vector.broadcast %cst_13 : f32 to vector<8x1xf32>
    %25 = arith.addf %21, %24 : vector<8x1xf32>
    %26 = math.rsqrt %25 : vector<8x1xf32>
    %27 = vector.broadcast %26 : vector<8x1xf32> to vector<8x32xf32>
    %28 = arith.mulf %23, %27 : vector<8x32xf32>
    %29 = vector.broadcast %8 : vector<1x32xf32> to vector<8x32xf32>
    %30 = arith.mulf %28, %29 : vector<8x32xf32>
    %31 = vector.broadcast %10 : vector<1x32xf32> to vector<8x32xf32>
    %32 = arith.addf %30, %31 : vector<8x32xf32>
    %cst_14 = arith.constant 0.000000e+00 : f32
    %33 = vector.broadcast %cst_14 : f32 to vector<8x32xf32>
    %c0_15 = arith.constant 0 : index
    %c0_16 = arith.constant 0 : index
    %c0_17 = arith.constant 0 : index
    %c0_18 = arith.constant 0 : index
    %34 = vector.load %arg5[%c0_15, %c0_16, %c0_17, %c0_18] : memref<2x4x32x8xf32, #tpu.memory_space<vmem>>, vector<1x1x32x8xf32>
    %35 = vector.shape_cast %34 : vector<1x1x32x8xf32> to vector<32x8xf32>
    %cst_19 = arith.constant dense<0.000000e+00> : vector<8x8xf32>
    %36 = tpu.matmul %32, %35, %cst_19 {dimension_numbers = #tpu.dot_dimension_numbers<[1], [0], [0], [1], [0, 0, 1, 1], [], []>} : vector<8x32xf32>, vector<32x8xf32>, vector<8x8xf32> -> vector<8x8xf32>
    %c0_20 = arith.constant 0 : index
    %c0_21 = arith.constant 0 : index
    %c0_22 = arith.constant 0 : index
    %c0_23 = arith.constant 0 : index
    %37 = vector.load %arg8[%c0_20, %c0_21, %c0_22, %c0_23] : memref<2x4x1x8xf32, #tpu.memory_space<vmem>>, vector<1x1x1x8xf32>
    %38 = vector.shape_cast %37 : vector<1x1x1x8xf32> to vector<1x8xf32>
    %39 = vector.broadcast %38 : vector<1x8xf32> to vector<8x8xf32>
    %40 = arith.addf %36, %39 : vector<8x8xf32>
    %c0_24 = arith.constant 0 : index
    %c0_25 = arith.constant 0 : index
    %c0_26 = arith.constant 0 : index
    %c0_27 = arith.constant 0 : index
    %41 = vector.load %arg6[%c0_24, %c0_25, %c0_26, %c0_27] : memref<2x4x32x8xf32, #tpu.memory_space<vmem>>, vector<1x1x32x8xf32>
    %42 = vector.shape_cast %41 : vector<1x1x32x8xf32> to vector<32x8xf32>
    %cst_28 = arith.constant dense<0.000000e+00> : vector<8x8xf32>
    %43 = tpu.matmul %32, %42, %cst_28 {dimension_numbers = #tpu.dot_dimension_numbers<[1], [0], [0], [1], [0, 0, 1, 1], [], []>} : vector<8x32xf32>, vector<32x8xf32>, vector<8x8xf32> -> vector<8x8xf32>
    %c0_29 = arith.constant 0 : index
    %c0_30 = arith.constant 0 : index
    %c0_31 = arith.constant 0 : index
    %c0_32 = arith.constant 0 : index
    %44 = vector.load %arg9[%c0_29, %c0_30, %c0_31, %c0_32] : memref<2x4x1x8xf32, #tpu.memory_space<vmem>>, vector<1x1x1x8xf32>
    %45 = vector.shape_cast %44 : vector<1x1x1x8xf32> to vector<1x8xf32>
    %46 = vector.broadcast %45 : vector<1x8xf32> to vector<8x8xf32>
    %47 = arith.addf %43, %46 : vector<8x8xf32>
    %c0_33 = arith.constant 0 : index
    %c0_34 = arith.constant 0 : index
    %c0_35 = arith.constant 0 : index
    %c0_36 = arith.constant 0 : index
    %48 = vector.load %arg7[%c0_33, %c0_34, %c0_35, %c0_36] : memref<2x4x32x8xf32, #tpu.memory_space<vmem>>, vector<1x1x32x8xf32>
    %49 = vector.shape_cast %48 : vector<1x1x32x8xf32> to vector<32x8xf32>
    %cst_37 = arith.constant dense<0.000000e+00> : vector<8x8xf32>
    %50 = tpu.matmul %32, %49, %cst_37 {dimension_numbers = #tpu.dot_dimension_numbers<[1], [0], [0], [1], [0, 0, 1, 1], [], []>} : vector<8x32xf32>, vector<32x8xf32>, vector<8x8xf32> -> vector<8x8xf32>
    %c0_38 = arith.constant 0 : index
    %c0_39 = arith.constant 0 : index
    %c0_40 = arith.constant 0 : index
    %c0_41 = arith.constant 0 : index
    %51 = vector.load %arg10[%c0_38, %c0_39, %c0_40, %c0_41] : memref<2x4x1x8xf32, #tpu.memory_space<vmem>>, vector<1x1x1x8xf32>
    %52 = vector.shape_cast %51 : vector<1x1x1x8xf32> to vector<1x8xf32>
    %53 = vector.broadcast %52 : vector<1x8xf32> to vector<8x8xf32>
    %54 = arith.addf %50, %53 : vector<8x8xf32>
    %cst_42 = arith.constant dense<0.000000e+00> : vector<8x8xf32>
    %55 = tpu.matmul %40, %47, %cst_42 {dimension_numbers = #tpu.dot_dimension_numbers<[1], [1], [0], [0], [0, 0, 1, 0], [], []>} : vector<8x8xf32>, vector<8x8xf32>, vector<8x8xf32> -> vector<8x8xf32>
    %cst_43 = arith.constant 0.353553385 : f32
    %56 = vector.broadcast %cst_43 : f32 to vector<8x8xf32>
    %57 = arith.mulf %55, %56 : vector<8x8xf32>
    %cst_44 = arith.constant -1.000000e+30 : f32
    %58 = vector.broadcast %cst_44 : f32 to vector<8x8xf32>
    %59 = arith.select %6, %57, %58 : vector<8x8xi1>, vector<8x8xf32>
    %cst_45 = arith.constant dense<0xFF800000> : vector<8xf32>
    %60 = vector.multi_reduction <maximumf>, %59, %cst_45 [1] : vector<8x8xf32> to vector<8xf32>
    %61 = vector.shape_cast %60 : vector<8xf32> to vector<8x1xf32>
    %62 = vector.broadcast %61 : vector<8x1xf32> to vector<8x8xf32>
    %63 = arith.subf %59, %62 : vector<8x8xf32>
    %64 = math.exp %63 : vector<8x8xf32>
    %cst_46 = arith.constant dense<0.000000e+00> : vector<8xf32>
    %65 = vector.multi_reduction <add>, %64, %cst_46 [1] : vector<8x8xf32> to vector<8xf32>
    %66 = vector.shape_cast %65 : vector<8xf32> to vector<8x1xf32>
    %67 = tpu.reciprocal %66 {approx = true} : vector<8x1xf32> -> vector<8x1xf32>
    %68 = vector.broadcast %67 : vector<8x1xf32> to vector<8x8xf32>
    %69 = arith.mulf %64, %68 : vector<8x8xf32>
    %cst_47 = arith.constant dense<0.000000e+00> : vector<8x8xf32>
    %70 = tpu.matmul %69, %54, %cst_47 {dimension_numbers = #tpu.dot_dimension_numbers<[1], [0], [0], [1], [0, 0, 1, 1], [], []>} : vector<8x8xf32>, vector<8x8xf32>, vector<8x8xf32> -> vector<8x8xf32>
    %c0_48 = arith.constant 0 : index
    %c0_49 = arith.constant 0 : index
    %c0_50 = arith.constant 0 : index
    %c0_51 = arith.constant 0 : index
    %71 = vector.load %arg11[%c0_48, %c0_49, %c0_50, %c0_51] : memref<2x4x8x32xf32, #tpu.memory_space<vmem>>, vector<1x1x8x32xf32>
    %72 = vector.shape_cast %71 : vector<1x1x8x32xf32> to vector<8x32xf32>
    %cst_52 = arith.constant dense<0.000000e+00> : vector<8x32xf32>
    %73 = tpu.matmul %70, %72, %cst_52 {dimension_numbers = #tpu.dot_dimension_numbers<[1], [0], [0], [1], [0, 0, 1, 1], [], []>} : vector<8x8xf32>, vector<8x32xf32>, vector<8x32xf32> -> vector<8x32xf32>
    %74 = arith.addf %33, %73 : vector<8x32xf32>
    %c0_53 = arith.constant 0 : index
    %c1 = arith.constant 1 : index
    %c0_54 = arith.constant 0 : index
    %c0_55 = arith.constant 0 : index
    %75 = vector.load %arg5[%c0_53, %c1, %c0_54, %c0_55] : memref<2x4x32x8xf32, #tpu.memory_space<vmem>>, vector<1x1x32x8xf32>
    %76 = vector.shape_cast %75 : vector<1x1x32x8xf32> to vector<32x8xf32>
    %cst_56 = arith.constant dense<0.000000e+00> : vector<8x8xf32>
    %77 = tpu.matmul %32, %76, %cst_56 {dimension_numbers = #tpu.dot_dimension_numbers<[1], [0], [0], [1], [0, 0, 1, 1], [], []>} : vector<8x32xf32>, vector<32x8xf32>, vector<8x8xf32> -> vector<8x8xf32>
    %c0_57 = arith.constant 0 : index
    %c1_58 = arith.constant 1 : index
    %c0_59 = arith.constant 0 : index
    %c0_60 = arith.constant 0 : index
    %78 = vector.load %arg8[%c0_57, %c1_58, %c0_59, %c0_60] : memref<2x4x1x8xf32, #tpu.memory_space<vmem>>, vector<1x1x1x8xf32>
    %79 = vector.shape_cast %78 : vector<1x1x1x8xf32> to vector<1x8xf32>
    %80 = vector.broadcast %79 : vector<1x8xf32> to vector<8x8xf32>
    %81 = arith.addf %77, %80 : vector<8x8xf32>
    %c0_61 = arith.constant 0 : index
    %c1_62 = arith.constant 1 : index
    %c0_63 = arith.constant 0 : index
    %c0_64 = arith.constant 0 : index
    %82 = vector.load %arg6[%c0_61, %c1_62, %c0_63, %c0_64] : memref<2x4x32x8xf32, #tpu.memory_space<vmem>>, vector<1x1x32x8xf32>
    %83 = vector.shape_cast %82 : vector<1x1x32x8xf32> to vector<32x8xf32>
    %cst_65 = arith.constant dense<0.000000e+00> : vector<8x8xf32>
    %84 = tpu.matmul %32, %83, %cst_65 {dimension_numbers = #tpu.dot_dimension_numbers<[1], [0], [0], [1], [0, 0, 1, 1], [], []>} : vector<8x32xf32>, vector<32x8xf32>, vector<8x8xf32> -> vector<8x8xf32>
    %c0_66 = arith.constant 0 : index
    %c1_67 = arith.constant 1 : index
    %c0_68 = arith.constant 0 : index
    %c0_69 = arith.constant 0 : index
    %85 = vector.load %arg9[%c0_66, %c1_67, %c0_68, %c0_69] : memref<2x4x1x8xf32, #tpu.memory_space<vmem>>, vector<1x1x1x8xf32>
    %86 = vector.shape_cast %85 : vector<1x1x1x8xf32> to vector<1x8xf32>
    %87 = vector.broadcast %86 : vector<1x8xf32> to vector<8x8xf32>
    %88 = arith.addf %84, %87 : vector<8x8xf32>
    %c0_70 = arith.constant 0 : index
    %c1_71 = arith.constant 1 : index
    %c0_72 = arith.constant 0 : index
    %c0_73 = arith.constant 0 : index
    %89 = vector.load %arg7[%c0_70, %c1_71, %c0_72, %c0_73] : memref<2x4x32x8xf32, #tpu.memory_space<vmem>>, vector<1x1x32x8xf32>
    %90 = vector.shape_cast %89 : vector<1x1x32x8xf32> to vector<32x8xf32>
    %cst_74 = arith.constant dense<0.000000e+00> : vector<8x8xf32>
    %91 = tpu.matmul %32, %90, %cst_74 {dimension_numbers = #tpu.dot_dimension_numbers<[1], [0], [0], [1], [0, 0, 1, 1], [], []>} : vector<8x32xf32>, vector<32x8xf32>, vector<8x8xf32> -> vector<8x8xf32>
    %c0_75 = arith.constant 0 : index
    %c1_76 = arith.constant 1 : index
    %c0_77 = arith.constant 0 : index
    %c0_78 = arith.constant 0 : index
    %92 = vector.load %arg10[%c0_75, %c1_76, %c0_77, %c0_78] : memref<2x4x1x8xf32, #tpu.memory_space<vmem>>, vector<1x1x1x8xf32>
    %93 = vector.shape_cast %92 : vector<1x1x1x8xf32> to vector<1x8xf32>
    %94 = vector.broadcast %93 : vector<1x8xf32> to vector<8x8xf32>
    %95 = arith.addf %91, %94 : vector<8x8xf32>
    %cst_79 = arith.constant dense<0.000000e+00> : vector<8x8xf32>
    %96 = tpu.matmul %81, %88, %cst_79 {dimension_numbers = #tpu.dot_dimension_numbers<[1], [1], [0], [0], [0, 0, 1, 0], [], []>} : vector<8x8xf32>, vector<8x8xf32>, vector<8x8xf32> -> vector<8x8xf32>
    %cst_80 = arith.constant 0.353553385 : f32
    %97 = vector.broadcast %cst_80 : f32 to vector<8x8xf32>
    %98 = arith.mulf %96, %97 : vector<8x8xf32>
    %cst_81 = arith.constant -1.000000e+30 : f32
    %99 = vector.broadcast %cst_81 : f32 to vector<8x8xf32>
    %100 = arith.select %6, %98, %99 : vector<8x8xi1>, vector<8x8xf32>
    %cst_82 = arith.constant dense<0xFF800000> : vector<8xf32>
    %101 = vector.multi_reduction <maximumf>, %100, %cst_82 [1] : vector<8x8xf32> to vector<8xf32>
    %102 = vector.shape_cast %101 : vector<8xf32> to vector<8x1xf32>
    %103 = vector.broadcast %102 : vector<8x1xf32> to vector<8x8xf32>
    %104 = arith.subf %100, %103 : vector<8x8xf32>
    %105 = math.exp %104 : vector<8x8xf32>
    %cst_83 = arith.constant dense<0.000000e+00> : vector<8xf32>
    %106 = vector.multi_reduction <add>, %105, %cst_83 [1] : vector<8x8xf32> to vector<8xf32>
    %107 = vector.shape_cast %106 : vector<8xf32> to vector<8x1xf32>
    %108 = tpu.reciprocal %107 {approx = true} : vector<8x1xf32> -> vector<8x1xf32>
    %109 = vector.broadcast %108 : vector<8x1xf32> to vector<8x8xf32>
    %110 = arith.mulf %105, %109 : vector<8x8xf32>
    %cst_84 = arith.constant dense<0.000000e+00> : vector<8x8xf32>
    %111 = tpu.matmul %110, %95, %cst_84 {dimension_numbers = #tpu.dot_dimension_numbers<[1], [0], [0], [1], [0, 0, 1, 1], [], []>} : vector<8x8xf32>, vector<8x8xf32>, vector<8x8xf32> -> vector<8x8xf32>
    %c0_85 = arith.constant 0 : index
    %c1_86 = arith.constant 1 : index
    %c0_87 = arith.constant 0 : index
    %c0_88 = arith.constant 0 : index
    %112 = vector.load %arg11[%c0_85, %c1_86, %c0_87, %c0_88] : memref<2x4x8x32xf32, #tpu.memory_space<vmem>>, vector<1x1x8x32xf32>
    %113 = vector.shape_cast %112 : vector<1x1x8x32xf32> to vector<8x32xf32>
    %cst_89 = arith.constant dense<0.000000e+00> : vector<8x32xf32>
    %114 = tpu.matmul %111, %113, %cst_89 {dimension_numbers = #tpu.dot_dimension_numbers<[1], [0], [0], [1], [0, 0, 1, 1], [], []>} : vector<8x8xf32>, vector<8x32xf32>, vector<8x32xf32> -> vector<8x32xf32>
    %115 = arith.addf %74, %114 : vector<8x32xf32>
    %c0_90 = arith.constant 0 : index
    %c2 = arith.constant 2 : index
    %c0_91 = arith.constant 0 : index
    %c0_92 = arith.constant 0 : index
    %116 = vector.load %arg5[%c0_90, %c2, %c0_91, %c0_92] : memref<2x4x32x8xf32, #tpu.memory_space<vmem>>, vector<1x1x32x8xf32>
    %117 = vector.shape_cast %116 : vector<1x1x32x8xf32> to vector<32x8xf32>
    %cst_93 = arith.constant dense<0.000000e+00> : vector<8x8xf32>
    %118 = tpu.matmul %32, %117, %cst_93 {dimension_numbers = #tpu.dot_dimension_numbers<[1], [0], [0], [1], [0, 0, 1, 1], [], []>} : vector<8x32xf32>, vector<32x8xf32>, vector<8x8xf32> -> vector<8x8xf32>
    %c0_94 = arith.constant 0 : index
    %c2_95 = arith.constant 2 : index
    %c0_96 = arith.constant 0 : index
    %c0_97 = arith.constant 0 : index
    %119 = vector.load %arg8[%c0_94, %c2_95, %c0_96, %c0_97] : memref<2x4x1x8xf32, #tpu.memory_space<vmem>>, vector<1x1x1x8xf32>
    %120 = vector.shape_cast %119 : vector<1x1x1x8xf32> to vector<1x8xf32>
    %121 = vector.broadcast %120 : vector<1x8xf32> to vector<8x8xf32>
    %122 = arith.addf %118, %121 : vector<8x8xf32>
    %c0_98 = arith.constant 0 : index
    %c2_99 = arith.constant 2 : index
    %c0_100 = arith.constant 0 : index
    %c0_101 = arith.constant 0 : index
    %123 = vector.load %arg6[%c0_98, %c2_99, %c0_100, %c0_101] : memref<2x4x32x8xf32, #tpu.memory_space<vmem>>, vector<1x1x32x8xf32>
    %124 = vector.shape_cast %123 : vector<1x1x32x8xf32> to vector<32x8xf32>
    %cst_102 = arith.constant dense<0.000000e+00> : vector<8x8xf32>
    %125 = tpu.matmul %32, %124, %cst_102 {dimension_numbers = #tpu.dot_dimension_numbers<[1], [0], [0], [1], [0, 0, 1, 1], [], []>} : vector<8x32xf32>, vector<32x8xf32>, vector<8x8xf32> -> vector<8x8xf32>
    %c0_103 = arith.constant 0 : index
    %c2_104 = arith.constant 2 : index
    %c0_105 = arith.constant 0 : index
    %c0_106 = arith.constant 0 : index
    %126 = vector.load %arg9[%c0_103, %c2_104, %c0_105, %c0_106] : memref<2x4x1x8xf32, #tpu.memory_space<vmem>>, vector<1x1x1x8xf32>
    %127 = vector.shape_cast %126 : vector<1x1x1x8xf32> to vector<1x8xf32>
    %128 = vector.broadcast %127 : vector<1x8xf32> to vector<8x8xf32>
    %129 = arith.addf %125, %128 : vector<8x8xf32>
    %c0_107 = arith.constant 0 : index
    %c2_108 = arith.constant 2 : index
    %c0_109 = arith.constant 0 : index
    %c0_110 = arith.constant 0 : index
    %130 = vector.load %arg7[%c0_107, %c2_108, %c0_109, %c0_110] : memref<2x4x32x8xf32, #tpu.memory_space<vmem>>, vector<1x1x32x8xf32>
    %131 = vector.shape_cast %130 : vector<1x1x32x8xf32> to vector<32x8xf32>
    %cst_111 = arith.constant dense<0.000000e+00> : vector<8x8xf32>
    %132 = tpu.matmul %32, %131, %cst_111 {dimension_numbers = #tpu.dot_dimension_numbers<[1], [0], [0], [1], [0, 0, 1, 1], [], []>} : vector<8x32xf32>, vector<32x8xf32>, vector<8x8xf32> -> vector<8x8xf32>
    %c0_112 = arith.constant 0 : index
    %c2_113 = arith.constant 2 : index
    %c0_114 = arith.constant 0 : index
    %c0_115 = arith.constant 0 : index
    %133 = vector.load %arg10[%c0_112, %c2_113, %c0_114, %c0_115] : memref<2x4x1x8xf32, #tpu.memory_space<vmem>>, vector<1x1x1x8xf32>
    %134 = vector.shape_cast %133 : vector<1x1x1x8xf32> to vector<1x8xf32>
    %135 = vector.broadcast %134 : vector<1x8xf32> to vector<8x8xf32>
    %136 = arith.addf %132, %135 : vector<8x8xf32>
    %cst_116 = arith.constant dense<0.000000e+00> : vector<8x8xf32>
    %137 = tpu.matmul %122, %129, %cst_116 {dimension_numbers = #tpu.dot_dimension_numbers<[1], [1], [0], [0], [0, 0, 1, 0], [], []>} : vector<8x8xf32>, vector<8x8xf32>, vector<8x8xf32> -> vector<8x8xf32>
    %cst_117 = arith.constant 0.353553385 : f32
    %138 = vector.broadcast %cst_117 : f32 to vector<8x8xf32>
    %139 = arith.mulf %137, %138 : vector<8x8xf32>
    %cst_118 = arith.constant -1.000000e+30 : f32
    %140 = vector.broadcast %cst_118 : f32 to vector<8x8xf32>
    %141 = arith.select %6, %139, %140 : vector<8x8xi1>, vector<8x8xf32>
    %cst_119 = arith.constant dense<0xFF800000> : vector<8xf32>
    %142 = vector.multi_reduction <maximumf>, %141, %cst_119 [1] : vector<8x8xf32> to vector<8xf32>
    %143 = vector.shape_cast %142 : vector<8xf32> to vector<8x1xf32>
    %144 = vector.broadcast %143 : vector<8x1xf32> to vector<8x8xf32>
    %145 = arith.subf %141, %144 : vector<8x8xf32>
    %146 = math.exp %145 : vector<8x8xf32>
    %cst_120 = arith.constant dense<0.000000e+00> : vector<8xf32>
    %147 = vector.multi_reduction <add>, %146, %cst_120 [1] : vector<8x8xf32> to vector<8xf32>
    %148 = vector.shape_cast %147 : vector<8xf32> to vector<8x1xf32>
    %149 = tpu.reciprocal %148 {approx = true} : vector<8x1xf32> -> vector<8x1xf32>
    %150 = vector.broadcast %149 : vector<8x1xf32> to vector<8x8xf32>
    %151 = arith.mulf %146, %150 : vector<8x8xf32>
    %cst_121 = arith.constant dense<0.000000e+00> : vector<8x8xf32>
    %152 = tpu.matmul %151, %136, %cst_121 {dimension_numbers = #tpu.dot_dimension_numbers<[1], [0], [0], [1], [0, 0, 1, 1], [], []>} : vector<8x8xf32>, vector<8x8xf32>, vector<8x8xf32> -> vector<8x8xf32>
    %c0_122 = arith.constant 0 : index
    %c2_123 = arith.constant 2 : index
    %c0_124 = arith.constant 0 : index
    %c0_125 = arith.constant 0 : index
    %153 = vector.load %arg11[%c0_122, %c2_123, %c0_124, %c0_125] : memref<2x4x8x32xf32, #tpu.memory_space<vmem>>, vector<1x1x8x32xf32>
    %154 = vector.shape_cast %153 : vector<1x1x8x32xf32> to vector<8x32xf32>
    %cst_126 = arith.constant dense<0.000000e+00> : vector<8x32xf32>
    %155 = tpu.matmul %152, %154, %cst_126 {dimension_numbers = #tpu.dot_dimension_numbers<[1], [0], [0], [1], [0, 0, 1, 1], [], []>} : vector<8x8xf32>, vector<8x32xf32>, vector<8x32xf32> -> vector<8x32xf32>
    %156 = arith.addf %115, %155 : vector<8x32xf32>
    %c0_127 = arith.constant 0 : index
    %c3 = arith.constant 3 : index
    %c0_128 = arith.constant 0 : index
    %c0_129 = arith.constant 0 : index
    %157 = vector.load %arg5[%c0_127, %c3, %c0_128, %c0_129] : memref<2x4x32x8xf32, #tpu.memory_space<vmem>>, vector<1x1x32x8xf32>
    %158 = vector.shape_cast %157 : vector<1x1x32x8xf32> to vector<32x8xf32>
    %cst_130 = arith.constant dense<0.000000e+00> : vector<8x8xf32>
    %159 = tpu.matmul %32, %158, %cst_130 {dimension_numbers = #tpu.dot_dimension_numbers<[1], [0], [0], [1], [0, 0, 1, 1], [], []>} : vector<8x32xf32>, vector<32x8xf32>, vector<8x8xf32> -> vector<8x8xf32>
    %c0_131 = arith.constant 0 : index
    %c3_132 = arith.constant 3 : index
    %c0_133 = arith.constant 0 : index
    %c0_134 = arith.constant 0 : index
    %160 = vector.load %arg8[%c0_131, %c3_132, %c0_133, %c0_134] : memref<2x4x1x8xf32, #tpu.memory_space<vmem>>, vector<1x1x1x8xf32>
    %161 = vector.shape_cast %160 : vector<1x1x1x8xf32> to vector<1x8xf32>
    %162 = vector.broadcast %161 : vector<1x8xf32> to vector<8x8xf32>
    %163 = arith.addf %159, %162 : vector<8x8xf32>
    %c0_135 = arith.constant 0 : index
    %c3_136 = arith.constant 3 : index
    %c0_137 = arith.constant 0 : index
    %c0_138 = arith.constant 0 : index
    %164 = vector.load %arg6[%c0_135, %c3_136, %c0_137, %c0_138] : memref<2x4x32x8xf32, #tpu.memory_space<vmem>>, vector<1x1x32x8xf32>
    %165 = vector.shape_cast %164 : vector<1x1x32x8xf32> to vector<32x8xf32>
    %cst_139 = arith.constant dense<0.000000e+00> : vector<8x8xf32>
    %166 = tpu.matmul %32, %165, %cst_139 {dimension_numbers = #tpu.dot_dimension_numbers<[1], [0], [0], [1], [0, 0, 1, 1], [], []>} : vector<8x32xf32>, vector<32x8xf32>, vector<8x8xf32> -> vector<8x8xf32>
    %c0_140 = arith.constant 0 : index
    %c3_141 = arith.constant 3 : index
    %c0_142 = arith.constant 0 : index
    %c0_143 = arith.constant 0 : index
    %167 = vector.load %arg9[%c0_140, %c3_141, %c0_142, %c0_143] : memref<2x4x1x8xf32, #tpu.memory_space<vmem>>, vector<1x1x1x8xf32>
    %168 = vector.shape_cast %167 : vector<1x1x1x8xf32> to vector<1x8xf32>
    %169 = vector.broadcast %168 : vector<1x8xf32> to vector<8x8xf32>
    %170 = arith.addf %166, %169 : vector<8x8xf32>
    %c0_144 = arith.constant 0 : index
    %c3_145 = arith.constant 3 : index
    %c0_146 = arith.constant 0 : index
    %c0_147 = arith.constant 0 : index
    %171 = vector.load %arg7[%c0_144, %c3_145, %c0_146, %c0_147] : memref<2x4x32x8xf32, #tpu.memory_space<vmem>>, vector<1x1x32x8xf32>
    %172 = vector.shape_cast %171 : vector<1x1x32x8xf32> to vector<32x8xf32>
    %cst_148 = arith.constant dense<0.000000e+00> : vector<8x8xf32>
    %173 = tpu.matmul %32, %172, %cst_148 {dimension_numbers = #tpu.dot_dimension_numbers<[1], [0], [0], [1], [0, 0, 1, 1], [], []>} : vector<8x32xf32>, vector<32x8xf32>, vector<8x8xf32> -> vector<8x8xf32>
    %c0_149 = arith.constant 0 : index
    %c3_150 = arith.constant 3 : index
    %c0_151 = arith.constant 0 : index
    %c0_152 = arith.constant 0 : index
    %174 = vector.load %arg10[%c0_149, %c3_150, %c0_151, %c0_152] : memref<2x4x1x8xf32, #tpu.memory_space<vmem>>, vector<1x1x1x8xf32>
    %175 = vector.shape_cast %174 : vector<1x1x1x8xf32> to vector<1x8xf32>
    %176 = vector.broadcast %175 : vector<1x8xf32> to vector<8x8xf32>
    %177 = arith.addf %173, %176 : vector<8x8xf32>
    %cst_153 = arith.constant dense<0.000000e+00> : vector<8x8xf32>
    %178 = tpu.matmul %163, %170, %cst_153 {dimension_numbers = #tpu.dot_dimension_numbers<[1], [1], [0], [0], [0, 0, 1, 0], [], []>} : vector<8x8xf32>, vector<8x8xf32>, vector<8x8xf32> -> vector<8x8xf32>
    %cst_154 = arith.constant 0.353553385 : f32
    %179 = vector.broadcast %cst_154 : f32 to vector<8x8xf32>
    %180 = arith.mulf %178, %179 : vector<8x8xf32>
    %cst_155 = arith.constant -1.000000e+30 : f32
    %181 = vector.broadcast %cst_155 : f32 to vector<8x8xf32>
    %182 = arith.select %6, %180, %181 : vector<8x8xi1>, vector<8x8xf32>
    %cst_156 = arith.constant dense<0xFF800000> : vector<8xf32>
    %183 = vector.multi_reduction <maximumf>, %182, %cst_156 [1] : vector<8x8xf32> to vector<8xf32>
    %184 = vector.shape_cast %183 : vector<8xf32> to vector<8x1xf32>
    %185 = vector.broadcast %184 : vector<8x1xf32> to vector<8x8xf32>
    %186 = arith.subf %182, %185 : vector<8x8xf32>
    %187 = math.exp %186 : vector<8x8xf32>
    %cst_157 = arith.constant dense<0.000000e+00> : vector<8xf32>
    %188 = vector.multi_reduction <add>, %187, %cst_157 [1] : vector<8x8xf32> to vector<8xf32>
    %189 = vector.shape_cast %188 : vector<8xf32> to vector<8x1xf32>
    %190 = tpu.reciprocal %189 {approx = true} : vector<8x1xf32> -> vector<8x1xf32>
    %191 = vector.broadcast %190 : vector<8x1xf32> to vector<8x8xf32>
    %192 = arith.mulf %187, %191 : vector<8x8xf32>
    %cst_158 = arith.constant dense<0.000000e+00> : vector<8x8xf32>
    %193 = tpu.matmul %192, %177, %cst_158 {dimension_numbers = #tpu.dot_dimension_numbers<[1], [0], [0], [1], [0, 0, 1, 1], [], []>} : vector<8x8xf32>, vector<8x8xf32>, vector<8x8xf32> -> vector<8x8xf32>
    %c0_159 = arith.constant 0 : index
    %c3_160 = arith.constant 3 : index
    %c0_161 = arith.constant 0 : index
    %c0_162 = arith.constant 0 : index
    %194 = vector.load %arg11[%c0_159, %c3_160, %c0_161, %c0_162] : memref<2x4x8x32xf32, #tpu.memory_space<vmem>>, vector<1x1x8x32xf32>
    %195 = vector.shape_cast %194 : vector<1x1x8x32xf32> to vector<8x32xf32>
    %cst_163 = arith.constant dense<0.000000e+00> : vector<8x32xf32>
    %196 = tpu.matmul %193, %195, %cst_163 {dimension_numbers = #tpu.dot_dimension_numbers<[1], [0], [0], [1], [0, 0, 1, 1], [], []>} : vector<8x8xf32>, vector<8x32xf32>, vector<8x32xf32> -> vector<8x32xf32>
    %197 = arith.addf %156, %196 : vector<8x32xf32>
    %198 = arith.addf %3, %197 : vector<8x32xf32>
    %c0_164 = arith.constant 0 : index
    %c0_165 = arith.constant 0 : index
    %c0_166 = arith.constant 0 : index
    %199 = vector.load %arg12[%c0_164, %c0_165, %c0_166] : memref<2x1x32xf32, #tpu.memory_space<vmem>>, vector<1x1x32xf32>
    %200 = vector.shape_cast %199 : vector<1x1x32xf32> to vector<1x32xf32>
    %201 = vector.broadcast %200 : vector<1x32xf32> to vector<8x32xf32>
    %202 = arith.addf %198, %201 : vector<8x32xf32>
    %c0_167 = arith.constant 0 : index
    %c0_168 = arith.constant 0 : index
    %c0_169 = arith.constant 0 : index
    %203 = vector.load %arg13[%c0_167, %c0_168, %c0_169] : memref<2x1x32xf32, #tpu.memory_space<vmem>>, vector<1x1x32xf32>
    %204 = vector.shape_cast %203 : vector<1x1x32xf32> to vector<1x32xf32>
    %c0_170 = arith.constant 0 : index
    %c0_171 = arith.constant 0 : index
    %c0_172 = arith.constant 0 : index
    %205 = vector.load %arg14[%c0_170, %c0_171, %c0_172] : memref<2x1x32xf32, #tpu.memory_space<vmem>>, vector<1x1x32xf32>
    %206 = vector.shape_cast %205 : vector<1x1x32xf32> to vector<1x32xf32>
    %cst_173 = arith.constant dense<0.000000e+00> : vector<8xf32>
    %207 = vector.multi_reduction <add>, %202, %cst_173 [1] : vector<8x32xf32> to vector<8xf32>
    %208 = vector.shape_cast %207 : vector<8xf32> to vector<8x1xf32>
    %cst_174 = arith.constant 3.200000e+01 : f32
    %209 = vector.broadcast %cst_174 : f32 to vector<8x1xf32>
    %210 = arith.divf %208, %209 : vector<8x1xf32>
    %211 = vector.broadcast %210 : vector<8x1xf32> to vector<8x32xf32>
    %212 = arith.subf %202, %211 : vector<8x32xf32>
    %213 = arith.mulf %212, %212 : vector<8x32xf32>
    %cst_175 = arith.constant dense<0.000000e+00> : vector<8xf32>
    %214 = vector.multi_reduction <add>, %213, %cst_175 [1] : vector<8x32xf32> to vector<8xf32>
    %215 = vector.shape_cast %214 : vector<8xf32> to vector<8x1xf32>
    %cst_176 = arith.constant 3.200000e+01 : f32
    %216 = vector.broadcast %cst_176 : f32 to vector<8x1xf32>
    %217 = arith.divf %215, %216 : vector<8x1xf32>
    %218 = vector.broadcast %210 : vector<8x1xf32> to vector<8x32xf32>
    %219 = arith.subf %202, %218 : vector<8x32xf32>
    %cst_177 = arith.constant 9.99999974E-6 : f32
    %220 = vector.broadcast %cst_177 : f32 to vector<8x1xf32>
    %221 = arith.addf %217, %220 : vector<8x1xf32>
    %222 = math.rsqrt %221 : vector<8x1xf32>
    %223 = vector.broadcast %222 : vector<8x1xf32> to vector<8x32xf32>
    %224 = arith.mulf %219, %223 : vector<8x32xf32>
    %225 = vector.broadcast %204 : vector<1x32xf32> to vector<8x32xf32>
    %226 = arith.mulf %224, %225 : vector<8x32xf32>
    %227 = vector.broadcast %206 : vector<1x32xf32> to vector<8x32xf32>
    %228 = arith.addf %226, %227 : vector<8x32xf32>
    %c0_178 = arith.constant 0 : index
    %c0_179 = arith.constant 0 : index
    %c0_180 = arith.constant 0 : index
    %229 = vector.load %arg15[%c0_178, %c0_179, %c0_180] : memref<2x32x128xf32, #tpu.memory_space<vmem>>, vector<1x32x128xf32>
    %230 = vector.shape_cast %229 : vector<1x32x128xf32> to vector<32x128xf32>
    %cst_181 = arith.constant dense<0.000000e+00> : vector<8x128xf32>
    %231 = tpu.matmul %228, %230, %cst_181 {dimension_numbers = #tpu.dot_dimension_numbers<[1], [0], [0], [1], [0, 0, 1, 1], [], []>} : vector<8x32xf32>, vector<32x128xf32>, vector<8x128xf32> -> vector<8x128xf32>
    %c0_182 = arith.constant 0 : index
    %c0_183 = arith.constant 0 : index
    %c0_184 = arith.constant 0 : index
    %232 = vector.load %arg16[%c0_182, %c0_183, %c0_184] : memref<2x1x128xf32, #tpu.memory_space<vmem>>, vector<1x1x128xf32>
    %233 = vector.shape_cast %232 : vector<1x1x128xf32> to vector<1x128xf32>
    %234 = vector.broadcast %233 : vector<1x128xf32> to vector<8x128xf32>
    %235 = arith.addf %231, %234 : vector<8x128xf32>
    %236 = arith.mulf %235, %235 : vector<8x128xf32>
    %237 = arith.mulf %235, %236 : vector<8x128xf32>
    %cst_185 = arith.constant 4.471500e-02 : f32
    %238 = vector.broadcast %cst_185 : f32 to vector<8x128xf32>
    %239 = arith.mulf %238, %237 : vector<8x128xf32>
    %240 = arith.addf %235, %239 : vector<8x128xf32>
    %cst_186 = arith.constant 0.797884583 : f32
    %241 = vector.broadcast %cst_186 : f32 to vector<8x128xf32>
    %242 = arith.mulf %241, %240 : vector<8x128xf32>
    %243 = math.tanh %242 : vector<8x128xf32>
    %cst_187 = arith.constant 1.000000e+00 : f32
    %244 = vector.broadcast %cst_187 : f32 to vector<8x128xf32>
    %245 = arith.addf %244, %243 : vector<8x128xf32>
    %cst_188 = arith.constant 5.000000e-01 : f32
    %246 = vector.broadcast %cst_188 : f32 to vector<8x128xf32>
    %247 = arith.mulf %246, %245 : vector<8x128xf32>
    %248 = arith.mulf %235, %247 : vector<8x128xf32>
    %c0_189 = arith.constant 0 : index
    %c0_190 = arith.constant 0 : index
    %c0_191 = arith.constant 0 : index
    %249 = vector.load %arg17[%c0_189, %c0_190, %c0_191] : memref<2x128x32xf32, #tpu.memory_space<vmem>>, vector<1x128x32xf32>
    %250 = vector.shape_cast %249 : vector<1x128x32xf32> to vector<128x32xf32>
    %cst_192 = arith.constant dense<0.000000e+00> : vector<8x32xf32>
    %251 = tpu.matmul %248, %250, %cst_192 {dimension_numbers = #tpu.dot_dimension_numbers<[1], [0], [0], [1], [0, 0, 1, 1], [], []>} : vector<8x128xf32>, vector<128x32xf32>, vector<8x32xf32> -> vector<8x32xf32>
    %252 = arith.addf %202, %251 : vector<8x32xf32>
    %c0_193 = arith.constant 0 : index
    %c0_194 = arith.constant 0 : index
    %c0_195 = arith.constant 0 : index
    %253 = vector.load %arg18[%c0_193, %c0_194, %c0_195] : memref<2x1x32xf32, #tpu.memory_space<vmem>>, vector<1x1x32xf32>
    %254 = vector.shape_cast %253 : vector<1x1x32xf32> to vector<1x32xf32>
    %255 = vector.broadcast %254 : vector<1x32xf32> to vector<8x32xf32>
    %256 = arith.addf %252, %255 : vector<8x32xf32>
    %c1_196 = arith.constant 1 : index
    %c0_197 = arith.constant 0 : index
    %c0_198 = arith.constant 0 : index
    %257 = vector.load %arg3[%c1_196, %c0_197, %c0_198] : memref<2x1x32xf32, #tpu.memory_space<vmem>>, vector<1x1x32xf32>
    %258 = vector.shape_cast %257 : vector<1x1x32xf32> to vector<1x32xf32>
    %c1_199 = arith.constant 1 : index
    %c0_200 = arith.constant 0 : index
    %c0_201 = arith.constant 0 : index
    %259 = vector.load %arg4[%c1_199, %c0_200, %c0_201] : memref<2x1x32xf32, #tpu.memory_space<vmem>>, vector<1x1x32xf32>
    %260 = vector.shape_cast %259 : vector<1x1x32xf32> to vector<1x32xf32>
    %cst_202 = arith.constant dense<0.000000e+00> : vector<8xf32>
    %261 = vector.multi_reduction <add>, %256, %cst_202 [1] : vector<8x32xf32> to vector<8xf32>
    %262 = vector.shape_cast %261 : vector<8xf32> to vector<8x1xf32>
    %cst_203 = arith.constant 3.200000e+01 : f32
    %263 = vector.broadcast %cst_203 : f32 to vector<8x1xf32>
    %264 = arith.divf %262, %263 : vector<8x1xf32>
    %265 = vector.broadcast %264 : vector<8x1xf32> to vector<8x32xf32>
    %266 = arith.subf %256, %265 : vector<8x32xf32>
    %267 = arith.mulf %266, %266 : vector<8x32xf32>
    %cst_204 = arith.constant dense<0.000000e+00> : vector<8xf32>
    %268 = vector.multi_reduction <add>, %267, %cst_204 [1] : vector<8x32xf32> to vector<8xf32>
    %269 = vector.shape_cast %268 : vector<8xf32> to vector<8x1xf32>
    %cst_205 = arith.constant 3.200000e+01 : f32
    %270 = vector.broadcast %cst_205 : f32 to vector<8x1xf32>
    %271 = arith.divf %269, %270 : vector<8x1xf32>
    %272 = vector.broadcast %264 : vector<8x1xf32> to vector<8x32xf32>
    %273 = arith.subf %256, %272 : vector<8x32xf32>
    %cst_206 = arith.constant 9.99999974E-6 : f32
    %274 = vector.broadcast %cst_206 : f32 to vector<8x1xf32>
    %275 = arith.addf %271, %274 : vector<8x1xf32>
    %276 = math.rsqrt %275 : vector<8x1xf32>
    %277 = vector.broadcast %276 : vector<8x1xf32> to vector<8x32xf32>
    %278 = arith.mulf %273, %277 : vector<8x32xf32>
    %279 = vector.broadcast %258 : vector<1x32xf32> to vector<8x32xf32>
    %280 = arith.mulf %278, %279 : vector<8x32xf32>
    %281 = vector.broadcast %260 : vector<1x32xf32> to vector<8x32xf32>
    %282 = arith.addf %280, %281 : vector<8x32xf32>
    %cst_207 = arith.constant 0.000000e+00 : f32
    %283 = vector.broadcast %cst_207 : f32 to vector<8x32xf32>
    %c1_208 = arith.constant 1 : index
    %c0_209 = arith.constant 0 : index
    %c0_210 = arith.constant 0 : index
    %c0_211 = arith.constant 0 : index
    %284 = vector.load %arg5[%c1_208, %c0_209, %c0_210, %c0_211] : memref<2x4x32x8xf32, #tpu.memory_space<vmem>>, vector<1x1x32x8xf32>
    %285 = vector.shape_cast %284 : vector<1x1x32x8xf32> to vector<32x8xf32>
    %cst_212 = arith.constant dense<0.000000e+00> : vector<8x8xf32>
    %286 = tpu.matmul %282, %285, %cst_212 {dimension_numbers = #tpu.dot_dimension_numbers<[1], [0], [0], [1], [0, 0, 1, 1], [], []>} : vector<8x32xf32>, vector<32x8xf32>, vector<8x8xf32> -> vector<8x8xf32>
    %c1_213 = arith.constant 1 : index
    %c0_214 = arith.constant 0 : index
    %c0_215 = arith.constant 0 : index
    %c0_216 = arith.constant 0 : index
    %287 = vector.load %arg8[%c1_213, %c0_214, %c0_215, %c0_216] : memref<2x4x1x8xf32, #tpu.memory_space<vmem>>, vector<1x1x1x8xf32>
    %288 = vector.shape_cast %287 : vector<1x1x1x8xf32> to vector<1x8xf32>
    %289 = vector.broadcast %288 : vector<1x8xf32> to vector<8x8xf32>
    %290 = arith.addf %286, %289 : vector<8x8xf32>
    %c1_217 = arith.constant 1 : index
    %c0_218 = arith.constant 0 : index
    %c0_219 = arith.constant 0 : index
    %c0_220 = arith.constant 0 : index
    %291 = vector.load %arg6[%c1_217, %c0_218, %c0_219, %c0_220] : memref<2x4x32x8xf32, #tpu.memory_space<vmem>>, vector<1x1x32x8xf32>
    %292 = vector.shape_cast %291 : vector<1x1x32x8xf32> to vector<32x8xf32>
    %cst_221 = arith.constant dense<0.000000e+00> : vector<8x8xf32>
    %293 = tpu.matmul %282, %292, %cst_221 {dimension_numbers = #tpu.dot_dimension_numbers<[1], [0], [0], [1], [0, 0, 1, 1], [], []>} : vector<8x32xf32>, vector<32x8xf32>, vector<8x8xf32> -> vector<8x8xf32>
    %c1_222 = arith.constant 1 : index
    %c0_223 = arith.constant 0 : index
    %c0_224 = arith.constant 0 : index
    %c0_225 = arith.constant 0 : index
    %294 = vector.load %arg9[%c1_222, %c0_223, %c0_224, %c0_225] : memref<2x4x1x8xf32, #tpu.memory_space<vmem>>, vector<1x1x1x8xf32>
    %295 = vector.shape_cast %294 : vector<1x1x1x8xf32> to vector<1x8xf32>
    %296 = vector.broadcast %295 : vector<1x8xf32> to vector<8x8xf32>
    %297 = arith.addf %293, %296 : vector<8x8xf32>
    %c1_226 = arith.constant 1 : index
    %c0_227 = arith.constant 0 : index
    %c0_228 = arith.constant 0 : index
    %c0_229 = arith.constant 0 : index
    %298 = vector.load %arg7[%c1_226, %c0_227, %c0_228, %c0_229] : memref<2x4x32x8xf32, #tpu.memory_space<vmem>>, vector<1x1x32x8xf32>
    %299 = vector.shape_cast %298 : vector<1x1x32x8xf32> to vector<32x8xf32>
    %cst_230 = arith.constant dense<0.000000e+00> : vector<8x8xf32>
    %300 = tpu.matmul %282, %299, %cst_230 {dimension_numbers = #tpu.dot_dimension_numbers<[1], [0], [0], [1], [0, 0, 1, 1], [], []>} : vector<8x32xf32>, vector<32x8xf32>, vector<8x8xf32> -> vector<8x8xf32>
    %c1_231 = arith.constant 1 : index
    %c0_232 = arith.constant 0 : index
    %c0_233 = arith.constant 0 : index
    %c0_234 = arith.constant 0 : index
    %301 = vector.load %arg10[%c1_231, %c0_232, %c0_233, %c0_234] : memref<2x4x1x8xf32, #tpu.memory_space<vmem>>, vector<1x1x1x8xf32>
    %302 = vector.shape_cast %301 : vector<1x1x1x8xf32> to vector<1x8xf32>
    %303 = vector.broadcast %302 : vector<1x8xf32> to vector<8x8xf32>
    %304 = arith.addf %300, %303 : vector<8x8xf32>
    %cst_235 = arith.constant dense<0.000000e+00> : vector<8x8xf32>
    %305 = tpu.matmul %290, %297, %cst_235 {dimension_numbers = #tpu.dot_dimension_numbers<[1], [1], [0], [0], [0, 0, 1, 0], [], []>} : vector<8x8xf32>, vector<8x8xf32>, vector<8x8xf32> -> vector<8x8xf32>
    %cst_236 = arith.constant 0.353553385 : f32
    %306 = vector.broadcast %cst_236 : f32 to vector<8x8xf32>
    %307 = arith.mulf %305, %306 : vector<8x8xf32>
    %cst_237 = arith.constant -1.000000e+30 : f32
    %308 = vector.broadcast %cst_237 : f32 to vector<8x8xf32>
    %309 = arith.select %6, %307, %308 : vector<8x8xi1>, vector<8x8xf32>
    %cst_238 = arith.constant dense<0xFF800000> : vector<8xf32>
    %310 = vector.multi_reduction <maximumf>, %309, %cst_238 [1] : vector<8x8xf32> to vector<8xf32>
    %311 = vector.shape_cast %310 : vector<8xf32> to vector<8x1xf32>
    %312 = vector.broadcast %311 : vector<8x1xf32> to vector<8x8xf32>
    %313 = arith.subf %309, %312 : vector<8x8xf32>
    %314 = math.exp %313 : vector<8x8xf32>
    %cst_239 = arith.constant dense<0.000000e+00> : vector<8xf32>
    %315 = vector.multi_reduction <add>, %314, %cst_239 [1] : vector<8x8xf32> to vector<8xf32>
    %316 = vector.shape_cast %315 : vector<8xf32> to vector<8x1xf32>
    %317 = tpu.reciprocal %316 {approx = true} : vector<8x1xf32> -> vector<8x1xf32>
    %318 = vector.broadcast %317 : vector<8x1xf32> to vector<8x8xf32>
    %319 = arith.mulf %314, %318 : vector<8x8xf32>
    %cst_240 = arith.constant dense<0.000000e+00> : vector<8x8xf32>
    %320 = tpu.matmul %319, %304, %cst_240 {dimension_numbers = #tpu.dot_dimension_numbers<[1], [0], [0], [1], [0, 0, 1, 1], [], []>} : vector<8x8xf32>, vector<8x8xf32>, vector<8x8xf32> -> vector<8x8xf32>
    %c1_241 = arith.constant 1 : index
    %c0_242 = arith.constant 0 : index
    %c0_243 = arith.constant 0 : index
    %c0_244 = arith.constant 0 : index
    %321 = vector.load %arg11[%c1_241, %c0_242, %c0_243, %c0_244] : memref<2x4x8x32xf32, #tpu.memory_space<vmem>>, vector<1x1x8x32xf32>
    %322 = vector.shape_cast %321 : vector<1x1x8x32xf32> to vector<8x32xf32>
    %cst_245 = arith.constant dense<0.000000e+00> : vector<8x32xf32>
    %323 = tpu.matmul %320, %322, %cst_245 {dimension_numbers = #tpu.dot_dimension_numbers<[1], [0], [0], [1], [0, 0, 1, 1], [], []>} : vector<8x8xf32>, vector<8x32xf32>, vector<8x32xf32> -> vector<8x32xf32>
    %324 = arith.addf %283, %323 : vector<8x32xf32>
    %c1_246 = arith.constant 1 : index
    %c1_247 = arith.constant 1 : index
    %c0_248 = arith.constant 0 : index
    %c0_249 = arith.constant 0 : index
    %325 = vector.load %arg5[%c1_246, %c1_247, %c0_248, %c0_249] : memref<2x4x32x8xf32, #tpu.memory_space<vmem>>, vector<1x1x32x8xf32>
    %326 = vector.shape_cast %325 : vector<1x1x32x8xf32> to vector<32x8xf32>
    %cst_250 = arith.constant dense<0.000000e+00> : vector<8x8xf32>
    %327 = tpu.matmul %282, %326, %cst_250 {dimension_numbers = #tpu.dot_dimension_numbers<[1], [0], [0], [1], [0, 0, 1, 1], [], []>} : vector<8x32xf32>, vector<32x8xf32>, vector<8x8xf32> -> vector<8x8xf32>
    %c1_251 = arith.constant 1 : index
    %c1_252 = arith.constant 1 : index
    %c0_253 = arith.constant 0 : index
    %c0_254 = arith.constant 0 : index
    %328 = vector.load %arg8[%c1_251, %c1_252, %c0_253, %c0_254] : memref<2x4x1x8xf32, #tpu.memory_space<vmem>>, vector<1x1x1x8xf32>
    %329 = vector.shape_cast %328 : vector<1x1x1x8xf32> to vector<1x8xf32>
    %330 = vector.broadcast %329 : vector<1x8xf32> to vector<8x8xf32>
    %331 = arith.addf %327, %330 : vector<8x8xf32>
    %c1_255 = arith.constant 1 : index
    %c1_256 = arith.constant 1 : index
    %c0_257 = arith.constant 0 : index
    %c0_258 = arith.constant 0 : index
    %332 = vector.load %arg6[%c1_255, %c1_256, %c0_257, %c0_258] : memref<2x4x32x8xf32, #tpu.memory_space<vmem>>, vector<1x1x32x8xf32>
    %333 = vector.shape_cast %332 : vector<1x1x32x8xf32> to vector<32x8xf32>
    %cst_259 = arith.constant dense<0.000000e+00> : vector<8x8xf32>
    %334 = tpu.matmul %282, %333, %cst_259 {dimension_numbers = #tpu.dot_dimension_numbers<[1], [0], [0], [1], [0, 0, 1, 1], [], []>} : vector<8x32xf32>, vector<32x8xf32>, vector<8x8xf32> -> vector<8x8xf32>
    %c1_260 = arith.constant 1 : index
    %c1_261 = arith.constant 1 : index
    %c0_262 = arith.constant 0 : index
    %c0_263 = arith.constant 0 : index
    %335 = vector.load %arg9[%c1_260, %c1_261, %c0_262, %c0_263] : memref<2x4x1x8xf32, #tpu.memory_space<vmem>>, vector<1x1x1x8xf32>
    %336 = vector.shape_cast %335 : vector<1x1x1x8xf32> to vector<1x8xf32>
    %337 = vector.broadcast %336 : vector<1x8xf32> to vector<8x8xf32>
    %338 = arith.addf %334, %337 : vector<8x8xf32>
    %c1_264 = arith.constant 1 : index
    %c1_265 = arith.constant 1 : index
    %c0_266 = arith.constant 0 : index
    %c0_267 = arith.constant 0 : index
    %339 = vector.load %arg7[%c1_264, %c1_265, %c0_266, %c0_267] : memref<2x4x32x8xf32, #tpu.memory_space<vmem>>, vector<1x1x32x8xf32>
    %340 = vector.shape_cast %339 : vector<1x1x32x8xf32> to vector<32x8xf32>
    %cst_268 = arith.constant dense<0.000000e+00> : vector<8x8xf32>
    %341 = tpu.matmul %282, %340, %cst_268 {dimension_numbers = #tpu.dot_dimension_numbers<[1], [0], [0], [1], [0, 0, 1, 1], [], []>} : vector<8x32xf32>, vector<32x8xf32>, vector<8x8xf32> -> vector<8x8xf32>
    %c1_269 = arith.constant 1 : index
    %c1_270 = arith.constant 1 : index
    %c0_271 = arith.constant 0 : index
    %c0_272 = arith.constant 0 : index
    %342 = vector.load %arg10[%c1_269, %c1_270, %c0_271, %c0_272] : memref<2x4x1x8xf32, #tpu.memory_space<vmem>>, vector<1x1x1x8xf32>
    %343 = vector.shape_cast %342 : vector<1x1x1x8xf32> to vector<1x8xf32>
    %344 = vector.broadcast %343 : vector<1x8xf32> to vector<8x8xf32>
    %345 = arith.addf %341, %344 : vector<8x8xf32>
    %cst_273 = arith.constant dense<0.000000e+00> : vector<8x8xf32>
    %346 = tpu.matmul %331, %338, %cst_273 {dimension_numbers = #tpu.dot_dimension_numbers<[1], [1], [0], [0], [0, 0, 1, 0], [], []>} : vector<8x8xf32>, vector<8x8xf32>, vector<8x8xf32> -> vector<8x8xf32>
    %cst_274 = arith.constant 0.353553385 : f32
    %347 = vector.broadcast %cst_274 : f32 to vector<8x8xf32>
    %348 = arith.mulf %346, %347 : vector<8x8xf32>
    %cst_275 = arith.constant -1.000000e+30 : f32
    %349 = vector.broadcast %cst_275 : f32 to vector<8x8xf32>
    %350 = arith.select %6, %348, %349 : vector<8x8xi1>, vector<8x8xf32>
    %cst_276 = arith.constant dense<0xFF800000> : vector<8xf32>
    %351 = vector.multi_reduction <maximumf>, %350, %cst_276 [1] : vector<8x8xf32> to vector<8xf32>
    %352 = vector.shape_cast %351 : vector<8xf32> to vector<8x1xf32>
    %353 = vector.broadcast %352 : vector<8x1xf32> to vector<8x8xf32>
    %354 = arith.subf %350, %353 : vector<8x8xf32>
    %355 = math.exp %354 : vector<8x8xf32>
    %cst_277 = arith.constant dense<0.000000e+00> : vector<8xf32>
    %356 = vector.multi_reduction <add>, %355, %cst_277 [1] : vector<8x8xf32> to vector<8xf32>
    %357 = vector.shape_cast %356 : vector<8xf32> to vector<8x1xf32>
    %358 = tpu.reciprocal %357 {approx = true} : vector<8x1xf32> -> vector<8x1xf32>
    %359 = vector.broadcast %358 : vector<8x1xf32> to vector<8x8xf32>
    %360 = arith.mulf %355, %359 : vector<8x8xf32>
    %cst_278 = arith.constant dense<0.000000e+00> : vector<8x8xf32>
    %361 = tpu.matmul %360, %345, %cst_278 {dimension_numbers = #tpu.dot_dimension_numbers<[1], [0], [0], [1], [0, 0, 1, 1], [], []>} : vector<8x8xf32>, vector<8x8xf32>, vector<8x8xf32> -> vector<8x8xf32>
    %c1_279 = arith.constant 1 : index
    %c1_280 = arith.constant 1 : index
    %c0_281 = arith.constant 0 : index
    %c0_282 = arith.constant 0 : index
    %362 = vector.load %arg11[%c1_279, %c1_280, %c0_281, %c0_282] : memref<2x4x8x32xf32, #tpu.memory_space<vmem>>, vector<1x1x8x32xf32>
    %363 = vector.shape_cast %362 : vector<1x1x8x32xf32> to vector<8x32xf32>
    %cst_283 = arith.constant dense<0.000000e+00> : vector<8x32xf32>
    %364 = tpu.matmul %361, %363, %cst_283 {dimension_numbers = #tpu.dot_dimension_numbers<[1], [0], [0], [1], [0, 0, 1, 1], [], []>} : vector<8x8xf32>, vector<8x32xf32>, vector<8x32xf32> -> vector<8x32xf32>
    %365 = arith.addf %324, %364 : vector<8x32xf32>
    %c1_284 = arith.constant 1 : index
    %c2_285 = arith.constant 2 : index
    %c0_286 = arith.constant 0 : index
    %c0_287 = arith.constant 0 : index
    %366 = vector.load %arg5[%c1_284, %c2_285, %c0_286, %c0_287] : memref<2x4x32x8xf32, #tpu.memory_space<vmem>>, vector<1x1x32x8xf32>
    %367 = vector.shape_cast %366 : vector<1x1x32x8xf32> to vector<32x8xf32>
    %cst_288 = arith.constant dense<0.000000e+00> : vector<8x8xf32>
    %368 = tpu.matmul %282, %367, %cst_288 {dimension_numbers = #tpu.dot_dimension_numbers<[1], [0], [0], [1], [0, 0, 1, 1], [], []>} : vector<8x32xf32>, vector<32x8xf32>, vector<8x8xf32> -> vector<8x8xf32>
    %c1_289 = arith.constant 1 : index
    %c2_290 = arith.constant 2 : index
    %c0_291 = arith.constant 0 : index
    %c0_292 = arith.constant 0 : index
    %369 = vector.load %arg8[%c1_289, %c2_290, %c0_291, %c0_292] : memref<2x4x1x8xf32, #tpu.memory_space<vmem>>, vector<1x1x1x8xf32>
    %370 = vector.shape_cast %369 : vector<1x1x1x8xf32> to vector<1x8xf32>
    %371 = vector.broadcast %370 : vector<1x8xf32> to vector<8x8xf32>
    %372 = arith.addf %368, %371 : vector<8x8xf32>
    %c1_293 = arith.constant 1 : index
    %c2_294 = arith.constant 2 : index
    %c0_295 = arith.constant 0 : index
    %c0_296 = arith.constant 0 : index
    %373 = vector.load %arg6[%c1_293, %c2_294, %c0_295, %c0_296] : memref<2x4x32x8xf32, #tpu.memory_space<vmem>>, vector<1x1x32x8xf32>
    %374 = vector.shape_cast %373 : vector<1x1x32x8xf32> to vector<32x8xf32>
    %cst_297 = arith.constant dense<0.000000e+00> : vector<8x8xf32>
    %375 = tpu.matmul %282, %374, %cst_297 {dimension_numbers = #tpu.dot_dimension_numbers<[1], [0], [0], [1], [0, 0, 1, 1], [], []>} : vector<8x32xf32>, vector<32x8xf32>, vector<8x8xf32> -> vector<8x8xf32>
    %c1_298 = arith.constant 1 : index
    %c2_299 = arith.constant 2 : index
    %c0_300 = arith.constant 0 : index
    %c0_301 = arith.constant 0 : index
    %376 = vector.load %arg9[%c1_298, %c2_299, %c0_300, %c0_301] : memref<2x4x1x8xf32, #tpu.memory_space<vmem>>, vector<1x1x1x8xf32>
    %377 = vector.shape_cast %376 : vector<1x1x1x8xf32> to vector<1x8xf32>
    %378 = vector.broadcast %377 : vector<1x8xf32> to vector<8x8xf32>
    %379 = arith.addf %375, %378 : vector<8x8xf32>
    %c1_302 = arith.constant 1 : index
    %c2_303 = arith.constant 2 : index
    %c0_304 = arith.constant 0 : index
    %c0_305 = arith.constant 0 : index
    %380 = vector.load %arg7[%c1_302, %c2_303, %c0_304, %c0_305] : memref<2x4x32x8xf32, #tpu.memory_space<vmem>>, vector<1x1x32x8xf32>
    %381 = vector.shape_cast %380 : vector<1x1x32x8xf32> to vector<32x8xf32>
    %cst_306 = arith.constant dense<0.000000e+00> : vector<8x8xf32>
    %382 = tpu.matmul %282, %381, %cst_306 {dimension_numbers = #tpu.dot_dimension_numbers<[1], [0], [0], [1], [0, 0, 1, 1], [], []>} : vector<8x32xf32>, vector<32x8xf32>, vector<8x8xf32> -> vector<8x8xf32>
    %c1_307 = arith.constant 1 : index
    %c2_308 = arith.constant 2 : index
    %c0_309 = arith.constant 0 : index
    %c0_310 = arith.constant 0 : index
    %383 = vector.load %arg10[%c1_307, %c2_308, %c0_309, %c0_310] : memref<2x4x1x8xf32, #tpu.memory_space<vmem>>, vector<1x1x1x8xf32>
    %384 = vector.shape_cast %383 : vector<1x1x1x8xf32> to vector<1x8xf32>
    %385 = vector.broadcast %384 : vector<1x8xf32> to vector<8x8xf32>
    %386 = arith.addf %382, %385 : vector<8x8xf32>
    %cst_311 = arith.constant dense<0.000000e+00> : vector<8x8xf32>
    %387 = tpu.matmul %372, %379, %cst_311 {dimension_numbers = #tpu.dot_dimension_numbers<[1], [1], [0], [0], [0, 0, 1, 0], [], []>} : vector<8x8xf32>, vector<8x8xf32>, vector<8x8xf32> -> vector<8x8xf32>
    %cst_312 = arith.constant 0.353553385 : f32
    %388 = vector.broadcast %cst_312 : f32 to vector<8x8xf32>
    %389 = arith.mulf %387, %388 : vector<8x8xf32>
    %cst_313 = arith.constant -1.000000e+30 : f32
    %390 = vector.broadcast %cst_313 : f32 to vector<8x8xf32>
    %391 = arith.select %6, %389, %390 : vector<8x8xi1>, vector<8x8xf32>
    %cst_314 = arith.constant dense<0xFF800000> : vector<8xf32>
    %392 = vector.multi_reduction <maximumf>, %391, %cst_314 [1] : vector<8x8xf32> to vector<8xf32>
    %393 = vector.shape_cast %392 : vector<8xf32> to vector<8x1xf32>
    %394 = vector.broadcast %393 : vector<8x1xf32> to vector<8x8xf32>
    %395 = arith.subf %391, %394 : vector<8x8xf32>
    %396 = math.exp %395 : vector<8x8xf32>
    %cst_315 = arith.constant dense<0.000000e+00> : vector<8xf32>
    %397 = vector.multi_reduction <add>, %396, %cst_315 [1] : vector<8x8xf32> to vector<8xf32>
    %398 = vector.shape_cast %397 : vector<8xf32> to vector<8x1xf32>
    %399 = tpu.reciprocal %398 {approx = true} : vector<8x1xf32> -> vector<8x1xf32>
    %400 = vector.broadcast %399 : vector<8x1xf32> to vector<8x8xf32>
    %401 = arith.mulf %396, %400 : vector<8x8xf32>
    %cst_316 = arith.constant dense<0.000000e+00> : vector<8x8xf32>
    %402 = tpu.matmul %401, %386, %cst_316 {dimension_numbers = #tpu.dot_dimension_numbers<[1], [0], [0], [1], [0, 0, 1, 1], [], []>} : vector<8x8xf32>, vector<8x8xf32>, vector<8x8xf32> -> vector<8x8xf32>
    %c1_317 = arith.constant 1 : index
    %c2_318 = arith.constant 2 : index
    %c0_319 = arith.constant 0 : index
    %c0_320 = arith.constant 0 : index
    %403 = vector.load %arg11[%c1_317, %c2_318, %c0_319, %c0_320] : memref<2x4x8x32xf32, #tpu.memory_space<vmem>>, vector<1x1x8x32xf32>
    %404 = vector.shape_cast %403 : vector<1x1x8x32xf32> to vector<8x32xf32>
    %cst_321 = arith.constant dense<0.000000e+00> : vector<8x32xf32>
    %405 = tpu.matmul %402, %404, %cst_321 {dimension_numbers = #tpu.dot_dimension_numbers<[1], [0], [0], [1], [0, 0, 1, 1], [], []>} : vector<8x8xf32>, vector<8x32xf32>, vector<8x32xf32> -> vector<8x32xf32>
    %406 = arith.addf %365, %405 : vector<8x32xf32>
    %c1_322 = arith.constant 1 : index
    %c3_323 = arith.constant 3 : index
    %c0_324 = arith.constant 0 : index
    %c0_325 = arith.constant 0 : index
    %407 = vector.load %arg5[%c1_322, %c3_323, %c0_324, %c0_325] : memref<2x4x32x8xf32, #tpu.memory_space<vmem>>, vector<1x1x32x8xf32>
    %408 = vector.shape_cast %407 : vector<1x1x32x8xf32> to vector<32x8xf32>
    %cst_326 = arith.constant dense<0.000000e+00> : vector<8x8xf32>
    %409 = tpu.matmul %282, %408, %cst_326 {dimension_numbers = #tpu.dot_dimension_numbers<[1], [0], [0], [1], [0, 0, 1, 1], [], []>} : vector<8x32xf32>, vector<32x8xf32>, vector<8x8xf32> -> vector<8x8xf32>
    %c1_327 = arith.constant 1 : index
    %c3_328 = arith.constant 3 : index
    %c0_329 = arith.constant 0 : index
    %c0_330 = arith.constant 0 : index
    %410 = vector.load %arg8[%c1_327, %c3_328, %c0_329, %c0_330] : memref<2x4x1x8xf32, #tpu.memory_space<vmem>>, vector<1x1x1x8xf32>
    %411 = vector.shape_cast %410 : vector<1x1x1x8xf32> to vector<1x8xf32>
    %412 = vector.broadcast %411 : vector<1x8xf32> to vector<8x8xf32>
    %413 = arith.addf %409, %412 : vector<8x8xf32>
    %c1_331 = arith.constant 1 : index
    %c3_332 = arith.constant 3 : index
    %c0_333 = arith.constant 0 : index
    %c0_334 = arith.constant 0 : index
    %414 = vector.load %arg6[%c1_331, %c3_332, %c0_333, %c0_334] : memref<2x4x32x8xf32, #tpu.memory_space<vmem>>, vector<1x1x32x8xf32>
    %415 = vector.shape_cast %414 : vector<1x1x32x8xf32> to vector<32x8xf32>
    %cst_335 = arith.constant dense<0.000000e+00> : vector<8x8xf32>
    %416 = tpu.matmul %282, %415, %cst_335 {dimension_numbers = #tpu.dot_dimension_numbers<[1], [0], [0], [1], [0, 0, 1, 1], [], []>} : vector<8x32xf32>, vector<32x8xf32>, vector<8x8xf32> -> vector<8x8xf32>
    %c1_336 = arith.constant 1 : index
    %c3_337 = arith.constant 3 : index
    %c0_338 = arith.constant 0 : index
    %c0_339 = arith.constant 0 : index
    %417 = vector.load %arg9[%c1_336, %c3_337, %c0_338, %c0_339] : memref<2x4x1x8xf32, #tpu.memory_space<vmem>>, vector<1x1x1x8xf32>
    %418 = vector.shape_cast %417 : vector<1x1x1x8xf32> to vector<1x8xf32>
    %419 = vector.broadcast %418 : vector<1x8xf32> to vector<8x8xf32>
    %420 = arith.addf %416, %419 : vector<8x8xf32>
    %c1_340 = arith.constant 1 : index
    %c3_341 = arith.constant 3 : index
    %c0_342 = arith.constant 0 : index
    %c0_343 = arith.constant 0 : index
    %421 = vector.load %arg7[%c1_340, %c3_341, %c0_342, %c0_343] : memref<2x4x32x8xf32, #tpu.memory_space<vmem>>, vector<1x1x32x8xf32>
    %422 = vector.shape_cast %421 : vector<1x1x32x8xf32> to vector<32x8xf32>
    %cst_344 = arith.constant dense<0.000000e+00> : vector<8x8xf32>
    %423 = tpu.matmul %282, %422, %cst_344 {dimension_numbers = #tpu.dot_dimension_numbers<[1], [0], [0], [1], [0, 0, 1, 1], [], []>} : vector<8x32xf32>, vector<32x8xf32>, vector<8x8xf32> -> vector<8x8xf32>
    %c1_345 = arith.constant 1 : index
    %c3_346 = arith.constant 3 : index
    %c0_347 = arith.constant 0 : index
    %c0_348 = arith.constant 0 : index
    %424 = vector.load %arg10[%c1_345, %c3_346, %c0_347, %c0_348] : memref<2x4x1x8xf32, #tpu.memory_space<vmem>>, vector<1x1x1x8xf32>
    %425 = vector.shape_cast %424 : vector<1x1x1x8xf32> to vector<1x8xf32>
    %426 = vector.broadcast %425 : vector<1x8xf32> to vector<8x8xf32>
    %427 = arith.addf %423, %426 : vector<8x8xf32>
    %cst_349 = arith.constant dense<0.000000e+00> : vector<8x8xf32>
    %428 = tpu.matmul %413, %420, %cst_349 {dimension_numbers = #tpu.dot_dimension_numbers<[1], [1], [0], [0], [0, 0, 1, 0], [], []>} : vector<8x8xf32>, vector<8x8xf32>, vector<8x8xf32> -> vector<8x8xf32>
    %cst_350 = arith.constant 0.353553385 : f32
    %429 = vector.broadcast %cst_350 : f32 to vector<8x8xf32>
    %430 = arith.mulf %428, %429 : vector<8x8xf32>
    %cst_351 = arith.constant -1.000000e+30 : f32
    %431 = vector.broadcast %cst_351 : f32 to vector<8x8xf32>
    %432 = arith.select %6, %430, %431 : vector<8x8xi1>, vector<8x8xf32>
    %cst_352 = arith.constant dense<0xFF800000> : vector<8xf32>
    %433 = vector.multi_reduction <maximumf>, %432, %cst_352 [1] : vector<8x8xf32> to vector<8xf32>
    %434 = vector.shape_cast %433 : vector<8xf32> to vector<8x1xf32>
    %435 = vector.broadcast %434 : vector<8x1xf32> to vector<8x8xf32>
    %436 = arith.subf %432, %435 : vector<8x8xf32>
    %437 = math.exp %436 : vector<8x8xf32>
    %cst_353 = arith.constant dense<0.000000e+00> : vector<8xf32>
    %438 = vector.multi_reduction <add>, %437, %cst_353 [1] : vector<8x8xf32> to vector<8xf32>
    %439 = vector.shape_cast %438 : vector<8xf32> to vector<8x1xf32>
    %440 = tpu.reciprocal %439 {approx = true} : vector<8x1xf32> -> vector<8x1xf32>
    %441 = vector.broadcast %440 : vector<8x1xf32> to vector<8x8xf32>
    %442 = arith.mulf %437, %441 : vector<8x8xf32>
    %cst_354 = arith.constant dense<0.000000e+00> : vector<8x8xf32>
    %443 = tpu.matmul %442, %427, %cst_354 {dimension_numbers = #tpu.dot_dimension_numbers<[1], [0], [0], [1], [0, 0, 1, 1], [], []>} : vector<8x8xf32>, vector<8x8xf32>, vector<8x8xf32> -> vector<8x8xf32>
    %c1_355 = arith.constant 1 : index
    %c3_356 = arith.constant 3 : index
    %c0_357 = arith.constant 0 : index
    %c0_358 = arith.constant 0 : index
    %444 = vector.load %arg11[%c1_355, %c3_356, %c0_357, %c0_358] : memref<2x4x8x32xf32, #tpu.memory_space<vmem>>, vector<1x1x8x32xf32>
    %445 = vector.shape_cast %444 : vector<1x1x8x32xf32> to vector<8x32xf32>
    %cst_359 = arith.constant dense<0.000000e+00> : vector<8x32xf32>
    %446 = tpu.matmul %443, %445, %cst_359 {dimension_numbers = #tpu.dot_dimension_numbers<[1], [0], [0], [1], [0, 0, 1, 1], [], []>} : vector<8x8xf32>, vector<8x32xf32>, vector<8x32xf32> -> vector<8x32xf32>
    %447 = arith.addf %406, %446 : vector<8x32xf32>
    %448 = arith.addf %256, %447 : vector<8x32xf32>
    %c1_360 = arith.constant 1 : index
    %c0_361 = arith.constant 0 : index
    %c0_362 = arith.constant 0 : index
    %449 = vector.load %arg12[%c1_360, %c0_361, %c0_362] : memref<2x1x32xf32, #tpu.memory_space<vmem>>, vector<1x1x32xf32>
    %450 = vector.shape_cast %449 : vector<1x1x32xf32> to vector<1x32xf32>
    %451 = vector.broadcast %450 : vector<1x32xf32> to vector<8x32xf32>
    %452 = arith.addf %448, %451 : vector<8x32xf32>
    %c1_363 = arith.constant 1 : index
    %c0_364 = arith.constant 0 : index
    %c0_365 = arith.constant 0 : index
    %453 = vector.load %arg13[%c1_363, %c0_364, %c0_365] : memref<2x1x32xf32, #tpu.memory_space<vmem>>, vector<1x1x32xf32>
    %454 = vector.shape_cast %453 : vector<1x1x32xf32> to vector<1x32xf32>
    %c1_366 = arith.constant 1 : index
    %c0_367 = arith.constant 0 : index
    %c0_368 = arith.constant 0 : index
    %455 = vector.load %arg14[%c1_366, %c0_367, %c0_368] : memref<2x1x32xf32, #tpu.memory_space<vmem>>, vector<1x1x32xf32>
    %456 = vector.shape_cast %455 : vector<1x1x32xf32> to vector<1x32xf32>
    %cst_369 = arith.constant dense<0.000000e+00> : vector<8xf32>
    %457 = vector.multi_reduction <add>, %452, %cst_369 [1] : vector<8x32xf32> to vector<8xf32>
    %458 = vector.shape_cast %457 : vector<8xf32> to vector<8x1xf32>
    %cst_370 = arith.constant 3.200000e+01 : f32
    %459 = vector.broadcast %cst_370 : f32 to vector<8x1xf32>
    %460 = arith.divf %458, %459 : vector<8x1xf32>
    %461 = vector.broadcast %460 : vector<8x1xf32> to vector<8x32xf32>
    %462 = arith.subf %452, %461 : vector<8x32xf32>
    %463 = arith.mulf %462, %462 : vector<8x32xf32>
    %cst_371 = arith.constant dense<0.000000e+00> : vector<8xf32>
    %464 = vector.multi_reduction <add>, %463, %cst_371 [1] : vector<8x32xf32> to vector<8xf32>
    %465 = vector.shape_cast %464 : vector<8xf32> to vector<8x1xf32>
    %cst_372 = arith.constant 3.200000e+01 : f32
    %466 = vector.broadcast %cst_372 : f32 to vector<8x1xf32>
    %467 = arith.divf %465, %466 : vector<8x1xf32>
    %468 = vector.broadcast %460 : vector<8x1xf32> to vector<8x32xf32>
    %469 = arith.subf %452, %468 : vector<8x32xf32>
    %cst_373 = arith.constant 9.99999974E-6 : f32
    %470 = vector.broadcast %cst_373 : f32 to vector<8x1xf32>
    %471 = arith.addf %467, %470 : vector<8x1xf32>
    %472 = math.rsqrt %471 : vector<8x1xf32>
    %473 = vector.broadcast %472 : vector<8x1xf32> to vector<8x32xf32>
    %474 = arith.mulf %469, %473 : vector<8x32xf32>
    %475 = vector.broadcast %454 : vector<1x32xf32> to vector<8x32xf32>
    %476 = arith.mulf %474, %475 : vector<8x32xf32>
    %477 = vector.broadcast %456 : vector<1x32xf32> to vector<8x32xf32>
    %478 = arith.addf %476, %477 : vector<8x32xf32>
    %c1_374 = arith.constant 1 : index
    %c0_375 = arith.constant 0 : index
    %c0_376 = arith.constant 0 : index
    %479 = vector.load %arg15[%c1_374, %c0_375, %c0_376] : memref<2x32x128xf32, #tpu.memory_space<vmem>>, vector<1x32x128xf32>
    %480 = vector.shape_cast %479 : vector<1x32x128xf32> to vector<32x128xf32>
    %cst_377 = arith.constant dense<0.000000e+00> : vector<8x128xf32>
    %481 = tpu.matmul %478, %480, %cst_377 {dimension_numbers = #tpu.dot_dimension_numbers<[1], [0], [0], [1], [0, 0, 1, 1], [], []>} : vector<8x32xf32>, vector<32x128xf32>, vector<8x128xf32> -> vector<8x128xf32>
    %c1_378 = arith.constant 1 : index
    %c0_379 = arith.constant 0 : index
    %c0_380 = arith.constant 0 : index
    %482 = vector.load %arg16[%c1_378, %c0_379, %c0_380] : memref<2x1x128xf32, #tpu.memory_space<vmem>>, vector<1x1x128xf32>
    %483 = vector.shape_cast %482 : vector<1x1x128xf32> to vector<1x128xf32>
    %484 = vector.broadcast %483 : vector<1x128xf32> to vector<8x128xf32>
    %485 = arith.addf %481, %484 : vector<8x128xf32>
    %486 = arith.mulf %485, %485 : vector<8x128xf32>
    %487 = arith.mulf %485, %486 : vector<8x128xf32>
    %cst_381 = arith.constant 4.471500e-02 : f32
    %488 = vector.broadcast %cst_381 : f32 to vector<8x128xf32>
    %489 = arith.mulf %488, %487 : vector<8x128xf32>
    %490 = arith.addf %485, %489 : vector<8x128xf32>
    %cst_382 = arith.constant 0.797884583 : f32
    %491 = vector.broadcast %cst_382 : f32 to vector<8x128xf32>
    %492 = arith.mulf %491, %490 : vector<8x128xf32>
    %493 = math.tanh %492 : vector<8x128xf32>
    %cst_383 = arith.constant 1.000000e+00 : f32
    %494 = vector.broadcast %cst_383 : f32 to vector<8x128xf32>
    %495 = arith.addf %494, %493 : vector<8x128xf32>
    %cst_384 = arith.constant 5.000000e-01 : f32
    %496 = vector.broadcast %cst_384 : f32 to vector<8x128xf32>
    %497 = arith.mulf %496, %495 : vector<8x128xf32>
    %498 = arith.mulf %485, %497 : vector<8x128xf32>
    %c1_385 = arith.constant 1 : index
    %c0_386 = arith.constant 0 : index
    %c0_387 = arith.constant 0 : index
    %499 = vector.load %arg17[%c1_385, %c0_386, %c0_387] : memref<2x128x32xf32, #tpu.memory_space<vmem>>, vector<1x128x32xf32>
    %500 = vector.shape_cast %499 : vector<1x128x32xf32> to vector<128x32xf32>
    %cst_388 = arith.constant dense<0.000000e+00> : vector<8x32xf32>
    %501 = tpu.matmul %498, %500, %cst_388 {dimension_numbers = #tpu.dot_dimension_numbers<[1], [0], [0], [1], [0, 0, 1, 1], [], []>} : vector<8x128xf32>, vector<128x32xf32>, vector<8x32xf32> -> vector<8x32xf32>
    %502 = arith.addf %452, %501 : vector<8x32xf32>
    %c1_389 = arith.constant 1 : index
    %c0_390 = arith.constant 0 : index
    %c0_391 = arith.constant 0 : index
    %503 = vector.load %arg18[%c1_389, %c0_390, %c0_391] : memref<2x1x32xf32, #tpu.memory_space<vmem>>, vector<1x1x32xf32>
    %504 = vector.shape_cast %503 : vector<1x1x32xf32> to vector<1x32xf32>
    %505 = vector.broadcast %504 : vector<1x32xf32> to vector<8x32xf32>
    %506 = arith.addf %502, %505 : vector<8x32xf32>
    %c0_392 = arith.constant 0 : index
    %c0_393 = arith.constant 0 : index
    %507 = vector.load %arg19[%c0_392, %c0_393] : memref<1x32xf32, #tpu.memory_space<vmem>>, vector<1x32xf32>
    %c0_394 = arith.constant 0 : index
    %c0_395 = arith.constant 0 : index
    %508 = vector.load %arg20[%c0_394, %c0_395] : memref<1x32xf32, #tpu.memory_space<vmem>>, vector<1x32xf32>
    %cst_396 = arith.constant dense<0.000000e+00> : vector<8xf32>
    %509 = vector.multi_reduction <add>, %506, %cst_396 [1] : vector<8x32xf32> to vector<8xf32>
    %510 = vector.shape_cast %509 : vector<8xf32> to vector<8x1xf32>
    %cst_397 = arith.constant 3.200000e+01 : f32
    %511 = vector.broadcast %cst_397 : f32 to vector<8x1xf32>
    %512 = arith.divf %510, %511 : vector<8x1xf32>
    %513 = vector.broadcast %512 : vector<8x1xf32> to vector<8x32xf32>
    %514 = arith.subf %506, %513 : vector<8x32xf32>
    %515 = arith.mulf %514, %514 : vector<8x32xf32>
    %cst_398 = arith.constant dense<0.000000e+00> : vector<8xf32>
    %516 = vector.multi_reduction <add>, %515, %cst_398 [1] : vector<8x32xf32> to vector<8xf32>
    %517 = vector.shape_cast %516 : vector<8xf32> to vector<8x1xf32>
    %cst_399 = arith.constant 3.200000e+01 : f32
    %518 = vector.broadcast %cst_399 : f32 to vector<8x1xf32>
    %519 = arith.divf %517, %518 : vector<8x1xf32>
    %520 = vector.broadcast %512 : vector<8x1xf32> to vector<8x32xf32>
    %521 = arith.subf %506, %520 : vector<8x32xf32>
    %cst_400 = arith.constant 9.99999974E-6 : f32
    %522 = vector.broadcast %cst_400 : f32 to vector<8x1xf32>
    %523 = arith.addf %519, %522 : vector<8x1xf32>
    %524 = math.rsqrt %523 : vector<8x1xf32>
    %525 = vector.broadcast %524 : vector<8x1xf32> to vector<8x32xf32>
    %526 = arith.mulf %521, %525 : vector<8x32xf32>
    %527 = vector.broadcast %507 : vector<1x32xf32> to vector<8x32xf32>
    %528 = arith.mulf %526, %527 : vector<8x32xf32>
    %529 = vector.broadcast %508 : vector<1x32xf32> to vector<8x32xf32>
    %530 = arith.addf %528, %529 : vector<8x32xf32>
    %c0_401 = arith.constant 0 : index
    %c0_402 = arith.constant 0 : index
    %531 = vector.load %arg21[%c0_401, %c0_402] : memref<32x128xf32, #tpu.memory_space<vmem>>, vector<32x128xf32>
    %cst_403 = arith.constant dense<0.000000e+00> : vector<8x128xf32>
    %532 = tpu.matmul %530, %531, %cst_403 {dimension_numbers = #tpu.dot_dimension_numbers<[1], [0], [0], [1], [0, 0, 1, 1], [], []>} : vector<8x32xf32>, vector<32x128xf32>, vector<8x128xf32> -> vector<8x128xf32>
    %c0_404 = arith.constant 0 : index
    %c0_405 = arith.constant 0 : index
    %533 = vector.load %arg22[%c0_404, %c0_405] : memref<1x128xf32, #tpu.memory_space<vmem>>, vector<1x128xf32>
    %534 = vector.broadcast %533 : vector<1x128xf32> to vector<8x128xf32>
    %535 = arith.addf %532, %534 : vector<8x128xf32>
    %cst_406 = arith.constant 0.000000e+00 : f32
    %536 = vector.broadcast %cst_406 : f32 to vector<8x128xf32>
    %537 = arith.maximumf %535, %536 : vector<8x128xf32>
    %c0_407 = arith.constant 0 : index
    %c0_408 = arith.constant 0 : index
    %538 = vector.load %arg23[%c0_407, %c0_408] : memref<128x256xf32, #tpu.memory_space<vmem>>, vector<128x256xf32>
    %cst_409 = arith.constant dense<0.000000e+00> : vector<8x256xf32>
    %539 = tpu.matmul %537, %538, %cst_409 {dimension_numbers = #tpu.dot_dimension_numbers<[1], [0], [0], [1], [0, 0, 1, 1], [], []>} : vector<8x128xf32>, vector<128x256xf32>, vector<8x256xf32> -> vector<8x256xf32>
    %c0_410 = arith.constant 0 : index
    %c0_411 = arith.constant 0 : index
    %540 = vector.load %arg24[%c0_410, %c0_411] : memref<1x256xf32, #tpu.memory_space<vmem>>, vector<1x256xf32>
    %541 = vector.broadcast %540 : vector<1x256xf32> to vector<8x256xf32>
    %542 = arith.addf %539, %541 : vector<8x256xf32>
    %c0_412 = arith.constant 0 : index
    %c0_413 = arith.constant 0 : index
    %c0_414 = arith.constant 0 : index
    %543 = vector.load %arg25[%c0_412, %c0_413, %c0_414] : memref<1x8x256xf32, #tpu.memory_space<vmem>>, vector<1x8x256xf32>
    %544 = vector.shape_cast %543 : vector<1x8x256xf32> to vector<8x256xf32>
    %545 = vector.shape_cast %542 : vector<8x256xf32> to vector<1x8x256xf32>
    tpu.vector_store %arg25[%c0_412, %c0_413, %c0_414], %545 {strides = array<i32>} : memref<1x8x256xf32, #tpu.memory_space<vmem>>, vector<1x8x256xf32>,
    return
  }
  func.func @transform_0(%arg0: i32) -> (i32, i32, i32) {
    %c0_i32 = arith.constant 0 : i32
    %c0_i32_0 = arith.constant 0 : i32
    %c0_i32_1 = arith.constant 0 : i32
    return %arg0, %c0_i32, %c0_i32_0 : i32, i32, i32
  }
  func.func @transform_1(%arg0: i32) -> (i32, i32) {
    %c0_i32 = arith.constant 0 : i32
    %c0_i32_0 = arith.constant 0 : i32
    %c0_i32_1 = arith.constant 0 : i32
    return %c0_i32, %c0_i32_0 : i32, i32
  }
  func.func @transform_2(%arg0: i32) -> (i32, i32, i32) {
    %c0_i32 = arith.constant 0 : i32
    %c0_i32_0 = arith.constant 0 : i32
    %c0_i32_1 = arith.constant 0 : i32
    %c0_i32_2 = arith.constant 0 : i32
    return %c0_i32, %c0_i32_0, %c0_i32_1 : i32, i32, i32
  }
  func.func @transform_3(%arg0: i32) -> (i32, i32, i32) {
    %c0_i32 = arith.constant 0 : i32
    %c0_i32_0 = arith.constant 0 : i32
    %c0_i32_1 = arith.constant 0 : i32
    %c0_i32_2 = arith.constant 0 : i32
    return %c0_i32, %c0_i32_0, %c0_i32_1 : i32, i32, i32
  }
  func.func @transform_4(%arg0: i32) -> (i32, i32, i32, i32) {
    %c0_i32 = arith.constant 0 : i32
    %c0_i32_0 = arith.constant 0 : i32
    %c0_i32_1 = arith.constant 0 : i32
    %c0_i32_2 = arith.constant 0 : i32
    %c0_i32_3 = arith.constant 0 : i32
    return %c0_i32, %c0_i32_0, %c0_i32_1, %c0_i32_2 : i32, i32, i32, i32
  }
  func.func @transform_5(%arg0: i32) -> (i32, i32, i32, i32) {
    %c0_i32 = arith.constant 0 : i32
    %c0_i32_0 = arith.constant 0 : i32
    %c0_i32_1 = arith.constant 0 : i32
    %c0_i32_2 = arith.constant 0 : i32
    %c0_i32_3 = arith.constant 0 : i32
    return %c0_i32, %c0_i32_0, %c0_i32_1, %c0_i32_2 : i32, i32, i32, i32
  }
  func.func @transform_6(%arg0: i32) -> (i32, i32, i32, i32) {
    %c0_i32 = arith.constant 0 : i32
    %c0_i32_0 = arith.constant 0 : i32
    %c0_i32_1 = arith.constant 0 : i32
    %c0_i32_2 = arith.constant 0 : i32
    %c0_i32_3 = arith.constant 0 : i32
    return %c0_i32, %c0_i32_0, %c0_i32_1, %c0_i32_2 : i32, i32, i32, i32
  }
  func.func @transform_7(%arg0: i32) -> (i32, i32, i32, i32) {
    %c0_i32 = arith.constant 0 : i32
    %c0_i32_0 = arith.constant 0 : i32
    %c0_i32_1 = arith.constant 0 : i32
    %c0_i32_2 = arith.constant 0 : i32
    %c0_i32_3 = arith.constant 0 : i32
    return %c0_i32, %c0_i32_0, %c0_i32_1, %c0_i32_2 : i32, i32, i32, i32
  }
  func.func @transform_8(%arg0: i32) -> (i32, i32, i32, i32) {
    %c0_i32 = arith.constant 0 : i32
    %c0_i32_0 = arith.constant 0 : i32
    %c0_i32_1 = arith.constant 0 : i32
    %c0_i32_2 = arith.constant 0 : i32
    %c0_i32_3 = arith.constant 0 : i32
    return %c0_i32, %c0_i32_0, %c0_i32_1, %c0_i32_2 : i32, i32, i32, i32
  }
  func.func @transform_9(%arg0: i32) -> (i32, i32, i32, i32) {
    %c0_i32 = arith.constant 0 : i32
    %c0_i32_0 = arith.constant 0 : i32
    %c0_i32_1 = arith.constant 0 : i32
    %c0_i32_2 = arith.constant 0 : i32
    %c0_i32_3 = arith.constant 0 : i32
    return %c0_i32, %c0_i32_0, %c0_i32_1, %c0_i32_2 : i32, i32, i32, i32
  }
  func.func @transform_10(%arg0: i32) -> (i32, i32, i32, i32) {
    %c0_i32 = arith.constant 0 : i32
    %c0_i32_0 = arith.constant 0 : i32
    %c0_i32_1 = arith.constant 0 : i32
    %c0_i32_2 = arith.constant 0 : i32
    %c0_i32_3 = arith.constant 0 : i32
    return %c0_i32, %c0_i32_0, %c0_i32_1, %c0_i32_2 : i32, i32, i32, i32
  }
  func.func @transform_11(%arg0: i32) -> (i32, i32, i32) {
    %c0_i32 = arith.constant 0 : i32
    %c0_i32_0 = arith.constant 0 : i32
    %c0_i32_1 = arith.constant 0 : i32
    %c0_i32_2 = arith.constant 0 : i32
    return %c0_i32, %c0_i32_0, %c0_i32_1 : i32, i32, i32
  }
  func.func @transform_12(%arg0: i32) -> (i32, i32, i32) {
    %c0_i32 = arith.constant 0 : i32
    %c0_i32_0 = arith.constant 0 : i32
    %c0_i32_1 = arith.constant 0 : i32
    %c0_i32_2 = arith.constant 0 : i32
    return %c0_i32, %c0_i32_0, %c0_i32_1 : i32, i32, i32
  }
  func.func @transform_13(%arg0: i32) -> (i32, i32, i32) {
    %c0_i32 = arith.constant 0 : i32
    %c0_i32_0 = arith.constant 0 : i32
    %c0_i32_1 = arith.constant 0 : i32
    %c0_i32_2 = arith.constant 0 : i32
    return %c0_i32, %c0_i32_0, %c0_i32_1 : i32, i32, i32
  }
  func.func @transform_14(%arg0: i32) -> (i32, i32, i32) {
    %c0_i32 = arith.constant 0 : i32
    %c0_i32_0 = arith.constant 0 : i32
    %c0_i32_1 = arith.constant 0 : i32
    %c0_i32_2 = arith.constant 0 : i32
    return %c0_i32, %c0_i32_0, %c0_i32_1 : i32, i32, i32
  }
  func.func @transform_15(%arg0: i32) -> (i32, i32, i32) {
    %c0_i32 = arith.constant 0 : i32
    %c0_i32_0 = arith.constant 0 : i32
    %c0_i32_1 = arith.constant 0 : i32
    %c0_i32_2 = arith.constant 0 : i32
    return %c0_i32, %c0_i32_0, %c0_i32_1 : i32, i32, i32
  }
  func.func @transform_16(%arg0: i32) -> (i32, i32, i32) {
    %c0_i32 = arith.constant 0 : i32
    %c0_i32_0 = arith.constant 0 : i32
    %c0_i32_1 = arith.constant 0 : i32
    %c0_i32_2 = arith.constant 0 : i32
    return %c0_i32, %c0_i32_0, %c0_i32_1 : i32, i32, i32
  }
  func.func @transform_17(%arg0: i32) -> (i32, i32, i32) {
    %c0_i32 = arith.constant 0 : i32
    %c0_i32_0 = arith.constant 0 : i32
    %c0_i32_1 = arith.constant 0 : i32
    %c0_i32_2 = arith.constant 0 : i32
    return %c0_i32, %c0_i32_0, %c0_i32_1 : i32, i32, i32
  }
  func.func @transform_18(%arg0: i32) -> (i32, i32) {
    %c0_i32 = arith.constant 0 : i32
    %c0_i32_0 = arith.constant 0 : i32
    %c0_i32_1 = arith.constant 0 : i32
    return %c0_i32, %c0_i32_0 : i32, i32
  }
  func.func @transform_19(%arg0: i32) -> (i32, i32) {
    %c0_i32 = arith.constant 0 : i32
    %c0_i32_0 = arith.constant 0 : i32
    %c0_i32_1 = arith.constant 0 : i32
    return %c0_i32, %c0_i32_0 : i32, i32
  }
  func.func @transform_20(%arg0: i32) -> (i32, i32) {
    %c0_i32 = arith.constant 0 : i32
    %c0_i32_0 = arith.constant 0 : i32
    %c0_i32_1 = arith.constant 0 : i32
    return %c0_i32, %c0_i32_0 : i32, i32
  }
  func.func @transform_21(%arg0: i32) -> (i32, i32) {
    %c0_i32 = arith.constant 0 : i32
    %c0_i32_0 = arith.constant 0 : i32
    %c0_i32_1 = arith.constant 0 : i32
    return %c0_i32, %c0_i32_0 : i32, i32
  }
  func.func @transform_22(%arg0: i32) -> (i32, i32) {
    %c0_i32 = arith.constant 0 : i32
    %c0_i32_0 = arith.constant 0 : i32
    %c0_i32_1 = arith.constant 0 : i32
    return %c0_i32, %c0_i32_0 : i32, i32
  }
  func.func @transform_23(%arg0: i32) -> (i32, i32) {
    %c0_i32 = arith.constant 0 : i32
    %c0_i32_0 = arith.constant 0 : i32
    %c0_i32_1 = arith.constant 0 : i32
    return %c0_i32, %c0_i32_0 : i32, i32
  }
  func.func @transform_24(%arg0: i32) -> (i32, i32, i32) {
    %c0_i32 = arith.constant 0 : i32
    %c0_i32_0 = arith.constant 0 : i32
    %c0_i32_1 = arith.constant 0 : i32
    return %arg0, %c0_i32, %c0_i32_0 : i32, i32, i32
  }
}

</mosaic_0001>

<bundles_post_ra>
// kernel: tpu_custom_call.1
= control target key start
LH: loop header
LB: loop body
LE: loop exit
PB: predicated region body
PF: predicated region fallthrough
CT: control target
= control target key end

     0   :  { %s8071_s0 = inlined_call_operand.vmem [shape: f32[2,8,32], index: 0, kind: input, shape index: {}]   ;;  %s8072_s1 = inlined_call_operand.vmem [shape: f32[8,32], index: 1, kind: input, shape index: {}]   ;;  %s8073_s2 = inlined_call_operand.vmem [shape: f32[2,1,32], index: 2, kind: input, shape index: {}]   ;;  %s8074_s3 = inlined_call_operand.vmem [shape: f32[2,1,32], index: 3, kind: input, shape index: {}]   ;;  %s8075_s4 = inlined_call_operand.vmem [shape: f32[2,4,32,8], index: 4, kind: input, shape index: {}]   ;;  %s8076_s5 = inlined_call_operand.vmem [shape: f32[2,4,32,8], index: 5, kind: input, shape index: {}]   ;;  %s8077_s6 = inlined_call_operand.vmem [shape: f32[2,4,32,8], index: 6, kind: input, shape index: {}]   ;;  %s8078_s7 = inlined_call_operand.vmem [shape: f32[2,4,1,8], index: 7, kind: input, shape index: {}]   ;;  %s8079_s8 = inlined_call_operand.vmem [shape: f32[2,4,1,8], index: 8, kind: input, shape index: {}]   ;;  %s8080_s9 = inlined_call_operand.vmem [shape: f32[2,4,1,8], index: 9, kind: input, shape index: {}]   ;;  %s8081_s10 = inlined_call_operand.vmem [shape: f32[2,4,8,32], index: 10, kind: input, shape index: {}]   ;;  %s8082_s11 = inlined_call_operand.vmem [shape: f32[2,1,32], index: 11, kind: input, shape index: {}]   ;;  %s8083_s12 = inlined_call_operand.vmem [shape: f32[2,1,32], index: 12, kind: input, shape index: {}]   ;;  %s8084_s13 = inlined_call_operand.vmem [shape: f32[2,1,32], index: 13, kind: input, shape index: {}]   ;;  %s8085_s14 = inlined_call_operand.vmem [shape: f32[2,32,128], index: 14, kind: input, shape index: {}]   ;;  %s8086_s15 = inlined_call_operand.vmem [shape: f32[2,1,128], index: 15, kind: input, shape index: {}]   ;;  %s8087_s16 = inlined_call_operand.vmem [shape: f32[2,128,32], index: 16, kind: input, shape index: {}]   ;;  %s8088_s17 = inlined_call_operand.vmem [shape: f32[2,1,32], index: 17, kind: input, shape index: {}]   ;;  %s8089_s18 = inlined_call_operand.vmem [shape: f32[1,32], index: 18, kind: input, shape index: {}]   ;;  %s8090_s19 = inlined_call_operand.vmem [shape: f32[1,32], index: 19, kind: input, shape index: {}]   ;;  %s8091_s20 = inlined_call_operand.vmem [shape: f32[32,128], index: 20, kind: input, shape index: {}]   ;;  %s8092_s21 = inlined_call_operand.vmem [shape: f32[1,128], index: 21, kind: input, shape index: {}]   ;;  %s8093_s22 = inlined_call_operand.vmem [shape: f32[128,256], index: 22, kind: input, shape index: {}]   ;;  %s8094_s23 = inlined_call_operand.vmem [shape: f32[1,256], index: 23, kind: input, shape index: {}]   ;;  %s8095_s24 = inlined_call_operand.hbm [shape: f32[2,8,256], index: 24, kind: output, shape index: {}]  }
   0x1   :  { %8116 = sst [smem:[#allocation12_spill]] %s8071_s0 }
   0x2   :  { %8117 = sst [smem:[#allocation13_spill]] %s8072_s1 }
   0x3   :  { %8118 = sst [smem:[#allocation14_spill]] %s8073_s2 }
   0x4   :  { %8119 = sst [smem:[#allocation15_spill]] %s8074_s3 }
   0x5   :  { %8120 = sst [smem:[#allocation16_spill]] %s8075_s4 }
   0x6   :  { %8121 = sst [smem:[#allocation17_spill]] %s8076_s5 }
   0x7   :  { %8122 = sst [smem:[#allocation18_spill]] %s8077_s6 }
   0x8   :  { %8123 = sst [smem:[#allocation19_spill]] %s8078_s7 }
   0x9   :  { %8124 = sst [smem:[#allocation20_spill]] %s8079_s8 }
   0xa   :  { %8125 = sst [smem:[#allocation21_spill]] %s8092_s21 }
   0xb   :  { %8126 = sst [smem:[#allocation22_spill]] %s8094_s23 }
   0xc   :  { %8127 = sst [smem:[#allocation23_spill]] %s8095_s24 }
   0xd   :  { %29 = vsyncpa [#allocation3], 0 }
   0xe   :  { %31 = vsyncpa [#allocation3 + $0x1], 0  ;;  %s6937_s5 = smov 0   ;;  %s6939_s26 = smov 0  }
   0xf   :  { %s6941_s27 = smov 0   ;;  %s6943_s28 = smov 0  }
  0x10 LB: > { %8128 = sst [smem:[#allocation5_spill]] %s6794_s5  ;;  %s6958_s6 = sadd.s32 4294967295, %s6806_s28   ;;  %s6806_s28 = sphi %s6943_s28, %s8156_s28   ;;  %s6802_s27 = sphi %s6941_s27, %s8158_s27   ;;  %s6798_s26 = sphi %s6939_s26, %s8160_s26   ;;  %s6794_s5 = sphi %s6937_s5, %s8159_s5  }
  0x11   : > { %8129 = sst [smem:[#allocation6_spill]] %s6802_s27  ;;  %s5459_s2 = sadd.s32 4294967294, %s6806_s28  }
  0x12   : > { %8130 = sst [smem:[#allocation7_spill]] %s6806_s28  ;;  %s6962_s29 = sadd.s32 1, %s6806_s28  }
  0x13   : > { %8131 = sst [smem:[#allocation8_spill]] %s6962_s29  ;;  %s553_s0 = sadd.s32 1, %s6802_s27 }
  0x14   : > { %s550_s7 = ssub.s32 %s6806_s28, %s6962_s29  ;;  %p563_p0 = scmp.ne.s32.totalorder %s6802_s27, %s6798_s26 }
  0x15   : > { %p551_p1 = scmp.eq.s32.totalorder %s550_s7, 0  ;;  %p564_p2 = scmp.eq.s32.totalorder %s6958_s6, 1 }
  0x16   : > { %p569_p3 = scmp.ne.s32.totalorder %s6798_s26, %s6794_s5  ;;  %p570_p4 = scmp.eq.s32.totalorder %s5459_s2, 1 }
  0x17   : > { %s6973_s30 = scalar_select %p551_p1, %s6802_s27, %s553_s0  }
  0x18   : > { %p6975_p5 = por %p564_p2, %p563_p0  ;;  %p6979_p6 = por %p570_p4, %p569_p3 }
  0x19   : > { %8132 = sst [smem:[#allocation9_spill]] %s6973_s30  ;;  %p5462_p7 = scmp.ge.s32.totalorder %s6806_s28, 1 }
  0x1a   : > { %s8133_s3 = scalar_select %p6975_p5, 1, 0 }
  0x1b   : > { %s8135_s25 = scalar_select %p6979_p6, 1, 0 }
  0x1c   : > { %8134 = sst [smem:[#allocation10_spill]] %s8133_s3  ;;  %p664_p8 = scmp.lt.s32.totalorder %s6806_s28, 3 }
  0x1d   : > { %8136 = sst [smem:[#allocation11_spill]] %s8135_s25 }
  0x1e   : > { %p665_p9 = pnand %p5462_p7, %p664_p8 }
  0x1f   : > { %p729_p10 = scmp.lt.s32.totalorder (!%p665_p9), %s6958_s6, 1  ;;  %s8137_s0 = sld [smem:[#allocation13_spill]] (!%p665_p9)  ;;  %vm743_vm0 = vcmask (!%p665_p9), 261120   ;;  %v6808_v14 = vmov (!%p665_p9), 0.0|0.0   ;;  %vm6809_vm1 = vmmov (!%p665_p9), 0   ;;  %v6810_v22 = vmov (!%p665_p9), 0.0  }
  0x20   : > { %668 = sbr.rel (%p665_p9) target bundleno = 10704 (0x29d0), region = 116  ;;  %s8138_s27 = sld [smem:[#allocation12_spill]] (!%p665_p9)  ;;  %6414 = vmatprep.subr.bf16.mxu1 (!%p665_p9), %v6808_v14  ;;  %6426 = vmatprep.subr.bf16.mxu0 (!%p665_p9), %v6808_v14  ;;  %vm1018_vm2 = vcmask (!%p665_p9), 64512   ;;  %v5471_v61 = vld [vmem:[%s8080_s9] ss:$0 sm:$0xff] (!%p665_p9) }
  0x21   : > { %s8139_s30 = sld [smem:[#allocation16_spill]] (!%p665_p9)  ;;  %5935 = vmatprep.mubr.msk.f32.mxu1 (!%p665_p9), %vm6809_vm1, %v6810_v22  ;;  %5957 = vmatprep.mubr.msk.f32.mxu0 (!%p665_p9), %vm6809_vm1, %v6810_v22  ;;  %s8143_s2 = sld [smem:[#allocation17_spill]] (!%p665_p9) }
  0x22   : > { %s8144_s1 = sld [smem:[#allocation15_spill]] (!%p665_p9)  ;;  %s8145_s21 = sld [smem:[#allocation20_spill]] (!%p665_p9) }
  0x23   : > { %s726_s28 = sand.u32 (!%p665_p9), 1, %s6798_s26   ;;  %s8150_s7 = sld [smem:[#allocation22_spill]] (!%p665_p9) }
  0x24   : > { %s5463_s23 = sshll.u32 (!%p665_p9), %s726_s28, 4  ;;  %s5709_s25 = sshll.u32 (!%p665_p9), %s6958_s6, 8 }
  0x25   : > { %v734_v0 = vld [vmem:[%s8137_s0] sm:$0xff] (!%p665_p9)  ;;  %s8140_s0 = sld [smem:[#allocation18_spill]] (!%p665_p9)  ;;  %s728_s5 = scalar_lea.vmem (!%p665_p9), [#allocation2], %s5463_s23 }
  0x26   : > { %s5386_s3 = scalar_lea.sflag (!%p665_p9), [#allocation3], %s726_s28  ;;  %s6811_s23 = smov (!%p665_p9), [#allocation2]  }
  0x27   : > { %s730_s8 = scalar_select %p729_p10, %s6958_s6, 1  ;;  %v772_v9 = vld [vmem:[%s8139_s30] sm:$0xff]  ;;  %v773_v10 = vld [vmem:[%s8139_s30 + $0x8] sm:$0xff]  ;;  %v774_v16 = vld [vmem:[%s8139_s30 + $0x10] sm:$0xff] }
  0x28   : > { %v6415_v12 = vpack.c.bf16 %v773_v10, %v772_v9  ;;  %v775_v17 = vld [vmem:[%s8139_s30 + $0x18] sm:$0xff]  ;;  %v856_v28 = vld [vmem:[%s8143_s2] sm:$0xff]  ;;  %v857_v30 = vld [vmem:[%s8143_s2 + $0x8] sm:$0xff] }
  0x29   : > { %s5464_s4 = sshll.u32 %s730_s8, 3  ;;  %v6418_v19 = vpack.c.bf16 %v775_v17, %v774_v16  ;;  %v5476_v31 = vld [vmem:[%s8139_s30 + $0x20] sm:$0xff]  ;;  %v5477_v32 = vld [vmem:[%s8139_s30 + $0x28] sm:$0xff]  ;;  %v6421_v35 = vpack.c.bf16 %v857_v30, %v856_v28  ;;  %v858_v37 = vld [vmem:[%s8143_s2 + $0x10] sm:$0xff]  ;;  %s8146_s8 = sld [smem:[#allocation19_spill]] }
  0x2a   : > { %s732_s29 = scalar_lea.vmem %s8138_s27, %s5464_s4  ;;  %6416 = vmatpush3.bf16.msra.mxu1 %v6415_v12  ;;  %s8141_s27 = sld [smem:[#allocation14_spill]]  ;;  %v5466_v33 = vld [vmem:[%s8144_s1] ss:$0 sm:$0xff]  ;;  %v6433_v36 = vpack.c.bf16 %v5477_v32, %v5476_v31  ;;  %v859_v39 = vld [vmem:[%s8143_s2 + $0x18] sm:$0xff]  ;;  %v5478_v40 = vld [vmem:[%s8139_s30 + $0x30] sm:$0xff] }
  0x2b   : > { %v733_v1 = vld [vmem:[%s732_s29] sm:$0xff]  ;;  %v938_v13 = vld [vmem:[%s8140_s0 + $0x8] sm:$0xff]  ;;  %6417 = vmatprep.subr.bf16.mxu1 %v6808_v14  ;;  %v939_v18 = vld [vmem:[%s8140_s0 + $0x10] sm:$0xff]  ;;  %v6424_v42 = vpack.c.bf16 %v859_v39, %v858_v37  ;;  %s6748_s4 = sshll.u32 %s6811_s23, 4  ;;  %s6749_s4 = int_to_ptr.vmem [resolvable:$false] %s6748_s4 }
  0x2c   : > { %v6993_v2 = vadd.f32 %v734_v0, %v733_v1  ;;  %v937_v11 = vld [vmem:[%s8140_s0] sm:$0xff]  ;;  %v940_v20 = vld [vmem:[%s8140_s0 + $0x18] sm:$0xff]  ;;  %v5491_v45 = vld [vmem:[%s8140_s0 + $0x28] sm:$0xff] }
  0x2d   : > { %v6427_v15 = vpack.c.bf16 %v938_v13, %v937_v11  ;;  %v6430_v21 = vpack.c.bf16 %v940_v20, %v939_v18  ;;  %v5479_v41 = vld [vmem:[%s8139_s30 + $0x38] sm:$0xff]  ;;  %v5490_v44 = vld [vmem:[%s8140_s0 + $0x20] sm:$0xff]  ;;  %v5492_v47 = vld [vmem:[%s8140_s0 + $0x30] sm:$0xff] }
  0x2e   : > { %v744_v3 = vsel %vm743_vm0, %v6993_v2, 0.0  ;;  %6419 = vmatpush3.bf16.msra.mxu1 %v6418_v19  ;;  %v6436_v43 = vpack.c.bf16 %v5479_v41, %v5478_v40  ;;  %v6445_v46 = vpack.c.bf16 %v5491_v45, %v5490_v44  ;;  %v5493_v48 = vld [vmem:[%s8140_s0 + $0x38] sm:$0xff]  ;;  %v5469_v54 = vld [vmem:[%s8145_s21] ss:$0 sm:$0xff]  ;;  %v5484_v20 = vld [vmem:[%s8143_s2 + $0x28] sm:$0xff] }
  0x2f   : > { %745 = vadd.xlane.f32.xlu0 %v744_v3  ;;  %6428 = vmatpush3.bf16.msra.mxu0 %v6427_v15  ;;  %v6448_v49 = vpack.c.bf16 %v5493_v48, %v5492_v47  ;;  %v5467_v57 = vld [vmem:[%s8146_s8] ss:$0 sm:$0xff]  ;;  %v736_v3 = vlaneseq  ;;  %v5488_v30 = vld [vmem:[%s8145_s21 + $0x1] ss:$0 sm:$0xff] }
  0x30   : > { %6429 = vmatprep.subr.bf16.mxu0 %v6808_v14  ;;  %6420 = vmatprep.subr.bf16.mxu1 %v6808_v14  ;;  %s8142_s29 = smov %s8141_s27  ;;  %v5465_v27 = vld [vmem:[%s8141_s27] ss:$0 sm:$0xff]  ;;  %v5481_v32 = vld [vmem:[%s8146_s8 + $0x1] ss:$0 sm:$0xff] }
  0x31   : > { %v5483_v19 = vld [vmem:[%s8143_s2 + $0x20] sm:$0xff] }
  0x33   : > { %6431 = vmatpush3.bf16.msra.mxu0 %v6430_v21 }
  0x34   : > { %6432 = vmatprep.subr.bf16.mxu0 %v6808_v14 }
  0xbc   : > { %v746_v4 = vpop.xlane.xlu0 %745 }
  0xbd   : > { %v748_v5 = vmul.f32 0.03125, %v746_v4  ;;  %v7118_v4 = vshrl.u32 %v736_v3, 7 }
  0xbf   : > { %v749_v6 = vsub.f32 %v6993_v2, %v748_v5  ;;  %v739_v5 = vand.u32 127, %v736_v3 }
  0xc1   : > { %v750_v7 = vmul.f32 %v749_v6, %v749_v6  ;;  %vm7121_vm3 = vcmp.le.s32.totalorder %v739_v5, %v7118_v4 }
  0xc3   : > { %v751_v8 = vsel %vm743_vm0, %v750_v7, 0.0 }
  0xc4   : > { %752 = vadd.xlane.f32.xlu0 %v751_v8 }
 0x151   : > { %v753_v23 = vpop.xlane.xlu0 %752 }
 0x152   : > { %v754_v24 = vmul.f32 0.03125, %v753_v23  ;;  %v6439_v23 = vpack.c.bf16 %v5484_v20, %v5483_v19 }
 0x154   : > { %v755_v25 = vadd.f32 1e-05, %v754_v24 }
 0x156   : > { %6698 = vrsqrt.f32 %v755_v25  ;;  %v5485_v25 = vld [vmem:[%s8143_s2 + $0x30] sm:$0xff] }
 0x160   : > { %v6699_v26 = vpop.eup %6698 }
 0x161   : > { %v757_v29 = vmul.f32 %v6699_v26, %v749_v6  ;;  %v5486_v26 = vld [vmem:[%s8143_s2 + $0x38] sm:$0xff] }
 0x163   : > { %v764_v34 = vmul.f32 %v5465_v27, %v757_v29  ;;  %v6442_v27 = vpack.c.bf16 %v5486_v26, %v5485_v25 }
 0x165   : > { %v7054_v38 = vadd.f32 %v5466_v33, %v764_v34 }
 0x167   : > { %5936 = vmatmul.mubr.msk.f32.vlgmr.msra.gmra.mrb[0].mxu1 %vm743_vm0, %v7054_v38  ;;  %5958 = vmatmul.mubr.msk.f32.vlgmr.msra.gmra.mrb[0].mxu0 %vm743_vm0, %v7054_v38 }
 0x168   : > { %6422 = vmatpush3.bf16.msra.mxu1 %v6421_v35  ;;  %6434 = vmatpush3.bf16.msra.mxu0 %v6433_v36  ;;  %v5495_v35 = vld [vmem:[%s8080_s9 + $0x1] ss:$0 sm:$0xff] }
 0x169   : > { %6423 = vmatprep.subr.bf16.mxu1 %v6808_v14  ;;  %6435 = vmatprep.subr.bf16.mxu0 %v6808_v14 }
 0x16a   : > { %5946 = vmatprep.mubr.msk.f32.mxu1 %vm6809_vm1, %v6810_v22  ;;  %5978 = vmatprep.mubr.msk.f32.mxu0 %vm6809_vm1, %v6810_v22 }
 0x16c   : > { %6425 = vmatpush3.bf16.msra.mxu1 %v6424_v42  ;;  %6437 = vmatpush3.bf16.msra.mxu0 %v6436_v43 }
 0x16d   : > { %6444 = vmatprep.subr.bf16.mxu0 %v6808_v14  ;;  %5960 = vmatprep.subr.mxu1 %v6810_v22 }
 0x16f   : > { %5947 = vmatmul.mubr.msk.f32.vlgmr.msra.gmra.mrb[2].mxu1 %vm743_vm0, %v7054_v38  ;;  %5979 = vmatmul.mubr.msk.f32.vlgmr.msra.gmra.mrb[2].mxu0 %vm743_vm0, %v7054_v38 }
 0x170   : > { %6446 = vmatpush3.bf16.msra.mxu0 %v6445_v46  ;;  %6000 = vmatprep.mubr.msk.f32.mxu0 %vm6809_vm1, %v6810_v22 }
 0x171   : > { %6447 = vmatprep.subr.bf16.mxu0 %v6808_v14  ;;  %5962 = vmatprep.mubr.msk.f32.mxu1 %vm6809_vm1, %v6810_v22 }
 0x174   : > { %6449 = vmatpush3.bf16.msra.mxu0 %v6448_v49  ;;  %v5500_v49 = vld [vmem:[%s8081_s10 + $0x8] sm:$0xff] }
 0x175   : > { %6013 = vmatprep.subr.mxu0 %v6810_v22 }
 0x177   : > { %6001 = vmatmul.mubr.msk.f32.vlgmr.msra.gmra.mrb[4].mxu0 %vm743_vm0, %v7054_v38 }
 0x178   : > { %6015 = vmatprep.mubr.msk.f32.mxu0 %vm6809_vm1, %v6810_v22  ;;  %6014 = vmatpush3.msra.mxu0 %v5500_v49 }
 0x179   : > { %6450 = vmatprep.subr.bf16.mxu0 %v6808_v14 }
 0x23a   : > { %v852_v50 = vpop.f32.mrb[0].mxu1  ;;  %v1014_v51 = vpop.f32.mrb[0].mxu0 }
 0x23b   : > { %v5937_v52 = vpop.f32.mrb[1].mxu1  ;;  %v5959_v53 = vpop.f32.mrb[1].mxu0  ;;  %v853_v62 = vadd.f32 %v5467_v57, %v852_v50  ;;  %v1015_v63 = vadd.f32 %v5471_v61, %v1014_v51  ;;  %v5512_v57 = vld [vmem:[%s8143_s2 + $0x50] sm:$0xff]  ;;  %v5504_v61 = vld [vmem:[%s8139_s30 + $0x48] sm:$0xff] }
 0x23c   : > { %v1181_v53 = vld [vmem:[%s8081_s10] sm:$0xff] }
 0x242   : > { %v933_v55 = vpop.f32.mrb[2].mxu1  ;;  %v1261_v56 = vpop.f32.mrb[2].mxu0 }
 0x243   : > { %v934_v58 = vadd.f32 %v5469_v54, %v933_v55  ;;  %v5948_v59 = vpop.f32.mrb[3].mxu1  ;;  %v5980_v60 = vpop.f32.mrb[3].mxu0  ;;  %v1262_v36 = vadd.f32 %v5481_v32, %v1261_v56  ;;  %v5510_v54 = vld [vmem:[%s8143_s2 + $0x40] sm:$0xff]  ;;  %v5511_v55 = vld [vmem:[%s8143_s2 + $0x48] sm:$0xff] }
 0x244   : > { %v6457_v56 = vpack.c.bf16 %v5511_v55, %v5510_v54  ;;  %v5503_v60 = vld [vmem:[%s8139_s30 + $0x40] sm:$0xff]  ;;  %v5544_v54 = vld [vmem:[%s8140_s0 + $0x68] sm:$0xff] }
 0x245   : > { %5961 = vmatpush3.xpose.msk.msra.mxu1 %vm1018_vm2, %v934_v58  ;;  %v5513_v58 = vld [vmem:[%s8143_s2 + $0x58] sm:$0xff] }
 0x246   : > { %5965 = vmatprep.subr.mxu1 %v6810_v22  ;;  %v6460_v59 = vpack.c.bf16 %v5513_v58, %v5512_v57  ;;  %v5546_v57 = vld [vmem:[%s8140_s0 + $0x78] sm:$0xff] }
 0x248   : > { %5963 = vmatmul.mubr.msk.f32.vlgmr.msra.gmra.mrb[4].mxu1 %vm1018_vm2, %v853_v62  ;;  %v6451_v62 = vpack.c.bf16 %v5504_v61, %v5503_v60  ;;  %v5537_v60 = vld [vmem:[%s8143_s2 + $0x68] sm:$0xff] }
 0x249   : > { %5966 = vmatpush3.msra.mxu1 %v1015_v63  ;;  %5967 = vmatprep.mubr.msk.f32.mxu1 %vm6809_vm1, %v6810_v22  ;;  %v5505_v63 = vld [vmem:[%s8139_s30 + $0x50] sm:$0xff] }
 0x24a   : > { %v1427_v0 = vpop.f32.mrb[4].mxu0  ;;  %6438 = vmatprep.subr.bf16.mxu1 %v6808_v14 }
 0x24b   : > { %v6002_v1 = vpop.f32.mrb[5].mxu0  ;;  %v1428_v37 = vadd.f32 %v5495_v35, %v1427_v0  ;;  %v5506_v0 = vld [vmem:[%s8139_s30 + $0x58] sm:$0xff] }
 0x24c   : > { %v6454_v5 = vpack.c.bf16 %v5506_v0, %v5505_v63  ;;  %v5539_v63 = vld [vmem:[%s8143_s2 + $0x78] sm:$0xff] }
 0x31b   : > { %v1091_v6 = vpop.f32.mrb[4].mxu1 }
 0x31c   : > { %v1095_v8 = vmul.f32 0.35355338, %v1091_v6  ;;  %v5964_v9 = vpop.f32.mrb[5].mxu1  ;;  %v5517_v6 = vld [vmem:[%s8140_s0 + $0x40] sm:$0xff] }
 0x31e   : > { %v1096_v10 = vsel %vm7121_vm3, %v1095_v8, -1e+30  ;;  %v5518_v8 = vld [vmem:[%s8140_s0 + $0x48] sm:$0xff] }
 0x31f   : > { %v1097_v11 = vsel %vm1018_vm2, %v1096_v10, -inf }
 0x320   : > { %1098 = vmax.xlane.f32.xlu1 %v1097_v11  ;;  %v6463_v11 = vpack.c.bf16 %v5518_v8, %v5517_v6 }
 0x3ad   : > { %v1099_v12 = vpop.xlane.xlu1 %1098 }
 0x3ae   : > { %v1100_v13 = vsub.f32 %v1096_v10, %v1099_v12  ;;  %v5519_v12 = vld [vmem:[%s8140_s0 + $0x50] sm:$0xff] }
 0x3b0   : > { %v1101_v15 = vmul.f32 1.442695, %v1100_v13  ;;  %v5520_v13 = vld [vmem:[%s8140_s0 + $0x58] sm:$0xff] }
 0x3b2   : > { %6700 = vpow2.f32 %v1101_v15  ;;  %v5515_v15 = vld [vmem:[%s8145_s21 + $0x2] ss:$0 sm:$0xff] }
 0x3bc   : > { %v6701_v16 = vpop.eup %6700 }
 0x3bd   : > { %v1103_v17 = vsel %vm1018_vm2, %v6701_v16, 0.0 }
 0x3be   : > { %1104 = vadd.xlane.f32.xlu1 %v1103_v17 }
 0x44b   : > { %v1105_v18 = vpop.xlane.xlu1 %1104 }
 0x44c   : > { %6702 = vrcp.f32 %v1105_v18 }
 0x456   : > { %v6703_v21 = vpop.eup %6702 }
 0x457   : > { %v1107_v24 = vmul.f32 %v6703_v21, %v6701_v16  ;;  %v6466_v16 = vpack.c.bf16 %v5520_v13, %v5519_v12  ;;  %v5541_v13 = vld [vmem:[%s8145_s21 + $0x3] ss:$0 sm:$0xff] }
 0x459   : > { %5968 = vmatmul.mubr.msk.f32.vlgmr.msra.gmra.mrb[6].mxu1 %vm1018_vm2, %v1107_v24  ;;  %v5508_v24 = vld [vmem:[%s8146_s8 + $0x2] ss:$0 sm:$0xff] }
 0x45a   : > { %6440 = vmatpush3.bf16.msra.mxu1 %v6439_v23  ;;  %5989 = vmatprep.mubr.msk.f32.mxu1 %vm6809_vm1, %v6810_v22 }
 0x45b   : > { %6441 = vmatprep.subr.bf16.mxu1 %v6808_v14 }
 0x45e   : > { %6443 = vmatpush3.bf16.msra.mxu1 %v6442_v27 }
 0x45f   : > { %6003 = vmatprep.subr.mxu1 %v6810_v22 }
 0x461   : > { %5990 = vmatmul.mubr.msk.f32.vlgmr.msra.gmra.mrb[8].mxu1 %vm743_vm0, %v7054_v38 }
 0x462   : > { %6005 = vmatprep.mubr.msk.f32.mxu1 %vm6809_vm1, %v6810_v22 }
 0x52c   : > { %v1177_v28 = vpop.f32.mrb[6].mxu1 }
 0x52d   : > { %v5969_v29 = vpop.f32.mrb[7].mxu1 }
 0x534   : > { %v1344_v31 = vpop.f32.mrb[8].mxu1 }
 0x535   : > { %v1345_v33 = vadd.f32 %v5488_v30, %v1344_v31  ;;  %v5991_v34 = vpop.f32.mrb[9].mxu1 }
 0x537   : > { %6004 = vmatpush3.xpose.msk.msra.mxu1 %vm1018_vm2, %v1345_v33 }
 0x538   : > { %6008 = vmatprep.subr.mxu1 %v6810_v22 }
 0x53a   : > { %6006 = vmatmul.mubr.msk.f32.vlgmr.msra.gmra.mrb[10].mxu1 %vm1018_vm2, %v1262_v36 }
 0x53b   : > { %6009 = vmatpush3.msra.mxu1 %v1428_v37  ;;  %6010 = vmatprep.mubr.msk.f32.mxu1 %vm6809_vm1, %v6810_v22 }
 0x53c   : > { %6018 = vmatprep.subr.mxu1 %v6810_v22 }
 0x60d   : > { %v1503_v39 = vpop.f32.mrb[10].mxu1 }
 0x60e   : > { %v1507_v40 = vmul.f32 0.35355338, %v1503_v39  ;;  %v6007_v41 = vpop.f32.mrb[11].mxu1 }
 0x610   : > { %v1508_v42 = vsel %vm7121_vm3, %v1507_v40, -1e+30 }
 0x611   : > { %v1509_v43 = vsel %vm1018_vm2, %v1508_v42, -inf }
 0x612   : > { %1510 = vmax.xlane.f32.xlu0 %v1509_v43  ;;  %v5527_v43 = vld [vmem:[%s8081_s10 + $0x10] sm:$0xff] }
 0x69f   : > { %v1511_v44 = vpop.xlane.xlu0 %1510 }
 0x6a0   : > { %v1512_v45 = vsub.f32 %v1508_v42, %v1511_v44 }
 0x6a2   : > { %v1513_v46 = vmul.f32 1.442695, %v1512_v45  ;;  %v5529_v45 = vld [vmem:[%s8139_s30 + $0x60] sm:$0xff] }
 0x6a4   : > { %6704 = vpow2.f32 %v1513_v46  ;;  %v5530_v46 = vld [vmem:[%s8139_s30 + $0x68] sm:$0xff] }
 0x6ae   : > { %v6705_v47 = vpop.eup %6704 }
 0x6af   : > { %v1515_v48 = vsel %vm1018_vm2, %v6705_v47, 0.0 }
 0x6b0   : > { %1516 = vadd.xlane.f32.xlu1 %v1515_v48  ;;  %v6469_v48 = vpack.c.bf16 %v5530_v46, %v5529_v45 }
 0x73d   : > { %v1517_v50 = vpop.xlane.xlu1 %1516 }
 0x73e   : > { %6706 = vrcp.f32 %v1517_v50  ;;  %v5531_v50 = vld [vmem:[%s8139_s30 + $0x70] sm:$0xff] }
 0x748   : > { %v6707_v51 = vpop.eup %6706 }
 0x749   : > { %v1519_v52 = vmul.f32 %v6707_v51, %v6705_v47  ;;  %v5532_v51 = vld [vmem:[%s8139_s30 + $0x78] sm:$0xff] }
 0x74b   : > { %6011 = vmatmul.mubr.msk.f32.vlgmr.msra.gmra.mrb[12].mxu1 %vm1018_vm2, %v1519_v52  ;;  %v6472_v52 = vpack.c.bf16 %v5532_v51, %v5531_v50  ;;  %v2753_v51 = vld [vmem:[%s8085_s14] sm:$0xff] }
 0x74c   : > { %6019 = vmatpush3.msra.mxu1 %v1181_v53  ;;  %6020 = vmatprep.mubr.msk.f32.mxu1 %vm6809_vm1, %v6810_v22  ;;  %v5543_v53 = vld [vmem:[%s8140_s0 + $0x60] sm:$0xff] }
 0x74d   : > { %6456 = vmatprep.subr.bf16.mxu1 %v6808_v14  ;;  %v6481_v55 = vpack.c.bf16 %v5544_v54, %v5543_v53  ;;  %v2755_v53 = vld [vmem:[%s8085_s14 + $0x10] sm:$0xff]  ;;  %v2756_v54 = vld [vmem:[%s8085_s14 + $0x18] sm:$0xff] }
 0x74f   : > { %6021 = vmatmul.mubr.msk.f32.vlgmr.msra.gmra.mrb[14].mxu1 %vm1018_vm2, %v1177_v28  ;;  %v5522_v28 = vld [vmem:[%s8080_s9 + $0x2] ss:$0 sm:$0xff] }
 0x750   : > { %6458 = vmatpush3.bf16.msra.mxu1 %v6457_v56  ;;  %6042 = vmatprep.mubr.msk.f32.mxu1 %vm6809_vm1, %v6810_v22  ;;  %v5545_v56 = vld [vmem:[%s8140_s0 + $0x70] sm:$0xff] }
 0x751   : > { %6459 = vmatprep.subr.bf16.mxu1 %v6808_v14  ;;  %v6484_v58 = vpack.c.bf16 %v5546_v57, %v5545_v56  ;;  %v2846_v56 = vld [vmem:[%s8087_s16] sm:$0xff]  ;;  %v2847_v57 = vld [vmem:[%s8087_s16 + $0x8] sm:$0xff] }
 0x754   : > { %6461 = vmatpush3.bf16.msra.mxu1 %v6460_v59  ;;  %v5536_v59 = vld [vmem:[%s8143_s2 + $0x60] sm:$0xff] }
 0x755   : > { %6056 = vmatprep.subr.mxu1 %v6810_v22  ;;  %v6475_v61 = vpack.c.bf16 %v5537_v60, %v5536_v59 }
 0x757   : > { %6043 = vmatmul.mubr.msk.f32.vlgmr.msra.gmra.mrb[16].mxu1 %vm743_vm0, %v7054_v38 }
 0x758   : > { %6058 = vmatprep.mubr.msk.f32.mxu1 %vm6809_vm1, %v6810_v22 }
 0x81e   : > { %v1589_v1 = vpop.f32.mrb[12].mxu1 }
 0x81f   : > { %v6012_v3 = vpop.f32.mrb[13].mxu1  ;;  %6016 = vmatmul.mubr.msk.f32.vlgmr.msra.gmra.mrb[6].mxu0 %vm1018_vm2, %v1589_v1 }
 0x820   : > { %6452 = vmatpush3.bf16.msra.mxu0 %v6451_v62  ;;  %6031 = vmatprep.mubr.msk.f32.mxu0 %vm6809_vm1, %v6810_v22  ;;  %v5538_v62 = vld [vmem:[%s8143_s2 + $0x70] sm:$0xff] }
 0x821   : > { %6453 = vmatprep.subr.bf16.mxu0 %v6808_v14  ;;  %v6478_v3 = vpack.c.bf16 %v5539_v63, %v5538_v62  ;;  %v5556_v63 = vld [vmem:[%s8083_s12] ss:$0 sm:$0xff] }
 0x822   : > { %v1737_v9 = vpop.f32.mrb[14].mxu1 }
 0x823   : > { %v6022_v10 = vpop.f32.mrb[15].mxu1 }
 0x824   : > { %6455 = vmatpush3.bf16.msra.mxu0 %v6454_v5 }
 0x825   : > { %6462 = vmatprep.subr.bf16.mxu0 %v6808_v14 }
 0x827   : > { %6032 = vmatmul.mubr.msk.f32.vlgmr.msra.gmra.mrb[8].mxu0 %vm743_vm0, %v7054_v38 }
 0x828   : > { %6464 = vmatpush3.bf16.msra.mxu0 %v6463_v11  ;;  %6053 = vmatprep.mubr.msk.f32.mxu0 %vm6809_vm1, %v6810_v22 }
 0x829   : > { %6465 = vmatprep.subr.bf16.mxu0 %v6808_v14 }
 0x82a   : > { %v1903_v17 = vpop.f32.mrb[16].mxu1 }
 0x82b   : > { %v1904_v18 = vadd.f32 %v5515_v15, %v1903_v17  ;;  %v6044_v19 = vpop.f32.mrb[17].mxu1 }
 0x82c   : > { %6467 = vmatpush3.bf16.msra.mxu0 %v6466_v16  ;;  %v5534_v16 = vld [vmem:[%s8146_s8 + $0x3] ss:$0 sm:$0xff] }
 0x82d   : > { %6057 = vmatpush3.xpose.msk.msra.mxu1 %vm1018_vm2, %v1904_v18  ;;  %6066 = vmatprep.subr.mxu0 %v6810_v22  ;;  %v5548_v18 = vld [vmem:[%s8080_s9 + $0x3] ss:$0 sm:$0xff] }
 0x82e   : > { %6061 = vmatprep.subr.mxu1 %v6810_v22 }
 0x82f   : > { %6054 = vmatmul.mubr.msk.f32.vlgmr.msra.gmra.mrb[10].mxu0 %vm743_vm0, %v7054_v38 }
 0x830   : > { %6068 = vmatprep.mubr.msk.f32.mxu0 %vm6809_vm1, %v6810_v22  ;;  %6067 = vmatpush3.msra.mxu0 %v5527_v43 }
 0x831   : > { %6474 = vmatprep.subr.bf16.mxu0 %v6808_v14 }
 0x8f2   : > { %v1664_v20 = vpop.f32.mrb[6].mxu0 }
 0x8f3   : > { %v7245_v21 = vadd.f32 %v1737_v9, %v1664_v20  ;;  %v6017_v23 = vpop.f32.mrb[7].mxu0 }
 0x8fa   : > { %v1820_v25 = vpop.f32.mrb[8].mxu0 }
 0x8fb   : > { %v1821_v26 = vadd.f32 %v5508_v24, %v1820_v25  ;;  %v6033_v27 = vpop.f32.mrb[9].mxu0 }
 0x8fd   : > { %6059 = vmatmul.mubr.msk.f32.vlgmr.msra.gmra.mrb[18].mxu1 %vm1018_vm2, %v1821_v26 }
 0x8fe   : > { %6063 = vmatprep.mubr.msk.f32.mxu1 %vm6809_vm1, %v6810_v22 }
 0x902   : > { %v1986_v29 = vpop.f32.mrb[10].mxu0 }
 0x903   : > { %v1987_v30 = vadd.f32 %v5522_v28, %v1986_v29  ;;  %v6055_v31 = vpop.f32.mrb[11].mxu0 }
 0x905   : > { %6062 = vmatpush3.msra.mxu1 %v1987_v30 }
 0x906   : > { %6468 = vmatprep.subr.bf16.mxu1 %v6808_v14 }
 0x9d0   : > { %v2062_v32 = vpop.f32.mrb[18].mxu1 }
 0x9d1   : > { %v2066_v33 = vmul.f32 0.35355338, %v2062_v32  ;;  %v6060_v34 = vpop.f32.mrb[19].mxu1  ;;  %v5553_v32 = vld [vmem:[%s8081_s10 + $0x18] sm:$0xff] }
 0x9d3   : > { %v2067_v35 = vsel %vm7121_vm3, %v2066_v33, -1e+30 }
 0x9d4   : > { %v2068_v36 = vsel %vm1018_vm2, %v2067_v35, -inf }
 0x9d5   : > { %2069 = vmax.xlane.f32.xlu0 %v2068_v36 }
 0xa62   : > { %v2070_v37 = vpop.xlane.xlu0 %2069 }
 0xa63   : > { %v2071_v39 = vsub.f32 %v2067_v35, %v2070_v37 }
 0xa65   : > { %v2072_v40 = vmul.f32 1.442695, %v2071_v39 }
 0xa67   : > { %6708 = vpow2.f32 %v2072_v40 }
 0xa71   : > { %v6709_v41 = vpop.eup %6708 }
 0xa72   : > { %v2074_v42 = vsel %vm1018_vm2, %v6709_v41, 0.0 }
 0xa73   : > { %2075 = vadd.xlane.f32.xlu1 %v2074_v42  ;;  %v5555_v42 = vld [vmem:[%s8082_s11] ss:$0 sm:$0xff] }
 0xb00   : > { %v2076_v44 = vpop.xlane.xlu1 %2075 }
 0xb01   : > { %6710 = vrcp.f32 %v2076_v44 }
 0xb0b   : > { %v6711_v47 = vpop.eup %6710 }
 0xb0c   : > { %v2078_v49 = vmul.f32 %v6711_v47, %v6709_v41 }
 0xb0e   : > { %6064 = vmatmul.mubr.msk.f32.vlgmr.msra.gmra.mrb[20].mxu1 %vm1018_vm2, %v2078_v49 }
 0xb0f   : > { %6470 = vmatpush3.bf16.msra.mxu1 %v6469_v48  ;;  %6079 = vmatprep.mubr.msk.f32.mxu1 %vm6809_vm1, %v6810_v22 }
 0xb10   : > { %6471 = vmatprep.subr.bf16.mxu1 %v6808_v14 }
 0xb13   : > { %6473 = vmatpush3.bf16.msra.mxu1 %v6472_v52 }
 0xb14   : > { %6480 = vmatprep.subr.bf16.mxu1 %v6808_v14 }
 0xb16   : > { %6080 = vmatmul.mubr.msk.f32.vlgmr.msra.gmra.mrb[22].mxu1 %vm743_vm0, %v7054_v38 }
 0xb17   : > { %6482 = vmatpush3.bf16.msra.mxu1 %v6481_v55  ;;  %6101 = vmatprep.mubr.msk.f32.mxu1 %vm6809_vm1, %v6810_v22  ;;  %v6490_v55 = vpack.c.bf16 %v2756_v54, %v2755_v53  ;;  %v5565_v54 = vld [vmem:[%s8139_s30 + $0x80] sm:$0xff] }
 0xb18   : > { %6483 = vmatprep.subr.bf16.mxu1 %v6808_v14 }
 0xb1b   : > { %6485 = vmatpush3.bf16.msra.mxu1 %v6484_v58  ;;  %v6493_v58 = vpack.c.bf16 %v2847_v57, %v2846_v56  ;;  %v5567_v56 = vld [vmem:[%s8139_s30 + $0x90] sm:$0xff]  ;;  %v5568_v57 = vld [vmem:[%s8139_s30 + $0x98] sm:$0xff] }
 0xb1c   : > { %6114 = vmatprep.subr.mxu1 %v6810_v22 }
 0xb1e   : > { %6102 = vmatmul.mubr.msk.f32.vlgmr.msra.gmra.mrb[24].mxu1 %vm743_vm0, %v7054_v38 }
 0xb1f   : > { %6116 = vmatprep.mubr.msk.f32.mxu1 %vm6809_vm1, %v6810_v22  ;;  %6115 = vmatpush3.msra.mxu1 %v5553_v32 }
 0xb20   : > { %6492 = vmatprep.subr.bf16.mxu1 %v6808_v14 }
 0xbe1   : > { %v2148_v0 = vpop.f32.mrb[20].mxu1 }
 0xbe2   : > { %v6065_v1 = vpop.f32.mrb[21].mxu1  ;;  %6069 = vmatmul.mubr.msk.f32.vlgmr.msra.gmra.mrb[12].mxu0 %vm1018_vm2, %v2148_v0 }
 0xbe3   : > { %6476 = vmatpush3.bf16.msra.mxu0 %v6475_v61  ;;  %6090 = vmatprep.mubr.msk.f32.mxu0 %vm6809_vm1, %v6810_v22  ;;  %v5557_v1 = vld [vmem:[%s8084_s13] ss:$0 sm:$0xff] }
 0xbe4   : > { %6477 = vmatprep.subr.bf16.mxu0 %v6808_v14 }
 0xbe7   : > { %6479 = vmatpush3.bf16.msra.mxu0 %v6478_v3 }
 0xbe8   : > { %6104 = vmatprep.subr.mxu0 %v6810_v22 }
 0xbe9   : > { %v2307_v5 = vpop.f32.mrb[22].mxu1 }
 0xbea   : > { %v6081_v6 = vpop.f32.mrb[23].mxu1  ;;  %6091 = vmatmul.mubr.msk.f32.vlgmr.msra.gmra.mrb[14].mxu0 %vm743_vm0, %v7054_v38  ;;  %v2308_v19 = vadd.f32 %v5534_v16, %v2307_v5 }
 0xbeb   : > { %6106 = vmatprep.mubr.msk.f32.mxu0 %vm6809_vm1, %v6810_v22  ;;  %v2848_v6 = vld [vmem:[%s8087_s16 + $0x10] sm:$0xff] }
 0xbf1   : > { %v2473_v8 = vpop.f32.mrb[24].mxu1 }
 0xbf2   : > { %v6103_v9 = vpop.f32.mrb[25].mxu1  ;;  %v2474_v20 = vadd.f32 %v5548_v18, %v2473_v8  ;;  %v2849_v8 = vld [vmem:[%s8087_s16 + $0x18] sm:$0xff] }
 0xbf3   : > { %v6496_v9 = vpack.c.bf16 %v2849_v8, %v2848_v6 }
 0xcb5   : > { %v2223_v10 = vpop.f32.mrb[12].mxu0 }
 0xcb6   : > { %v2227_v11 = vadd.f32 %v2223_v10, %v7245_v21  ;;  %v6070_v12 = vpop.f32.mrb[13].mxu0  ;;  %v2850_v10 = vld [vmem:[%s8087_s16 + $0x20] sm:$0xff] }
 0xcbd   : > { %v2390_v15 = vpop.f32.mrb[14].mxu0 }
 0xcbe   : > { %v2391_v17 = vadd.f32 %v5541_v13, %v2390_v15  ;;  %v6092_v38 = vpop.f32.mrb[15].mxu0  ;;  %v2852_v13 = vld [vmem:[%s8087_s16 + $0x30] sm:$0xff]  ;;  %v2853_v15 = vld [vmem:[%s8087_s16 + $0x38] sm:$0xff] }
 0xcbf   : > { %v6502_v16 = vpack.c.bf16 %v2853_v15, %v2852_v13  ;;  %v2855_v38 = vld [vmem:[%s8087_s16 + $0x48] sm:$0xff]  ;;  %v5579_v13 = vld [vmem:[%s8140_s0 + $0x80] sm:$0xff] }
 0xcc0   : > { %6105 = vmatpush3.xpose.msk.msra.mxu0 %vm1018_vm2, %v2391_v17  ;;  %v2854_v17 = vld [vmem:[%s8087_s16 + $0x40] sm:$0xff]  ;;  %v5580_v15 = vld [vmem:[%s8140_s0 + $0x88] sm:$0xff] }
 0xcc1   : > { %6109 = vmatprep.subr.mxu0 %v6810_v22  ;;  %v6505_v18 = vpack.c.bf16 %v2855_v38, %v2854_v17  ;;  %v5581_v17 = vld [vmem:[%s8140_s0 + $0x90] sm:$0xff]  ;;  %v5582_v38 = vld [vmem:[%s8140_s0 + $0x98] sm:$0xff] }
 0xcc3   : > { %6107 = vmatmul.mubr.msk.f32.vlgmr.msra.gmra.mrb[16].mxu0 %vm1018_vm2, %v2308_v19  ;;  %v2856_v19 = vld [vmem:[%s8087_s16 + $0x50] sm:$0xff] }
 0xcc4   : > { %6110 = vmatpush3.msra.mxu0 %v2474_v20  ;;  %6111 = vmatprep.mubr.msk.f32.mxu0 %vm6809_vm1, %v6810_v22  ;;  %v2857_v20 = vld [vmem:[%s8087_s16 + $0x58] sm:$0xff] }
 0xcc5   : > { %6486 = vmatprep.subr.bf16.mxu0 %v6808_v14 }
 0xd96   : > { %v2549_v21 = vpop.f32.mrb[16].mxu0 }
 0xd97   : > { %v2553_v23 = vmul.f32 0.35355338, %v2549_v21  ;;  %v6108_v24 = vpop.f32.mrb[17].mxu0  ;;  %v6508_v21 = vpack.c.bf16 %v2857_v20, %v2856_v19 }
 0xd98   : > { %v2859_v24 = vld [vmem:[%s8087_s16 + $0x68] sm:$0xff] }
 0xd99   : > { %v2554_v25 = vsel %vm7121_vm3, %v2553_v23, -1e+30  ;;  %v2858_v23 = vld [vmem:[%s8087_s16 + $0x60] sm:$0xff] }
 0xd9a   : > { %v2555_v26 = vsel %vm1018_vm2, %v2554_v25, -inf }
 0xd9b   : > { %2556 = vmax.xlane.f32.xlu0 %v2555_v26  ;;  %v2860_v26 = vld [vmem:[%s8087_s16 + $0x70] sm:$0xff] }
 0xe28   : > { %v2557_v27 = vpop.xlane.xlu0 %2556 }
 0xe29   : > { %v2558_v28 = vsub.f32 %v2554_v25, %v2557_v27  ;;  %v6511_v25 = vpack.c.bf16 %v2859_v24, %v2858_v23  ;;  %v2861_v27 = vld [vmem:[%s8087_s16 + $0x78] sm:$0xff]  ;;  %v5590_v24 = vld [vmem:[%s8139_s30 + $0xa0] sm:$0xff] }
 0xe2b   : > { %v2559_v29 = vmul.f32 1.442695, %v2558_v28  ;;  %v6514_v28 = vpack.c.bf16 %v2861_v27, %v2860_v26  ;;  %v5570_v26 = vld [vmem:[%s8146_s8 + $0x4] ss:$0 sm:$0xff] }
 0xe2d   : > { %6712 = vpow2.f32 %v2559_v29  ;;  %v5558_v29 = vld [vmem:[%s8086_s15] ss:$0 sm:$0xff] }
 0xe37   : > { %v6713_v30 = vpop.eup %6712 }
 0xe38   : > { %v2561_v31 = vsel %vm1018_vm2, %v6713_v30, 0.0 }
 0xe39   : > { %2562 = vadd.xlane.f32.xlu1 %v2561_v31 }
 0xec6   : > { %v2563_v33 = vpop.xlane.xlu1 %2562 }
 0xec7   : > { %6714 = vrcp.f32 %v2563_v33 }
 0xed1   : > { %v6715_v34 = vpop.eup %6714 }
 0xed2   : > { %v2565_v35 = vmul.f32 %v6715_v34, %v6713_v30 }
 0xed4   : > { %6112 = vmatmul.mubr.msk.f32.vlgmr.msra.gmra.mrb[18].mxu0 %vm1018_vm2, %v2565_v35 }
 0xed5   : > { %6127 = vmatprep.mubr.msk.f32.mxu0 %vm6809_vm1, %v6810_v22 }
 0xfa7   : > { %v2635_v36 = vpop.f32.mrb[18].mxu0 }
 0xfa8   : > { %v6113_v37 = vpop.f32.mrb[19].mxu0  ;;  %6117 = vmatmul.mubr.msk.f32.vlgmr.msra.gmra.mrb[26].mxu1 %vm1018_vm2, %v2635_v36 }
 0xfa9   : > { %6162 = vmatprep.mubr.msk.f32.mxu1 %vm6809_vm1, %v6810_v22  ;;  %6494 = vmatpush3.bf16.msra.mxu1 %v6493_v58  ;;  %v6520_v58 = vpack.c.bf16 %v5568_v57, %v5567_v56 }
 0xfaa   : > { %6495 = vmatprep.subr.bf16.mxu1 %v6808_v14 }
 0xfad   : > { %6497 = vmatpush3.bf16.msra.mxu1 %v6496_v9 }
 0xfae   : > { %6498 = vmatprep.subr.bf16.mxu1 %v6808_v14 }
0x107b   : > { %v2710_v39 = vpop.f32.mrb[26].mxu1 }
0x107c   : > { %v2714_v40 = vadd.f32 %v2710_v39, %v2227_v11  ;;  %v6118_v41 = vpop.f32.mrb[27].mxu1  ;;  %v2851_v11 = vld [vmem:[%s8087_s16 + $0x28] sm:$0xff] }
0x107d   : > { %v6499_v12 = vpack.c.bf16 %v2851_v11, %v2850_v10  ;;  %v5574_v10 = vld [vmem:[%s8143_s2 + $0x90] sm:$0xff]  ;;  %v5575_v11 = vld [vmem:[%s8143_s2 + $0x98] sm:$0xff] }
0x107e   : > { %v2715_v43 = vadd.f32 %v2714_v40, %v6993_v2  ;;  %v2754_v2 = vld [vmem:[%s8085_s14 + $0x8] sm:$0xff] }
0x107f   : > { %v6487_v52 = vpack.c.bf16 %v2754_v2, %v2753_v51  ;;  %6500 = vmatpush3.bf16.msra.mxu1 %v6499_v12  ;;  %v6526_v12 = vpack.c.bf16 %v5575_v11, %v5574_v10  ;;  %v5602_v10 = vld [vmem:[%s8145_s21 + $0x5] ss:$0 sm:$0xff] }
0x1080   : > { %v7359_v44 = vadd.f32 %v5555_v42, %v2715_v43  ;;  %6501 = vmatprep.subr.bf16.mxu1 %v6808_v14 }
0x1081   : > { %6488 = vmatpush3.bf16.msra.mxu0 %v6487_v52 }
0x1082   : > { %v2726_v45 = vsel %vm743_vm0, %v7359_v44, 0.0  ;;  %6489 = vmatprep.subr.bf16.mxu0 %v6808_v14 }
0x1083   : > { %2727 = vadd.xlane.f32.xlu0 %v2726_v45  ;;  %6503 = vmatpush3.bf16.msra.mxu1 %v6502_v16  ;;  %v5560_v45 = vld [vmem:[%s8088_s17] ss:$0 sm:$0xff]  ;;  %v6529_v16 = vpack.c.bf16 %v5580_v15, %v5579_v13 }
0x1084   : > { %6504 = vmatprep.subr.bf16.mxu1 %v6808_v14 }
0x1085   : > { %6491 = vmatpush3.bf16.msra.mxu0 %v6490_v55 }
0x1086   : > { %6516 = vmatprep.subr.bf16.mxu0 %v6808_v14 }
0x1087   : > { %6506 = vmatpush3.bf16.msra.mxu1 %v6505_v18  ;;  %v6532_v18 = vpack.c.bf16 %v5582_v38, %v5581_v17 }
0x1088   : > { %6507 = vmatprep.subr.bf16.mxu1 %v6808_v14 }
0x108b   : > { %6509 = vmatpush3.bf16.msra.mxu1 %v6508_v21  ;;  %v5577_v21 = vld [vmem:[%s8145_s21 + $0x4] ss:$0 sm:$0xff] }
0x108c   : > { %6510 = vmatprep.subr.bf16.mxu1 %v6808_v14 }
0x108f   : > { %6512 = vmatpush3.bf16.msra.mxu1 %v6511_v25  ;;  %v5591_v25 = vld [vmem:[%s8139_s30 + $0xa8] sm:$0xff] }
0x1090   : > { %6513 = vmatprep.subr.bf16.mxu1 %v6808_v14 }
0x1093   : > { %6515 = vmatpush3.bf16.msra.mxu1 %v6514_v28 }
0x1094   : > { %6203 = vmatprep.subr.mxu1 %v6810_v22 }
0x1110   : > { %v2728_v46 = vpop.xlane.xlu0 %2727 }
0x1111   : > { %v2729_v47 = vmul.f32 0.03125, %v2728_v46 }
0x1113   : > { %v2730_v48 = vsub.f32 %v7359_v44, %v2729_v47 }
0x1115   : > { %v2731_v49 = vmul.f32 %v2730_v48, %v2730_v48 }
0x1117   : > { %v2732_v50 = vsel %vm743_vm0, %v2731_v49, 0.0 }
0x1118   : > { %2733 = vadd.xlane.f32.xlu1 %v2732_v50 }
0x11a5   : > { %v2734_v59 = vpop.xlane.xlu1 %2733 }
0x11a6   : > { %v2735_v60 = vmul.f32 0.03125, %v2734_v59 }
0x11a8   : > { %v2736_v61 = vadd.f32 1e-05, %v2735_v60 }
0x11aa   : > { %6716 = vrsqrt.f32 %v2736_v61 }
0x11b4   : > { %v6717_v62 = vpop.eup %6716 }
0x11b5   : > { %v2738_v0 = vmul.f32 %v6717_v62, %v2730_v48 }
0x11b7   : > { %v2745_v3 = vmul.f32 %v5556_v63, %v2738_v0  ;;  %v5563_v63 = vld [vmem:[%s8142_s29 + $0x1] ss:$0 sm:$0xff]  ;;  %s8149_s29 = sld [smem:[#allocation21_spill]] }
0x11b9   : > { %v2752_v5 = vadd.f32 %v5557_v1, %v2745_v3  ;;  %v5572_v1 = vld [vmem:[%s8143_s2 + $0x80] sm:$0xff]  ;;  %v5573_v3 = vld [vmem:[%s8143_s2 + $0x88] sm:$0xff] }
0x11ba   : > { %v6523_v8 = vpack.c.bf16 %v5573_v3, %v5572_v1  ;;  %v5599_v1 = vld [vmem:[%s8143_s2 + $0xb0] sm:$0xff]  ;;  %v5600_v3 = vld [vmem:[%s8143_s2 + $0xb8] sm:$0xff] }
0x11bb   : > { %6128 = vmatmul.mubr.msk.f32.vlgmr.msra.gmra.mrb[20].mxu0 %vm743_vm0, %v2752_v5  ;;  %v5564_v5 = vld [vmem:[%s8144_s1 + $0x1] ss:$0 sm:$0xff]  ;;  %s8152_s1 = sld [smem:[#allocation23_spill]] }
0x11bc   : > { %6173 = vmatprep.mubr.msk.f32.mxu0 %vm6809_vm1, %v6810_v22 }
0x128e   : > { %v2833_v30 = vpop.f32.mrb[20].mxu0 }
0x128f   : > { %v2834_v31 = vadd.f32 %v5558_v29, %v2833_v30  ;;  %v6129_v32 = vpop.f32.mrb[21].mxu0  ;;  %v6535_v29 = vpack.c.bf16 %v5591_v25, %v5590_v24 }
0x1290   : > { %v5593_v32 = vld [vmem:[%s8139_s30 + $0xb8] sm:$0xff] }
0x1291   : > { %v2837_v33 = vmul.f32 %v2834_v31, %v2834_v31 }
0x1293   : > { %v2838_v34 = vmul.f32 %v2837_v33, %v2834_v31  ;;  %v5584_v33 = vld [vmem:[%s8080_s9 + $0x4] ss:$0 sm:$0xff] }
0x1295   : > { %v2839_v35 = vmul.f32 0.044715, %v2838_v34 }
0x1297   : > { %v2840_v36 = vadd.f32 %v2839_v35, %v2834_v31 }
0x1299   : > { %v2841_v37 = vmul.f32 0.7978846, %v2840_v36  ;;  %v5604_v36 = vld [vmem:[%s8140_s0 + $0xa0] sm:$0xff] }
0x129b   : > { %6718 = vtanh.f32 %v2841_v37  ;;  %v5605_v37 = vld [vmem:[%s8140_s0 + $0xa8] sm:$0xff] }
0x12a5   : > { %v6719_v39 = vpop.eup %6718 }
0x12a6   : > { %v2843_v40 = vadd.f32 1.0, %v6719_v39 }
0x12a8   : > { %v2844_v41 = vmul.f32 0.5, %v2843_v40 }
0x12aa   : > { %v2845_v42 = vmul.f32 %v2844_v41, %v2834_v31  ;;  %v5592_v31 = vld [vmem:[%s8139_s30 + $0xb0] sm:$0xff]  ;;  %v6547_v41 = vpack.c.bf16 %v5605_v37, %v5604_v36 }
0x12ab   : > { %v6538_v34 = vpack.c.bf16 %v5593_v32, %v5592_v31  ;;  %v5626_v37 = vld [vmem:[%s8143_s2 + $0xd0] sm:$0xff] }
0x12ac   : > { %6163 = vmatmul.mubr.f32.vlgmr.msra.gmra.mrb[28].mxu1 %v2845_v42  ;;  %v5606_v42 = vld [vmem:[%s8140_s0 + $0xb0] sm:$0xff] }
0x12ad   : > { %6205 = vmatprep.mubr.msk.f32.mxu1 %vm6809_vm1, %v6810_v22 }
0x137f   : > { %v2928_v43 = vpop.f32.mrb[28].mxu1 }
0x1380   : > { %v2932_v46 = vadd.f32 %v2928_v43, %v7359_v44  ;;  %v6164_v47 = vpop.f32.mrb[29].mxu1  ;;  %v5566_v44 = vld [vmem:[%s8139_s30 + $0x88] sm:$0xff]  ;;  %v5607_v43 = vld [vmem:[%s8140_s0 + $0xb8] sm:$0xff] }
0x1381   : > { %v6517_v55 = vpack.c.bf16 %v5566_v44, %v5565_v54 }
0x1382   : > { %v7453_v48 = vadd.f32 %v5560_v45, %v2932_v46  ;;  %v6550_v45 = vpack.c.bf16 %v5607_v43, %v5606_v42  ;;  %v5618_v42 = vld [vmem:[%s8139_s30 + $0xc8] sm:$0xff] }
0x1383   : > { %6518 = vmatpush3.bf16.msra.mxu0 %v6517_v55 }
0x1384   : > { %v2945_v49 = vsel %vm743_vm0, %v7453_v48, 0.0  ;;  %6519 = vmatprep.subr.bf16.mxu0 %v6808_v14 }
0x1385   : > { %2946 = vadd.xlane.f32.xlu0 %v2945_v49 }
0x1387   : > { %6521 = vmatpush3.bf16.msra.mxu0 %v6520_v58 }
0x1388   : > { %6522 = vmatprep.subr.bf16.mxu0 %v6808_v14 }
0x1412   : > { %v2947_v50 = vpop.xlane.xlu0 %2946 }
0x1413   : > { %v2948_v51 = vmul.f32 0.03125, %v2947_v50 }
0x1415   : > { %v2949_v2 = vsub.f32 %v7453_v48, %v2948_v51 }
0x1417   : > { %v2950_v52 = vmul.f32 %v2949_v2, %v2949_v2 }
0x1419   : > { %v2951_v53 = vsel %vm743_vm0, %v2950_v52, 0.0 }
0x141a   : > { %2952 = vadd.xlane.f32.xlu1 %v2951_v53 }
0x14a7   : > { %v2953_v59 = vpop.xlane.xlu1 %2952 }
0x14a8   : > { %v2954_v60 = vmul.f32 0.03125, %v2953_v59 }
0x14aa   : > { %v2955_v61 = vadd.f32 1e-05, %v2954_v60  ;;  %v5597_v60 = vld [vmem:[%s8143_s2 + $0xa0] sm:$0xff] }
0x14ac   : > { %6720 = vrsqrt.f32 %v2955_v61  ;;  %v5598_v61 = vld [vmem:[%s8143_s2 + $0xa8] sm:$0xff] }
0x14b6   : > { %v6721_v62 = vpop.eup %6720 }
0x14b7   : > { %v2957_v0 = vmul.f32 %v6721_v62, %v2949_v2 }
0x14b9   : > { %v2964_v6 = vmul.f32 %v5563_v63, %v2957_v0  ;;  %v6541_v63 = vpack.c.bf16 %v5598_v61, %v5597_v60 }
0x14bb   : > { %v7485_v9 = vadd.f32 %v5564_v5, %v2964_v6  ;;  %v6544_v5 = vpack.c.bf16 %v5600_v3, %v5599_v1 }
0x14bd   : > { %6174 = vmatmul.mubr.msk.f32.vlgmr.msra.gmra.mrb[22].mxu0 %vm743_vm0, %v7485_v9 }
0x14be   : > { %6524 = vmatpush3.bf16.msra.mxu0 %v6523_v8  ;;  %6184 = vmatprep.mubr.msk.f32.mxu0 %vm6809_vm1, %v6810_v22 }
0x14bf   : > { %6525 = vmatprep.subr.bf16.mxu0 %v6808_v14 }
0x14c2   : > { %6527 = vmatpush3.bf16.msra.mxu0 %v6526_v12  ;;  %v5595_v12 = vld [vmem:[%s8146_s8 + $0x5] ss:$0 sm:$0xff] }
0x14c3   : > { %6528 = vmatprep.subr.bf16.mxu0 %v6808_v14 }
0x14c5   : > { %6185 = vmatmul.mubr.msk.f32.vlgmr.msra.gmra.mrb[24].mxu0 %vm743_vm0, %v7485_v9 }
0x14c6   : > { %6530 = vmatpush3.bf16.msra.mxu0 %v6529_v16  ;;  %6195 = vmatprep.mubr.msk.f32.mxu0 %vm6809_vm1, %v6810_v22  ;;  %v5609_v16 = vld [vmem:[%s8080_s9 + $0x5] ss:$0 sm:$0xff] }
0x14c7   : > { %6531 = vmatprep.subr.bf16.mxu0 %v6808_v14 }
0x14ca   : > { %6533 = vmatpush3.bf16.msra.mxu0 %v6532_v18 }
0x14cb   : > { %6198 = vmatprep.subr.mxu0 %v6810_v22 }
0x14cd   : > { %6196 = vmatmul.mubr.msk.f32.vlgmr.msra.gmra.mrb[26].mxu0 %vm743_vm0, %v7485_v9 }
0x14ce   : > { %6200 = vmatprep.mubr.msk.f32.mxu0 %vm6809_vm1, %v6810_v22 }
0x1590   : > { %v3054_v19 = vpop.f32.mrb[22].mxu0 }
0x1591   : > { %v6175_v20 = vpop.f32.mrb[23].mxu0  ;;  %v3055_v30 = vadd.f32 %v5570_v26, %v3054_v19 }
0x1598   : > { %v3137_v23 = vpop.f32.mrb[24].mxu0 }
0x1599   : > { %v3138_v27 = vadd.f32 %v5577_v21, %v3137_v23  ;;  %v6186_v28 = vpop.f32.mrb[25].mxu0 }
0x159b   : > { %6199 = vmatpush3.xpose.msk.msra.mxu0 %vm1018_vm2, %v3138_v27 }
0x159c   : > { %6534 = vmatprep.subr.bf16.mxu0 %v6808_v14 }
0x159e   : > { %6201 = vmatmul.mubr.msk.f32.vlgmr.msra.gmra.mrb[28].mxu0 %vm1018_vm2, %v3055_v30 }
0x159f   : > { %6536 = vmatpush3.bf16.msra.mxu0 %v6535_v29  ;;  %6216 = vmatprep.mubr.msk.f32.mxu0 %vm6809_vm1, %v6810_v22  ;;  %v5614_v29 = vld [vmem:[%s8081_s10 + $0x28] sm:$0xff] }
0x15a0   : > { %v3220_v35 = vpop.f32.mrb[26].mxu0  ;;  %6537 = vmatprep.subr.bf16.mxu0 %v6808_v14 }
0x15a1   : > { %v3221_v39 = vadd.f32 %v5584_v33, %v3220_v35  ;;  %v6197_v40 = vpop.f32.mrb[27].mxu0  ;;  %v5589_v33 = vld [vmem:[%s8081_s10 + $0x20] sm:$0xff]  ;;  %v5625_v35 = vld [vmem:[%s8143_s2 + $0xc8] sm:$0xff] }
0x15a3   : > { %6204 = vmatpush3.msra.mxu1 %v3221_v39  ;;  %6539 = vmatpush3.bf16.msra.mxu0 %v6538_v34  ;;  %v5624_v34 = vld [vmem:[%s8143_s2 + $0xc0] sm:$0xff]  ;;  %v5627_v39 = vld [vmem:[%s8143_s2 + $0xd8] sm:$0xff] }
0x15a4   : > { %6546 = vmatprep.subr.bf16.mxu0 %v6808_v14  ;;  %6540 = vmatprep.subr.bf16.mxu1 %v6808_v14  ;;  %v6559_v36 = vpack.c.bf16 %v5625_v35, %v5624_v34  ;;  %v6562_v40 = vpack.c.bf16 %v5627_v39, %v5626_v37  ;;  %v5658_v34 = vld [vmem:[%s8140_s0 + $0xe8] sm:$0xff]  ;;  %v5660_v37 = vld [vmem:[%s8140_s0 + $0xf8] sm:$0xff] }
0x15a6   : > { %6217 = vmatmul.mubr.msk.f32.vlgmr.msra.gmra.mrb[30].mxu0 %vm743_vm0, %v7485_v9 }
0x15a7   : > { %6548 = vmatpush3.bf16.msra.mxu0 %v6547_v41  ;;  %6238 = vmatprep.mubr.msk.f32.mxu0 %vm6809_vm1, %v6810_v22  ;;  %v5617_v41 = vld [vmem:[%s8139_s30 + $0xc0] sm:$0xff] }
0x15a8   : > { %6549 = vmatprep.subr.bf16.mxu0 %v6808_v14  ;;  %v6553_v43 = vpack.c.bf16 %v5618_v42, %v5617_v41  ;;  %v5651_v41 = vld [vmem:[%s8143_s2 + $0xe8] sm:$0xff] }
0x15ab   : > { %6551 = vmatpush3.bf16.msra.mxu0 %v6550_v45  ;;  %v5619_v45 = vld [vmem:[%s8139_s30 + $0xd0] sm:$0xff] }
0x15ac   : > { %6251 = vmatprep.subr.mxu0 %v6810_v22 }
0x15ae   : > { %6239 = vmatmul.mubr.msk.f32.vlgmr.msra.gmra.mrb[32].mxu0 %vm743_vm0, %v7485_v9 }
0x15af   : > { %6253 = vmatprep.mubr.msk.f32.mxu0 %vm6809_vm1, %v6810_v22  ;;  %6252 = vmatpush3.msra.mxu0 %v5614_v29 }
0x15b0   : > { %6552 = vmatprep.subr.bf16.mxu0 %v6808_v14 }
0x1671   : > { %v3296_v46 = vpop.f32.mrb[28].mxu0 }
0x1672   : > { %v3300_v47 = vmul.f32 0.35355338, %v3296_v46  ;;  %v6202_v49 = vpop.f32.mrb[29].mxu0  ;;  %v5620_v46 = vld [vmem:[%s8139_s30 + $0xd8] sm:$0xff] }
0x1674   : > { %v3301_v50 = vsel %vm7121_vm3, %v3300_v47, -1e+30 }
0x1675   : > { %v3302_v51 = vsel %vm1018_vm2, %v3301_v50, -inf }
0x1676   : > { %3303 = vmax.xlane.f32.xlu0 %v3302_v51  ;;  %v5631_v51 = vld [vmem:[%s8140_s0 + $0xc0] sm:$0xff] }
0x1679   : > { %v3467_v2 = vpop.f32.mrb[30].mxu0 }
0x167a   : > { %v6218_v52 = vpop.f32.mrb[31].mxu0  ;;  %v3468_v17 = vadd.f32 %v5595_v12, %v3467_v2  ;;  %v5632_v2 = vld [vmem:[%s8140_s0 + $0xc8] sm:$0xff] }
0x1681   : > { %v3633_v53 = vpop.f32.mrb[32].mxu0 }
0x1682   : > { %v6240_v54 = vpop.f32.mrb[33].mxu0  ;;  %v3634_v38 = vadd.f32 %v5609_v16, %v3633_v53 }
0x1683   : > { %v6565_v54 = vpack.c.bf16 %v5632_v2, %v5631_v51 }
0x1703   : > { %v3304_v44 = vpop.xlane.xlu0 %3303 }
0x1704   : > { %v3305_v55 = vsub.f32 %v3301_v50, %v3304_v44  ;;  %v6556_v50 = vpack.c.bf16 %v5620_v46, %v5619_v45  ;;  %v5633_v44 = vld [vmem:[%s8140_s0 + $0xd0] sm:$0xff]  ;;  %v5653_v45 = vld [vmem:[%s8143_s2 + $0xf8] sm:$0xff] }
0x1706   : > { %v3306_v56 = vmul.f32 1.442695, %v3305_v55  ;;  %v5634_v55 = vld [vmem:[%s8140_s0 + $0xd8] sm:$0xff] }
0x1708   : > { %6722 = vpow2.f32 %v3306_v56  ;;  %v5629_v56 = vld [vmem:[%s8145_s21 + $0x6] ss:$0 sm:$0xff] }
0x1712   : > { %v6723_v57 = vpop.eup %6722 }
0x1713   : > { %v3308_v58 = vsel %vm1018_vm2, %v6723_v57, 0.0 }
0x1714   : > { %3309 = vadd.xlane.f32.xlu1 %v3308_v58 }
0x17a1   : > { %v3310_v59 = vpop.xlane.xlu1 %3309 }
0x17a2   : > { %6724 = vrcp.f32 %v3310_v59 }
0x17ac   : > { %v6725_v62 = vpop.eup %6724 }
0x17ad   : > { %v3312_v0 = vmul.f32 %v6725_v62, %v6723_v57  ;;  %v6568_v57 = vpack.c.bf16 %v5634_v55, %v5633_v44  ;;  %v5655_v55 = vld [vmem:[%s8145_s21 + $0x7] ss:$0 sm:$0xff] }
0x17af   : > { %6206 = vmatmul.mubr.msk.f32.vlgmr.msra.gmra.mrb[30].mxu1 %vm1018_vm2, %v3312_v0  ;;  %v5622_v0 = vld [vmem:[%s8146_s8 + $0x6] ss:$0 sm:$0xff] }
0x17b0   : > { %6542 = vmatpush3.bf16.msra.mxu1 %v6541_v63  ;;  %6227 = vmatprep.mubr.msk.f32.mxu1 %vm6809_vm1, %v6810_v22 }
0x17b1   : > { %6543 = vmatprep.subr.bf16.mxu1 %v6808_v14 }
0x17b4   : > { %6545 = vmatpush3.bf16.msra.mxu1 %v6544_v5 }
0x17b5   : > { %6241 = vmatprep.subr.mxu1 %v6810_v22 }
0x17b7   : > { %6228 = vmatmul.mubr.msk.f32.vlgmr.msra.gmra.mrb[32].mxu1 %vm743_vm0, %v7485_v9 }
0x17b8   : > { %6243 = vmatprep.mubr.msk.f32.mxu1 %vm6809_vm1, %v6810_v22 }
0x1882   : > { %v3382_v6 = vpop.f32.mrb[30].mxu1 }
0x1883   : > { %v6207_v8 = vpop.f32.mrb[31].mxu1 }
0x188a   : > { %v3550_v11 = vpop.f32.mrb[32].mxu1 }
0x188b   : > { %v3551_v13 = vadd.f32 %v5602_v10, %v3550_v11  ;;  %v6229_v15 = vpop.f32.mrb[33].mxu1 }
0x188d   : > { %6242 = vmatpush3.xpose.msk.msra.mxu1 %vm1018_vm2, %v3551_v13 }
0x188e   : > { %6246 = vmatprep.subr.mxu1 %v6810_v22 }
0x1890   : > { %6244 = vmatmul.mubr.msk.f32.vlgmr.msra.gmra.mrb[34].mxu1 %vm1018_vm2, %v3468_v17 }
0x1891   : > { %6247 = vmatpush3.msra.mxu1 %v3634_v38  ;;  %6248 = vmatprep.mubr.msk.f32.mxu1 %vm6809_vm1, %v6810_v22 }
0x1892   : > { %6256 = vmatprep.subr.mxu1 %v6810_v22 }
0x1963   : > { %v3709_v18 = vpop.f32.mrb[34].mxu1 }
0x1964   : > { %v3713_v19 = vmul.f32 0.35355338, %v3709_v18  ;;  %v6245_v20 = vpop.f32.mrb[35].mxu1 }
0x1966   : > { %v3714_v21 = vsel %vm7121_vm3, %v3713_v19, -1e+30 }
0x1967   : > { %v3715_v23 = vsel %vm1018_vm2, %v3714_v21, -inf }
0x1968   : > { %3716 = vmax.xlane.f32.xlu0 %v3715_v23  ;;  %v5641_v23 = vld [vmem:[%s8081_s10 + $0x30] sm:$0xff] }
0x19f5   : > { %v3717_v24 = vpop.xlane.xlu0 %3716 }
0x19f6   : > { %v3718_v25 = vsub.f32 %v3714_v21, %v3717_v24 }
0x19f8   : > { %v3719_v26 = vmul.f32 1.442695, %v3718_v25  ;;  %v5643_v25 = vld [vmem:[%s8139_s30 + $0xe0] sm:$0xff] }
0x19fa   : > { %6726 = vpow2.f32 %v3719_v26  ;;  %v5644_v26 = vld [vmem:[%s8139_s30 + $0xe8] sm:$0xff] }
0x1a04   : > { %v6727_v27 = vpop.eup %6726 }
0x1a05   : > { %v3721_v28 = vsel %vm1018_vm2, %v6727_v27, 0.0 }
0x1a06   : > { %3722 = vadd.xlane.f32.xlu1 %v3721_v28  ;;  %v6571_v28 = vpack.c.bf16 %v5644_v26, %v5643_v25 }
0x1a93   : > { %v3723_v30 = vpop.xlane.xlu1 %3722 }
0x1a94   : > { %6728 = vrcp.f32 %v3723_v30  ;;  %v5645_v30 = vld [vmem:[%s8139_s30 + $0xf0] sm:$0xff] }
0x1a9e   : > { %v6729_v31 = vpop.eup %6728 }
0x1a9f   : > { %v3725_v32 = vmul.f32 %v6729_v31, %v6727_v27  ;;  %v5646_v31 = vld [vmem:[%s8139_s30 + $0xf8] sm:$0xff] }
0x1aa1   : > { %6249 = vmatmul.mubr.msk.f32.vlgmr.msra.gmra.mrb[36].mxu1 %vm1018_vm2, %v3725_v32  ;;  %v6574_v32 = vpack.c.bf16 %v5646_v31, %v5645_v30  ;;  %v5675_v30 = vld [vmem:[%s8085_s14 + $0x20] sm:$0xff] }
0x1aa2   : > { %6257 = vmatpush3.msra.mxu1 %v5589_v33  ;;  %6258 = vmatprep.mubr.msk.f32.mxu1 %vm6809_vm1, %v6810_v22  ;;  %v5657_v33 = vld [vmem:[%s8140_s0 + $0xe0] sm:$0xff] }
0x1aa3   : > { %6558 = vmatprep.subr.bf16.mxu1 %v6808_v14  ;;  %v6583_v35 = vpack.c.bf16 %v5658_v34, %v5657_v33  ;;  %v5678_v33 = vld [vmem:[%s8085_s14 + $0x38] sm:$0xff] }
0x1aa5   : > { %6259 = vmatmul.mubr.msk.f32.vlgmr.msra.gmra.mrb[38].mxu1 %vm1018_vm2, %v3382_v6  ;;  %v5636_v6 = vld [vmem:[%s8080_s9 + $0x6] ss:$0 sm:$0xff] }
0x1aa6   : > { %6560 = vmatpush3.bf16.msra.mxu1 %v6559_v36  ;;  %6280 = vmatprep.mubr.msk.f32.mxu1 %vm6809_vm1, %v6810_v22  ;;  %v5659_v36 = vld [vmem:[%s8140_s0 + $0xf0] sm:$0xff]  ;;  %s5400_s0 = sshll.u32 %s728_s5, 4  ;;  %s8031_s0 = int_to_ptr.vmem [resolvable:$true] %s5400_s0 }
0x1aa7   : > { %6561 = vmatprep.subr.bf16.mxu1 %v6808_v14  ;;  %v6586_v39 = vpack.c.bf16 %v5660_v37, %v5659_v36  ;;  %v5683_v36 = vld [vmem:[%s8087_s16 + $0x88] sm:$0xff]  ;;  %s6744_s6 = scalar_lea.vmem %s8031_s0, 256  ;;  %p6751_p0 = scmp.lt.s32.totalorder %s8031_s0, %s6749_s4 }
0x1aa8   : > { %p6745_p11 = scmp.ne.s32.totalorder %s8031_s0, %s6744_s6 }
0x1aaa   : > { %6563 = vmatpush3.bf16.msra.mxu1 %v6562_v40  ;;  %v5650_v40 = vld [vmem:[%s8143_s2 + $0xe0] sm:$0xff]  ;;  %p6746_p12 = pnand %p6745_p11, %p6975_p5 }
0x1aab   : > { %6294 = vmatprep.subr.mxu1 %v6810_v22  ;;  %v6577_v42 = vpack.c.bf16 %v5651_v41, %v5650_v40 }
0x1aac   : > { %p6747_p13 = pneg %p6746_p12 }
0x1aad   : > { %6281 = vmatmul.mubr.msk.f32.vlgmr.msra.gmra.mrb[40].mxu1 %vm743_vm0, %v7485_v9 }
0x1aae   : > { %6296 = vmatprep.mubr.msk.f32.mxu1 %vm6809_vm1, %v6810_v22 }
0x1b74   : > { %v3795_v47 = vpop.f32.mrb[36].mxu1 }
0x1b75   : > { %v6250_v49 = vpop.f32.mrb[37].mxu1  ;;  %6254 = vmatmul.mubr.msk.f32.vlgmr.msra.gmra.mrb[34].mxu0 %vm1018_vm2, %v3795_v47 }
0x1b76   : > { %6554 = vmatpush3.bf16.msra.mxu0 %v6553_v43  ;;  %6269 = vmatprep.mubr.msk.f32.mxu0 %vm6809_vm1, %v6810_v22  ;;  %v5652_v43 = vld [vmem:[%s8143_s2 + $0xf0] sm:$0xff]  ;;  %s8029_s2 = scalar_lea.hbm %s8152_s1, %s5709_s25 }
0x1b77   : > { %6555 = vmatprep.subr.bf16.mxu0 %v6808_v14  ;;  %v6580_v49 = vpack.c.bf16 %v5653_v45, %v5652_v43  ;;  %v5673_v43 = vld [vmem:[%s8083_s12 + $0x1] ss:$0 sm:$0xff] }
0x1b78   : > { %v3943_v52 = vpop.f32.mrb[38].mxu1 }
0x1b79   : > { %v6260_v53 = vpop.f32.mrb[39].mxu1 }
0x1b7a   : > { %6557 = vmatpush3.bf16.msra.mxu0 %v6556_v50 }
0x1b7b   : > { %6564 = vmatprep.subr.bf16.mxu0 %v6808_v14 }
0x1b7d   : > { %6270 = vmatmul.mubr.msk.f32.vlgmr.msra.gmra.mrb[36].mxu0 %vm743_vm0, %v7485_v9 }
0x1b7e   : > { %6566 = vmatpush3.bf16.msra.mxu0 %v6565_v54  ;;  %6291 = vmatprep.mubr.msk.f32.mxu0 %vm6809_vm1, %v6810_v22 }
0x1b7f   : > { %6567 = vmatprep.subr.bf16.mxu0 %v6808_v14 }
0x1b80   : > { %v4109_v58 = vpop.f32.mrb[40].mxu1 }
0x1b81   : > { %v4110_v59 = vadd.f32 %v5629_v56, %v4109_v58  ;;  %v6282_v60 = vpop.f32.mrb[41].mxu1 }
0x1b82   : > { %6569 = vmatpush3.bf16.msra.mxu0 %v6568_v57  ;;  %v5648_v57 = vld [vmem:[%s8146_s8 + $0x7] ss:$0 sm:$0xff] }
0x1b83   : > { %6295 = vmatpush3.xpose.msk.msra.mxu1 %vm1018_vm2, %v4110_v59  ;;  %6304 = vmatprep.subr.mxu0 %v6810_v22  ;;  %v5662_v59 = vld [vmem:[%s8080_s9 + $0x7] ss:$0 sm:$0xff] }
0x1b84   : > { %6299 = vmatprep.subr.mxu1 %v6810_v22 }
0x1b85   : > { %6292 = vmatmul.mubr.msk.f32.vlgmr.msra.gmra.mrb[38].mxu0 %vm743_vm0, %v7485_v9 }
0x1b86   : > { %6306 = vmatprep.mubr.msk.f32.mxu0 %vm6809_vm1, %v6810_v22  ;;  %6305 = vmatpush3.msra.mxu0 %v5641_v23 }
0x1b87   : > { %6576 = vmatprep.subr.bf16.mxu0 %v6808_v14 }
0x1c48   : > { %v3870_v61 = vpop.f32.mrb[34].mxu0 }
0x1c49   : > { %v7692_v62 = vadd.f32 %v3943_v52, %v3870_v61  ;;  %v6255_v63 = vpop.f32.mrb[35].mxu0 }
0x1c50   : > { %v4026_v1 = vpop.f32.mrb[36].mxu0 }
0x1c51   : > { %v4027_v3 = vadd.f32 %v5622_v0, %v4026_v1  ;;  %v6271_v5 = vpop.f32.mrb[37].mxu0 }
0x1c53   : > { %6297 = vmatmul.mubr.msk.f32.vlgmr.msra.gmra.mrb[42].mxu1 %vm1018_vm2, %v4027_v3 }
0x1c54   : > { %6301 = vmatprep.mubr.msk.f32.mxu1 %vm6809_vm1, %v6810_v22 }
0x1c58   : > { %v4192_v8 = vpop.f32.mrb[38].mxu0 }
0x1c59   : > { %v4193_v10 = vadd.f32 %v5636_v6, %v4192_v8  ;;  %v6293_v11 = vpop.f32.mrb[39].mxu0 }
0x1c5b   : > { %6300 = vmatpush3.msra.mxu1 %v4193_v10 }
0x1c5c   : > { %6570 = vmatprep.subr.bf16.mxu1 %v6808_v14 }
0x1d26   : > { %v4268_v12 = vpop.f32.mrb[42].mxu1 }
0x1d27   : > { %v4272_v13 = vmul.f32 0.35355338, %v4268_v12  ;;  %v6298_v15 = vpop.f32.mrb[43].mxu1  ;;  %v5667_v12 = vld [vmem:[%s8081_s10 + $0x38] sm:$0xff] }
0x1d29   : > { %v4273_v16 = vsel %vm7121_vm3, %v4272_v13, -1e+30 }
0x1d2a   : > { %v4274_v17 = vsel %vm1018_vm2, %v4273_v16, -inf }
0x1d2b   : > { %4275 = vmax.xlane.f32.xlu0 %v4274_v17 }
0x1db8   : > { %v4276_v38 = vpop.xlane.xlu0 %4275 }
0x1db9   : > { %v4277_v18 = vsub.f32 %v4273_v16, %v4276_v38 }
0x1dbb   : > { %v4278_v19 = vmul.f32 1.442695, %v4277_v18 }
0x1dbd   : > { %6730 = vpow2.f32 %v4278_v19 }
0x1dc7   : > { %v6731_v20 = vpop.eup %6730 }
0x1dc8   : > { %v4280_v21 = vsel %vm1018_vm2, %v6731_v20, 0.0 }
0x1dc9   : > { %4281 = vadd.xlane.f32.xlu1 %v4280_v21 }
0x1e56   : > { %v4282_v24 = vpop.xlane.xlu1 %4281 }
0x1e57   : > { %6732 = vrcp.f32 %v4282_v24 }
0x1e61   : > { %v6733_v27 = vpop.eup %6732 }
0x1e62   : > { %v4284_v29 = vmul.f32 %v6733_v27, %v6731_v20  ;;  %v5670_v20 = vld [vmem:[%s8082_s11 + $0x1] ss:$0 sm:$0xff] }
0x1e64   : > { %6302 = vmatmul.mubr.msk.f32.vlgmr.msra.gmra.mrb[44].mxu1 %vm1018_vm2, %v4284_v29 }
0x1e65   : > { %6572 = vmatpush3.bf16.msra.mxu1 %v6571_v28  ;;  %6317 = vmatprep.mubr.msk.f32.mxu1 %vm6809_vm1, %v6810_v22 }
0x1e66   : > { %6573 = vmatprep.subr.bf16.mxu1 %v6808_v14 }
0x1e69   : > { %6575 = vmatpush3.bf16.msra.mxu1 %v6574_v32  ;;  %v5677_v32 = vld [vmem:[%s8085_s14 + $0x30] sm:$0xff] }
0x1e6a   : > { %6582 = vmatprep.subr.bf16.mxu1 %v6808_v14  ;;  %v6592_v34 = vpack.c.bf16 %v5678_v33, %v5677_v32  ;;  %v5183_v32 = vld [vmem:[%s8091_s20] sm:$0xff] }
0x1e6c   : > { %6318 = vmatmul.mubr.msk.f32.vlgmr.msra.gmra.mrb[46].mxu1 %vm743_vm0, %v7485_v9 }
0x1e6d   : > { %6584 = vmatpush3.bf16.msra.mxu1 %v6583_v35  ;;  %6339 = vmatprep.mubr.msk.f32.mxu1 %vm6809_vm1, %v6810_v22  ;;  %v5682_v35 = vld [vmem:[%s8087_s16 + $0x80] sm:$0xff] }
0x1e6e   : > { %6585 = vmatprep.subr.bf16.mxu1 %v6808_v14  ;;  %v6595_v37 = vpack.c.bf16 %v5683_v36, %v5682_v35  ;;  %v5186_v35 = vld [vmem:[%s8091_s20 + $0x18] sm:$0xff] }
0x1e71   : > { %6587 = vmatpush3.bf16.msra.mxu1 %v6586_v39 }
0x1e72   : > { %6352 = vmatprep.subr.mxu1 %v6810_v22 }
0x1e74   : > { %6340 = vmatmul.mubr.msk.f32.vlgmr.msra.gmra.mrb[48].mxu1 %vm743_vm0, %v7485_v9 }
0x1e75   : > { %6354 = vmatprep.mubr.msk.f32.mxu1 %vm6809_vm1, %v6810_v22  ;;  %6353 = vmatpush3.msra.mxu1 %v5667_v12 }
0x1e76   : > { %6594 = vmatprep.subr.bf16.mxu1 %v6808_v14 }
0x1f37   : > { %v4354_v46 = vpop.f32.mrb[44].mxu1 }
0x1f38   : > { %v6303_v47 = vpop.f32.mrb[45].mxu1  ;;  %6307 = vmatmul.mubr.msk.f32.vlgmr.msra.gmra.mrb[40].mxu0 %vm1018_vm2, %v4354_v46  ;;  %v5674_v46 = vld [vmem:[%s8084_s13 + $0x1] ss:$0 sm:$0xff] }
0x1f39   : > { %6578 = vmatpush3.bf16.msra.mxu0 %v6577_v42  ;;  %6328 = vmatprep.mubr.msk.f32.mxu0 %vm6809_vm1, %v6810_v22 }
0x1f3a   : > { %6579 = vmatprep.subr.bf16.mxu0 %v6808_v14 }
0x1f3d   : > { %6581 = vmatpush3.bf16.msra.mxu0 %v6580_v49 }
0x1f3e   : > { %6342 = vmatprep.subr.mxu0 %v6810_v22 }
0x1f3f   : > { %v4513_v50 = vpop.f32.mrb[46].mxu1 }
0x1f40   : > { %v6319_v51 = vpop.f32.mrb[47].mxu1  ;;  %6329 = vmatmul.mubr.msk.f32.vlgmr.msra.gmra.mrb[42].mxu0 %vm743_vm0, %v7485_v9  ;;  %v4514_v60 = vadd.f32 %v5648_v57, %v4513_v50  ;;  %v5684_v50 = vld [vmem:[%s8087_s16 + $0x90] sm:$0xff]  ;;  %v5690_v57 = vld [vmem:[%s8087_s16 + $0xc0] sm:$0xff] }
0x1f41   : > { %6344 = vmatprep.mubr.msk.f32.mxu0 %vm6809_vm1, %v6810_v22  ;;  %v5685_v51 = vld [vmem:[%s8087_s16 + $0x98] sm:$0xff] }
0x1f47   : > { %v4679_v2 = vpop.f32.mrb[48].mxu1 }
0x1f48   : > { %v6341_v52 = vpop.f32.mrb[49].mxu1  ;;  %v4680_v61 = vadd.f32 %v5662_v59, %v4679_v2  ;;  %v6598_v2 = vpack.c.bf16 %v5685_v51, %v5684_v50  ;;  %v5692_v59 = vld [vmem:[%s8087_s16 + $0xd0] sm:$0xff]  ;;  %v5701_v50 = vld [vmem:[%s8090_s19] ss:$0 sm:$0xff]  ;;  %v5273_v51 = vld [vmem:[%s8093_s22 + $0x28] sm:$0xff] }
0x1f49   : > { %v5686_v52 = vld [vmem:[%s8087_s16 + $0xa0] sm:$0xff] }
0x200b   : > { %v4429_v53 = vpop.f32.mrb[40].mxu0 }
0x200c   : > { %v4433_v54 = vadd.f32 %v4429_v53, %v7692_v62  ;;  %v6308_v44 = vpop.f32.mrb[41].mxu0  ;;  %v5687_v53 = vld [vmem:[%s8087_s16 + $0xa8] sm:$0xff] }
0x200d   : > { %v5688_v44 = vld [vmem:[%s8087_s16 + $0xb0] sm:$0xff] }
0x2013   : > { %v4596_v56 = vpop.f32.mrb[42].mxu0 }
0x2014   : > { %v4597_v58 = vadd.f32 %v5655_v55, %v4596_v56  ;;  %v6330_v9 = vpop.f32.mrb[43].mxu0  ;;  %v5689_v55 = vld [vmem:[%s8087_s16 + $0xb8] sm:$0xff] }
0x2015   : > { %v6604_v56 = vpack.c.bf16 %v5689_v55, %v5688_v44  ;;  %v5272_v55 = vld [vmem:[%s8093_s22 + $0x20] sm:$0xff] }
0x2016   : > { %6343 = vmatpush3.xpose.msk.msra.mxu0 %vm1018_vm2, %v4597_v58  ;;  %v5691_v58 = vld [vmem:[%s8087_s16 + $0xc8] sm:$0xff] }
0x2017   : > { %6347 = vmatprep.subr.mxu0 %v6810_v22  ;;  %v6607_v9 = vpack.c.bf16 %v5691_v58, %v5690_v57  ;;  %v5277_v57 = vld [vmem:[%s8093_s22 + $0x48] sm:$0xff]  ;;  %v5279_v58 = vld [vmem:[%s8093_s22 + $0x58] sm:$0xff] }
0x2019   : > { %6345 = vmatmul.mubr.msk.f32.vlgmr.msra.gmra.mrb[44].mxu0 %vm1018_vm2, %v4514_v60  ;;  %v5693_v60 = vld [vmem:[%s8087_s16 + $0xd8] sm:$0xff] }
0x201a   : > { %6348 = vmatpush3.msra.mxu0 %v4680_v61  ;;  %6349 = vmatprep.mubr.msk.f32.mxu0 %vm6809_vm1, %v6810_v22  ;;  %v6610_v61 = vpack.c.bf16 %v5693_v60, %v5692_v59  ;;  %v6632_v59 = vpack.c.bf16 %v5279_v58, %v5277_v57  ;;  %v5276_v60 = vld [vmem:[%s8093_s22 + $0x40] sm:$0xff] }
0x201b   : > { %6588 = vmatprep.subr.bf16.mxu0 %v6808_v14 }
0x20ec   : > { %v4755_v62 = vpop.f32.mrb[44].mxu0 }
0x20ed   : > { %v4759_v63 = vmul.f32 0.35355338, %v4755_v62  ;;  %v6346_v0 = vpop.f32.mrb[45].mxu0  ;;  %v5694_v62 = vld [vmem:[%s8087_s16 + $0xe0] sm:$0xff] }
0x20ef   : > { %v4760_v1 = vsel %vm7121_vm3, %v4759_v63, -1e+30  ;;  %v5695_v63 = vld [vmem:[%s8087_s16 + $0xe8] sm:$0xff] }
0x20f0   : > { %v4761_v3 = vsel %vm1018_vm2, %v4760_v1, -inf  ;;  %v6613_v0 = vpack.c.bf16 %v5695_v63, %v5694_v62  ;;  %v5281_v62 = vld [vmem:[%s8093_s22 + $0x68] sm:$0xff]  ;;  %v5283_v63 = vld [vmem:[%s8093_s22 + $0x78] sm:$0xff] }
0x20f1   : > { %4762 = vmax.xlane.f32.xlu0 %v4761_v3  ;;  %v5697_v3 = vld [vmem:[%s8087_s16 + $0xf8] sm:$0xff] }
0x217e   : > { %v4763_v5 = vpop.xlane.xlu0 %4762 }
0x217f   : > { %v4764_v6 = vsub.f32 %v4760_v1, %v4763_v5  ;;  %v5696_v1 = vld [vmem:[%s8087_s16 + $0xf0] sm:$0xff] }
0x2180   : > { %v6616_v5 = vpack.c.bf16 %v5697_v3, %v5696_v1  ;;  %v5280_v1 = vld [vmem:[%s8093_s22 + $0x60] sm:$0xff]  ;;  %v5282_v3 = vld [vmem:[%s8093_s22 + $0x70] sm:$0xff] }
0x2181   : > { %v4765_v8 = vmul.f32 1.442695, %v4764_v6  ;;  %v5680_v6 = vld [vmem:[%s8086_s15 + $0x1] ss:$0 sm:$0xff] }
0x2183   : > { %6734 = vpow2.f32 %v4765_v8 }
0x218d   : > { %v6735_v10 = vpop.eup %6734 }
0x218e   : > { %v4767_v11 = vsel %vm1018_vm2, %v6735_v10, 0.0 }
0x218f   : > { %4768 = vadd.xlane.f32.xlu1 %v4767_v11 }
0x221c   : > { %v4769_v7 = vpop.xlane.xlu1 %4768 }
0x221d   : > { %6736 = vrcp.f32 %v4769_v7 }
0x2227   : > { %v6737_v13 = vpop.eup %6736 }
0x2228   : > { %v4771_v15 = vmul.f32 %v6737_v13, %v6735_v10 }
0x222a   : > { %6350 = vmatmul.mubr.msk.f32.vlgmr.msra.gmra.mrb[46].mxu0 %vm1018_vm2, %v4771_v15 }
0x222b   : > { %6365 = vmatprep.mubr.msk.f32.mxu0 %vm6809_vm1, %v6810_v22 }
0x22fd   : > { %v4841_v16 = vpop.f32.mrb[46].mxu0 }
0x22fe   : > { %v6351_v17 = vpop.f32.mrb[47].mxu0  ;;  %6355 = vmatmul.mubr.msk.f32.vlgmr.msra.gmra.mrb[50].mxu1 %vm1018_vm2, %v4841_v16 }
0x22ff   : > { %6400 = vmatprep.mubr.msk.f32.mxu1 %vm6809_vm1, %v6810_v22  ;;  %6596 = vmatpush3.bf16.msra.mxu1 %v6595_v37  ;;  %v5269_v37 = vld [vmem:[%s8093_s22 + $0x8] sm:$0xff] }
0x2300   : > { %6597 = vmatprep.subr.bf16.mxu1 %v6808_v14 }
0x2303   : > { %6599 = vmatpush3.bf16.msra.mxu1 %v6598_v2  ;;  %v5275_v2 = vld [vmem:[%s8093_s22 + $0x38] sm:$0xff] }
0x2304   : > { %6600 = vmatprep.subr.bf16.mxu1 %v6808_v14  ;;  %v6628_v44 = vpack.c.bf16 %v5275_v2, %v5273_v51 }
0x23d1   : > { %v4916_v38 = vpop.f32.mrb[50].mxu1 }
0x23d2   : > { %v4920_v18 = vadd.f32 %v4916_v38, %v4433_v54  ;;  %v6356_v19 = vpop.f32.mrb[51].mxu1  ;;  %v6601_v54 = vpack.c.bf16 %v5687_v53, %v5686_v52 }
0x23d4   : > { %v4921_v21 = vadd.f32 %v4920_v18, %v7453_v48  ;;  %v5676_v48 = vld [vmem:[%s8085_s14 + $0x28] sm:$0xff]  ;;  %6602 = vmatpush3.bf16.msra.mxu1 %v6601_v54 }
0x23d5   : > { %v6589_v31 = vpack.c.bf16 %v5676_v48, %v5675_v30  ;;  %6603 = vmatprep.subr.bf16.mxu1 %v6808_v14 }
0x23d6   : > { %v7806_v23 = vadd.f32 %v5670_v20, %v4921_v21  ;;  %v5699_v21 = vld [vmem:[%s8088_s17 + $0x1] ss:$0 sm:$0xff] }
0x23d7   : > { %6590 = vmatpush3.bf16.msra.mxu0 %v6589_v31 }
0x23d8   : > { %v4935_v24 = vsel %vm743_vm0, %v7806_v23, 0.0  ;;  %6591 = vmatprep.subr.bf16.mxu0 %v6808_v14  ;;  %6605 = vmatpush3.bf16.msra.mxu1 %v6604_v56  ;;  %v5274_v56 = vld [vmem:[%s8093_s22 + $0x30] sm:$0xff] }
0x23d9   : > { %4936 = vadd.xlane.f32.xlu0 %v4935_v24  ;;  %6606 = vmatprep.subr.bf16.mxu1 %v6808_v14 }
0x23db   : > { %6593 = vmatpush3.bf16.msra.mxu0 %v6592_v34  ;;  %v5185_v34 = vld [vmem:[%s8091_s20 + $0x10] sm:$0xff] }
0x23dc   : > { %6618 = vmatprep.subr.bf16.mxu0 %v6808_v14  ;;  %6608 = vmatpush3.bf16.msra.mxu1 %v6607_v9  ;;  %v6622_v36 = vpack.c.bf16 %v5186_v35, %v5185_v34  ;;  %v6630_v9 = vpack.c.bf16 %v5274_v56, %v5272_v55 }
0x23dd   : > { %6609 = vmatprep.subr.bf16.mxu1 %v6808_v14 }
0x23e0   : > { %6611 = vmatpush3.bf16.msra.mxu1 %v6610_v61  ;;  %v5278_v61 = vld [vmem:[%s8093_s22 + $0x50] sm:$0xff] }
0x23e1   : > { %6612 = vmatprep.subr.bf16.mxu1 %v6808_v14 }
0x23e4   : > { %6614 = vmatpush3.bf16.msra.mxu1 %v6613_v0  ;;  %v6636_v0 = vpack.c.bf16 %v5283_v63, %v5281_v62 }
0x23e5   : > { %6615 = vmatprep.subr.bf16.mxu1 %v6808_v14 }
0x23e8   : > { %6617 = vmatpush3.bf16.msra.mxu1 %v6616_v5  ;;  %v5285_v5 = vld [vmem:[%s8093_s22 + $0x88] sm:$0xff] }
0x2466   : > { %v4937_v25 = vpop.xlane.xlu0 %4936 }
0x2467   : > { %v4938_v26 = vmul.f32 0.03125, %v4937_v25 }
0x2469   : > { %v4939_v27 = vsub.f32 %v7806_v23, %v4938_v26 }
0x246b   : > { %v4940_v28 = vmul.f32 %v4939_v27, %v4939_v27 }
0x246d   : > { %v4941_v29 = vsel %vm743_vm0, %v4940_v28, 0.0 }
0x246e   : > { %4942 = vadd.xlane.f32.xlu1 %v4941_v29 }
0x24fb   : > { %v4943_v39 = vpop.xlane.xlu1 %4942 }
0x24fc   : > { %v4944_v40 = vmul.f32 0.03125, %v4943_v39  ;;  %v5271_v39 = vld [vmem:[%s8093_s22 + $0x18] sm:$0xff] }
0x24fe   : > { %v4945_v41 = vadd.f32 1e-05, %v4944_v40  ;;  %v6624_v40 = vpack.c.bf16 %v5271_v39, %v5269_v37  ;;  %v5300_v37 = vld [vmem:[%s8150_s7] sm:$0x3]  ;;  %v5308_v39 = vsub.s32 1, %v7118_v4  ;;  %s6750_s7 = scalar_lea.vmem %s6749_s4, 512 }
0x24ff   : > { %p6752_p1 = scmp.lt.s32.totalorder %s6750_s7, %s6744_s6 }
0x2500   : > { %6738 = vrsqrt.f32 %v4945_v41 }
0x2501   : > { %p6753_p2 = por %p6752_p1, %p6751_p0 }
0x2503   : > { %p6754_p3 = pnand %p6753_p2, %p6747_p13 }
0x250a   : > { %v6739_v42 = vpop.eup %6738 }
0x250b   : > { %v4947_v45 = vmul.f32 %v6739_v42, %v4939_v27 }
0x250d   : > { %v4954_v47 = vmul.f32 %v5673_v43, %v4947_v45  ;;  %v5700_v45 = vld [vmem:[%s8089_s18] ss:$0 sm:$0xff] }
0x250f   : > { %v4961_v49 = vadd.f32 %v5674_v46, %v4954_v47  ;;  %v5268_v47 = vld [vmem:[%s8093_s22] sm:$0xff] }
0x2511   : > { %6366 = vmatmul.mubr.msk.f32.vlgmr.msra.gmra.mrb[48].mxu0 %vm743_vm0, %v4961_v49  ;;  %v5270_v49 = vld [vmem:[%s8093_s22 + $0x10] sm:$0xff] }
0x2512   : > { %6411 = vmatprep.mubr.msk.f32.mxu0 %vm6809_vm1, %v6810_v22  ;;  %v6626_v53 = vpack.c.bf16 %v5270_v49, %v5268_v47 }
0x25e4   : > { %v5044_v8 = vpop.f32.mrb[48].mxu0 }
0x25e5   : > { %v5045_v10 = vadd.f32 %v5680_v6, %v5044_v8  ;;  %v6367_v11 = vpop.f32.mrb[49].mxu0  ;;  %v5287_v6 = vld [vmem:[%s8093_s22 + $0x98] sm:$0xff]  ;;  %v6638_v8 = vpack.c.bf16 %v5282_v3, %v5280_v1 }
0x25e6   : > { %v5284_v11 = vld [vmem:[%s8093_s22 + $0x80] sm:$0xff] }
0x25e7   : > { %v5048_v12 = vmul.f32 %v5045_v10, %v5045_v10 }
0x25e9   : > { %v5049_v7 = vmul.f32 %v5048_v12, %v5045_v10  ;;  %v5286_v12 = vld [vmem:[%s8093_s22 + $0x90] sm:$0xff] }
0x25eb   : > { %v5050_v13 = vmul.f32 0.044715, %v5049_v7  ;;  %v5289_v7 = vld [vmem:[%s8093_s22 + $0xa8] sm:$0xff] }
0x25ed   : > { %v5051_v15 = vadd.f32 %v5050_v13, %v5045_v10  ;;  %v5291_v13 = vld [vmem:[%s8093_s22 + $0xb8] sm:$0xff] }
0x25ef   : > { %v5052_v16 = vmul.f32 0.7978846, %v5051_v15  ;;  %v6642_v15 = vpack.c.bf16 %v5286_v12, %v5284_v11 }
0x25f1   : > { %6740 = vtanh.f32 %v5052_v16  ;;  %v6644_v16 = vpack.c.bf16 %v5291_v13, %v5289_v7 }
0x25fb   : > { %v6741_v17 = vpop.eup %6740 }
0x25fc   : > { %v5054_v38 = vadd.f32 1.0, %v6741_v17  ;;  %v5288_v17 = vld [vmem:[%s8093_s22 + $0xa0] sm:$0xff] }
0x25fe   : > { %v5055_v18 = vmul.f32 0.5, %v5054_v38  ;;  %v5290_v38 = vld [vmem:[%s8093_s22 + $0xb0] sm:$0xff] }
0x2600   : > { %v5056_v19 = vmul.f32 %v5055_v18, %v5045_v10  ;;  %v6640_v10 = vpack.c.bf16 %v5287_v6, %v5285_v5  ;;  %v5293_v18 = vld [vmem:[%s8093_s22 + $0xc8] sm:$0xff] }
0x2602   : > { %6401 = vmatmul.mubr.f32.vlgmr.msra.gmra.mrb[52].mxu1 %v5056_v19  ;;  %v5295_v19 = vld [vmem:[%s8093_s22 + $0xd8] sm:$0xff] }
0x26d5   : > { %v5140_v20 = vpop.f32.mrb[52].mxu1 }
0x26d6   : > { %v5144_v24 = vadd.f32 %v5140_v20, %v7806_v23  ;;  %v6402_v25 = vpop.f32.mrb[53].mxu1  ;;  %v5184_v23 = vld [vmem:[%s8091_s20 + $0x8] sm:$0xff]  ;;  %v6646_v20 = vpack.c.bf16 %v5290_v38, %v5288_v17 }
0x26d7   : > { %v6619_v33 = vpack.c.bf16 %v5184_v23, %v5183_v32  ;;  %v5294_v25 = vld [vmem:[%s8093_s22 + $0xd0] sm:$0xff]  ;;  %v5702_v32 = vld [vmem:[%s8149_s29] ss:$0 sm:$0xff] }
0x26d8   : > { %v5153_v26 = vadd.f32 %v5699_v21, %v5144_v24  ;;  %v6648_v21 = vpack.c.bf16 %v5295_v19, %v5293_v18  ;;  %v5292_v24 = vld [vmem:[%s8093_s22 + $0xc0] sm:$0xff] }
0x26d9   : > { %6620 = vmatpush3.bf16.msra.mxu0 %v6619_v33 }
0x26da   : > { %v5156_v27 = vsel %vm743_vm0, %v5153_v26, 0.0  ;;  %6621 = vmatprep.subr.bf16.mxu0 %v6808_v14 }
0x26db   : > { %5157 = vadd.xlane.f32.xlu0 %v5156_v27  ;;  %v5297_v27 = vld [vmem:[%s8093_s22 + $0xe8] sm:$0xff] }
0x26dd   : > { %6623 = vmatpush3.bf16.msra.mxu0 %v6622_v36  ;;  %v5304_v36 = vsub.s32 0, %v7118_v4 }
0x26de   : > { %6625 = vmatprep.subr.bf16.mxu0 %v6624_v40 }
0x26df   : > { %v5305_v40 = vrot.slane %v5300_v37, %v5304_v36 }
0x2768   : > { %v5158_v28 = vpop.xlane.xlu0 %5157 }
0x2769   : > { %v5159_v29 = vmul.f32 0.03125, %v5158_v28  ;;  %v5299_v28 = vld [vmem:[%s8093_s22 + $0xf8] sm:$0xff] }
0x276b   : > { %v5160_v30 = vsub.f32 %v5153_v26, %v5159_v29  ;;  %v6650_v26 = vpack.c.bf16 %v5294_v25, %v5292_v24  ;;  %v6652_v29 = vpack.c.bf16 %v5299_v28, %v5297_v27 }
0x276d   : > { %v5161_v48 = vmul.f32 %v5160_v30, %v5160_v30 }
0x276f   : > { %v5162_v31 = vsel %vm743_vm0, %v5161_v48, 0.0  ;;  %v5298_v48 = vld [vmem:[%s8093_s22 + $0xf0] sm:$0xff] }
0x2770   : > { %5163 = vadd.xlane.f32.xlu1 %v5162_v31 }
0x27fd   : > { %v5164_v14 = vpop.xlane.xlu1 %5163 }
0x27fe   : > { %v5165_v41 = vmul.f32 0.03125, %v5164_v14  ;;  %v5309_v14 = vrot.slane %v5300_v37, %v5308_v39 }
0x2800   : > { %v5166_v42 = vadd.f32 1e-05, %v5165_v41 }
0x2802   : > { %6742 = vrsqrt.f32 %v5166_v42 }
0x280c   : > { %v6743_v43 = vpop.eup %6742 }
0x280d   : > { %v5168_v46 = vmul.f32 %v6743_v43, %v5160_v30  ;;  %v5296_v30 = vld [vmem:[%s8093_s22 + $0xe0] sm:$0xff] }
0x280e   : > { %v6654_v31 = vpack.c.bf16 %v5298_v48, %v5296_v30 }
0x280f   : > { %v5175_v52 = vmul.f32 %v5700_v45, %v5168_v46 }
0x2811   : > { %v5182_v54 = vadd.f32 %v5701_v50, %v5175_v52 }
0x2813   : > { %6412 = vmatmul.mubr.msk.f32.vlgmr.msra.gmra.mrb[50].mxu0 %vm743_vm0, %v5182_v54 }
0x2814   : > { %6627 = vmatpush1.bf16.msra.mxu0 %v6626_v53  ;;  %5376 = vmatprep.mubr.f32.mxu0 %v6810_v22  ;;  %v6634_v22 = vpack.c.bf16 %v5278_v61, %v5276_v60 }
0x2815   : > { %6629 = vmatprep.subr.bf16.mxu0 %v6628_v44 }
0x2818   : > { %6631 = vmatpush1.bf16.msra.mxu0 %v6630_v9 }
0x2819   : > { %6633 = vmatprep.subr.bf16.mxu0 %v6632_v59 }
0x281c   : > { %6635 = vmatpush1.bf16.msra.mxu0 %v6634_v22 }
0x281d   : > { %6637 = vmatprep.subr.bf16.mxu0 %v6636_v0 }
0x2820   : > { %6639 = vmatpush1.bf16.msra.mxu0 %v6638_v8 }
0x2821   : > { %6641 = vmatprep.subr.bf16.mxu0 %v6640_v10 }
0x2824   : > { %6643 = vmatpush1.bf16.msra.mxu0 %v6642_v15 }
0x2825   : > { %6645 = vmatprep.subr.bf16.mxu0 %v6644_v16 }
0x2828   : > { %6647 = vmatpush1.bf16.msra.mxu0 %v6646_v20 }
0x2829   : > { %6649 = vmatprep.subr.bf16.mxu0 %v6648_v21 }
0x282c   : > { %6651 = vmatpush1.bf16.msra.mxu0 %v6650_v26 }
0x282d   : > { %6653 = vmatprep.subr.bf16.mxu0 %v6652_v29 }
0x2830   : > { %6655 = vmatpush1.bf16.msra.mxu0 %v6654_v31 }
0x28e6   : > { %v5263_v23 = vpop.f32.mrb[50].mxu0 }
0x28e7   : > { %v5264_v33 = vadd.f32 %v5702_v32, %v5263_v23  ;;  %v6413_v34 = vpop.f32.mrb[51].mxu0 }
0x28e9   : > { %v5267_v35 = vmax.f32 %v5264_v33, 0.0 }
0x28eb   : > { %5377 = vmatmul.mubr.f32.vlgmr.msra.gmra.mrb[52].mxu0 %v5267_v35 }
0x29be   : > { %v5378_v41 = vpop.f32.mrb[52].mxu0 }
0x29bf   : > { %v5379_v42 = vadd.f32 %v5378_v41, %v5305_v40  ;;  %v5380_v43 = vpop.f32.mrb[53].mxu0 }
0x29c0   : > { %v5381_v45 = vadd.f32 %v5380_v43, %v5309_v14 }
0x29c1   : > { %5383 = vst [vmem:[%s728_s5] sm:$0xff] %v5379_v42 }
0x29c2   : > { %5384 = vst [vmem:[%s728_s5 + $0x8] sm:$0xff] %v5381_v45 }
0x29c3   : > { %6757 = shalt.err (!%p6754_p3)
}
0x29c4   : > { %s6758_s28 = scalar_lea.hbm %s8029_s2, 256  ;;  %s6762_s24 = scalar_lea.hbm %s8152_s1, 512 }
0x29c5   : > { %p6759_p4 = scmp.ne.s32.totalorder %s8029_s2, %s6758_s28  ;;  %p6763_p9 = scmp.lt.u32.totalorder %s8029_s2, %s8152_s1 }
0x29c6   : > { %p6764_p10 = scmp.lt.u32.totalorder %s6762_s24, %s6758_s28  ;;  %p6766_p12 = scmp.lt.u32.totalorder %s6758_s28, %s8029_s2 }
0x29c7   : > { %p6760_p7 = pnand %p6759_p4, %p6975_p5 }
0x29c8   : > { %p6765_p11 = por %p6764_p10, %p6763_p9 }
0x29c9   : > { %p6761_p8 = pneg %p6760_p7 }
0x29ca   : > { %p6767_p13 = por %p6766_p12, %p6765_p11 }
0x29cc   : > { %p6768_p0 = pnand %p6767_p13, %p6761_p8 }
0x29ce   : > { %6771 = shalt.err (!%p6768_p0)
}
0x29cf   : > { %6656 = dma.vmem_to_hbm [thread:$0]  (%p6975_p5), %s8031_s0, 256, %s8029_s2, %s5386_s3  }
0x29d0 PF: > { %s8153_s6 = sld [smem:[#allocation7_spill]]  ;;  %s8154_s4 = sld [smem:[#allocation5_spill]] }
0x29d6   : > { %p6662_p1 = scmp.ge.s32.totalorder %s8153_s6, 2  ;;  %s5412_s25 = sand.u32 1, %s8154_s4  }
0x29d7   : > { %s5413_s5 = scalar_lea.sflag [#allocation3], %s5412_s25 }
0x29d8   : > { %p6659_p2 = pnand %p6662_p1, %p6979_p6 }
0x29da   : > { %6789 = dma.done.wait (!%p6659_p2), %s5413_s5, 256  }
0x29db   : > { %6791 = vsyncadd (!%p6659_p2), %s5413_s5, 4294967040  ;;  %s8156_s28 = sld [smem:[#allocation8_spill]]  ;;  %s8157_s24 = sld [smem:[#allocation6_spill]] }
0x29dc   : > { %s8158_s27 = sld [smem:[#allocation9_spill]]  ;;  %s8159_s5 = smov %s6798_s26 }
0x29e1   : > { %p34_p3 = scmp.ge.s32.totalorder %s8156_s28, 4   ;;  %s8160_s26 = smov %s8157_s24 }
0x29e3   :  { %36 = sbr.rel (!%p34_p3) target bundleno = 16 (0x10), region = 209 }
0x29ea   :  { %5418 = vsyncpa [#allocation3], 1 }
0x29eb   :  { %5420 = vsyncpa [#allocation3 + $0x1], 1 }

</bundles_post_ra>
